<compile_context>
chip_gen: v7x
topology: tpu7x:2x2x1
jax: 0.10.0
libtpu: 0.0.40
codegen_flags: <defaults>
</compile_context>

<pallas_src>
import jax
import jax.numpy as jnp
from jax import lax
from jax.experimental import pallas as pl
from jax.experimental.pallas import tpu as pltpu

EPS = 1e-5  # BatchNorm2d default eps


def _pick_tile(dim, target, align):
    """Largest divisor of `dim` that is <= target and a multiple of `align`;
    falls back to the full dimension (a full-extent block is always legal)."""
    if dim <= target:
        return dim
    if dim % align != 0:
        return dim
    t = (target // align) * align
    while t > align and dim % t != 0:
        t -= align
    return t if (t > 0 and dim % t == 0) else dim


# ------------------------------ Pallas kernels ------------------------------

def _matmul_kernel(x_ref, w_ref, o_ref, acc_ref):
    @pl.when(pl.program_id(2) == 0)
    def _():
        acc_ref[...] = jnp.zeros_like(acc_ref)

    acc_ref[...] += jnp.dot(x_ref[...], w_ref[...],
                            preferred_element_type=jnp.float32)

    @pl.when(pl.program_id(2) == pl.num_programs(2) - 1)
    def _():
        o_ref[...] = acc_ref[...]


def matmul_cols(x, w, *, tm_target=256, tk_target=512, tn_target=512):
    """(M, K) @ (K, NC) -> (M, NC) f32. bf16 operands, tiled over (M, NC, K)."""
    x = x.astype(jnp.bfloat16)
    w = w.astype(jnp.bfloat16)
    M, K = x.shape
    Kw, NC = w.shape
    assert K == Kw
    tm = _pick_tile(M, tm_target, 8)
    tk = _pick_tile(K, tk_target, 128)
    tn = _pick_tile(NC, tn_target, 128)
    grid = (M // tm, NC // tn, K // tk)
    cost = pl.CostEstimate(flops=2 * M * K * NC, transcendentals=0,
                           bytes_accessed=2 * M * K + 2 * K * NC + 4 * M * NC)
    return pl.pallas_call(
        _matmul_kernel,
        out_shape=jax.ShapeDtypeStruct((M, NC), jnp.float32),
        grid=grid,
        in_specs=[pl.BlockSpec((tm, tk), lambda i, j, k: (i, k)),
                  pl.BlockSpec((tk, tn), lambda i, j, k: (k, j))],
        out_specs=pl.BlockSpec((tm, tn), lambda i, j, k: (i, j)),
        scratch_shapes=[pltpu.VMEM((tm, tn), jnp.float32)],
        compiler_params=pltpu.CompilerParams(
            dimension_semantics=("parallel", "parallel", "arbitrary")),
        cost_estimate=cost,
    )(x, w)


def _bn_stats_kernel(y_ref, stat_ref):
    @pl.when(pl.program_id(0) == 0)
    def _():
        stat_ref[...] = jnp.zeros_like(stat_ref)

    y = y_ref[...]
    stat_ref[...] += jnp.concatenate(
        [jnp.sum(y, axis=0, keepdims=True),
         jnp.sum(y * y, axis=0, keepdims=True)], axis=0)


def _bn_apply_relu_kernel(y_ref, scale_ref, shift_ref, o_ref):
    o_ref[...] = jnp.maximum(
        y_ref[...] * scale_ref[...] + shift_ref[...], 0.0).astype(o_ref.dtype)


def batchnorm_relu(y, gamma, beta, *, tm_target=1024):
    """Training-mode BatchNorm2d + ReLU over an (M, C) slab. Returns bf16 slab."""
    M, C = y.shape
    tm = _pick_tile(M, tm_target, 8)
    grid = (M // tm,)
    # Pass 1: tiled partial sums (sum, sum-of-squares) per channel.
    stats = pl.pallas_call(
        _bn_stats_kernel,
        out_shape=jax.ShapeDtypeStruct((2, C), jnp.float32),
        grid=grid,
        in_specs=[pl.BlockSpec((tm, C), lambda i: (i, 0))],
        out_specs=pl.BlockSpec((2, C), lambda i: (0, 0)),
        compiler_params=pltpu.CompilerParams(dimension_semantics=("arbitrary",)),
    )(y)
    mean = stats[0] / M
    var = jnp.maximum(stats[1] / M - mean * mean, 0.0)
    scale = gamma * lax.rsqrt(var + EPS)
    shift = beta - mean * scale
    # Pass 2: apply normalization + ReLU, emit bf16 for the next matmul.
    return pl.pallas_call(
        _bn_apply_relu_kernel,
        out_shape=jax.ShapeDtypeStruct((M, C), jnp.bfloat16),
        grid=grid,
        in_specs=[pl.BlockSpec((tm, C), lambda i: (i, 0)),
                  pl.BlockSpec((1, C), lambda i: (0, 0)),
                  pl.BlockSpec((1, C), lambda i: (0, 0))],
        out_specs=pl.BlockSpec((tm, C), lambda i: (i, 0)),
        compiler_params=pltpu.CompilerParams(dimension_semantics=("parallel",)),
    )(y, scale.reshape(1, C), shift.reshape(1, C))


def _bias_tanh_kernel(y_ref, b_ref, o_ref):
    o_ref[...] = jnp.tanh(y_ref[...] + b_ref[...])


def bias_tanh_lane_dense(y_nhwc, bias, *, tm_target=1024):
    """y: (N, H, W, 1) f32. Reshape to a lane-dense (M, 128) slab, fused +bias, tanh."""
    N, H, W, C = y_nhwc.shape
    assert C == 1
    total = N * H * W
    L = 128 if total % 128 == 0 else W
    M = total // L
    y2 = y_nhwc.reshape(M, L)
    brow = jnp.full((1, L), bias[0], jnp.float32)   # C_out == 1: scalar bias everywhere
    tm = _pick_tile(M, tm_target, 8)
    out = pl.pallas_call(
        _bias_tanh_kernel,
        out_shape=jax.ShapeDtypeStruct((M, L), jnp.float32),
        grid=(M // tm,),
        in_specs=[pl.BlockSpec((tm, L), lambda i: (i, 0)),
                  pl.BlockSpec((1, L), lambda i: (0, 0))],
        out_specs=pl.BlockSpec((tm, L), lambda i: (i, 0)),
        compiler_params=pltpu.CompilerParams(dimension_semantics=("parallel",)),
        cost_estimate=pl.CostEstimate(flops=total, transcendentals=total,
                                      bytes_accessed=8 * total),
    )(y2, brow)
    return out.reshape(N, H, W, C)


# -------------------------------- JAX glue ----------------------------------

def col2im_add(cols, N, Hin, Win, C_out, k, stride, pad):
    """Overlap-add of transposed-conv columns.

    cols: (N*Hin*Win, C_out*k*k), feature order (co, kh, kw), rows ordered (n, h, w).
    Returns (N, Ho, Wo, C_out)."""
    Ho = (Hin - 1) * stride - 2 * pad + k
    Wo = (Win - 1) * stride - 2 * pad + k
    Hf = (Hin - 1) * stride + k
    Wf = (Win - 1) * stride + k
    c6 = cols.reshape(N, Hin, Win, C_out, k, k)
    out = jnp.zeros((N, Hf, Wf, C_out), cols.dtype)
    for kh in range(k):
        for kw in range(k):
            out = out.at[:, kh:kh + (Hin - 1) * stride + 1:stride,
                         kw:kw + (Win - 1) * stride + 1:stride, :].add(
                             c6[:, :, :, :, kh, kw])
    return out[:, pad:pad + Ho, pad:pad + Wo, :]


def deconv_cols(x_slab, Hin, Win, w, stride, pad):
    """ConvTranspose2d (no bias) on a channel-last slab x_slab (N*Hin*Win, C_in)."""
    C_in, C_out, k, _ = w.shape
    N = x_slab.shape[0] // (Hin * Win)
    cols = matmul_cols(x_slab, w.reshape(C_in, C_out * k * k))
    return col2im_add(cols, N, Hin, Win, C_out, k, stride, pad)


def dccgan_generator_forward(params, inp, label):
    """inp: (N, labels*labels, 1, 1), label: (N, labels, 1, 1) -> (N, 1, 32, 32)."""
    N = inp.shape[0]
    z = inp.reshape(N, inp.shape[1])        # 1x1 spatial -> (N, C) slab
    c = label.reshape(N, label.shape[1])

    def bn_layer(slab, Hin, Win, name, stride, pad):
        # ConvTranspose bias is skipped: exactly cancelled by BatchNorm's mean subtraction.
        y = deconv_cols(slab, Hin, Win, params[name + "_w"], stride, pad)  # (N,Ho,Wo,C) f32
        Nn, Ho, Wo, C = y.shape
        a = batchnorm_relu(y.reshape(Nn * Ho * Wo, C),
                           params[name + "_gamma"], params[name + "_beta"])
        return a, Ho, Wo

    a1, H, W = bn_layer(z, 1, 1, "deconv1_1", 1, 0)    # (N*16, 2d)
    a2, _, _ = bn_layer(c, 1, 1, "deconv1_2", 1, 0)    # (N*16, 2d)
    x = jnp.concatenate([a1, a2], axis=1)              # channel concat in slab layout
    x, H, W = bn_layer(x, H, W, "deconv2", 2, 1)       # (N*64, 2d)
    x, H, W = bn_layer(x, H, W, "deconv3", 2, 1)       # (N*256, d)

    y = deconv_cols(x, H, W, params["deconv4_w"], 2, 1)        # (N, 32, 32, 1) f32
    out = bias_tanh_lane_dense(y, params["deconv4_b"])         # (N, 32, 32, 1)
    return jnp.transpose(out, (0, 3, 1, 2))                    # NCHW


def init_params(key, labels, d):
    """normal_init(0, 0.02) for weights; small nonzero biases / BN affine to exercise
    the full data path (bias on BN layers is mathematically cancelled by BN)."""
    layer_io = {
        "deconv1_1": (labels * labels, 2 * d),
        "deconv1_2": (labels, 2 * d),
        "deconv2": (4 * d, 2 * d),
        "deconv3": (2 * d, d),
        "deconv4": (d, 1),
    }
    params = {}
    for i, (name, (cin, cout)) in enumerate(layer_io.items()):
        k0, k1, k2, k3 = jax.random.split(jax.random.fold_in(key, i), 4)
        params[name + "_w"] = 0.02 * jax.random.normal(k0, (cin, cout, 4, 4), jnp.float32)
        params[name + "_b"] = 0.01 * jax.random.normal(k1, (cout,), jnp.float32)
        if name != "deconv4":
            params[name + "_gamma"] = 1.0 + 0.05 * jax.random.normal(k2, (cout,), jnp.float32)
            params[name + "_beta"] = 0.05 * jax.random.normal(k3, (cout,), jnp.float32)
    return params


# ------------------------- pure-JAX reference check -------------------------

def _ref_convT(x, w, b, s, p):
    k = w.shape[-1]
    wf = jnp.transpose(w[:, :, ::-1, ::-1], (1, 0, 2, 3))      # -> OIHW, taps flipped
    y = lax.conv_general_dilated(
        x.astype(jnp.bfloat16), wf.astype(jnp.bfloat16), (1, 1),
        [(k - 1 - p, k - 1 - p)] * 2, lhs_dilation=(s, s),
        dimension_numbers=("NCHW", "OIHW", "NCHW"),
        preferred_element_type=jnp.float32)
    return y + b.reshape(1, -1, 1, 1)


def _ref_bn_relu(x, gamma, beta):
    mean = jnp.mean(x, axis=(0, 2, 3), keepdims=True)
    var = jnp.mean((x - mean) ** 2, axis=(0, 2, 3), keepdims=True)
    xn = (x - mean) * lax.rsqrt(var + EPS)
    return jnp.maximum(xn * gamma.reshape(1, -1, 1, 1) + beta.reshape(1, -1, 1, 1), 0.0)


def reference_forward(params, inp, label):
    x = _ref_bn_relu(_ref_convT(inp, params["deconv1_1_w"], params["deconv1_1_b"], 1, 0),
                     params["deconv1_1_gamma"], params["deconv1_1_beta"])
    y = _ref_bn_relu(_ref_convT(label, params["deconv1_2_w"], params["deconv1_2_b"], 1, 0),
                     params["deconv1_2_gamma"], params["deconv1_2_beta"])
    x = jnp.concatenate([x, y], axis=1)
    x = _ref_bn_relu(_ref_convT(x, params["deconv2_w"], params["deconv2_b"], 2, 1),
                     params["deconv2_gamma"], params["deconv2_beta"])
    x = _ref_bn_relu(_ref_convT(x, params["deconv3_w"], params["deconv3_b"], 2, 1),
                     params["deconv3_gamma"], params["deconv3_beta"])
    return jnp.tanh(_ref_convT(x, params["deconv4_w"], params["deconv4_b"], 2, 1))


# ----------------------------------- main -----------------------------------

if __name__ == "__main__":
    labels, d, N = 4, 32, 2     # small synthetic sizes (PyTorch default d=256)
    key = jax.random.PRNGKey(0)
    kp, ki, kl = jax.random.split(key, 3)
    params = init_params(kp, labels, d)
    inp = jax.random.normal(ki, (N, labels * labels, 1, 1), jnp.float32)
    lab = jax.random.normal(kl, (N, labels, 1, 1), jnp.float32)

    fwd = jax.jit(dccgan_generator_forward)
    out = jax.block_until_ready(fwd(params, inp, lab))
    assert out.shape == (N, 1, 32, 32), out.shape

    ref = jax.block_until_ready(reference_forward(params, inp, lab))
    assert out.shape == ref.shape
    assert bool(jnp.allclose(out, ref, atol=1e-2, rtol=1e-2)), \
        float(jnp.max(jnp.abs(out - ref)))

    print("KERNEL_OK")
</pallas_src>

<mosaic_0001>
module attributes {stable_mosaic.version = 11 : i64} {
  func.func @_matmul_kernel(%arg0: i32, %arg1: i32, %arg2: i32, %arg3: memref<2x16xbf16, #tpu.memory_space<vmem>>, %arg4: memref<16x512xbf16, #tpu.memory_space<vmem>>, %arg5: memref<2x512xf32, #tpu.memory_space<vmem>>, %arg6: memref<2x512xf32, #tpu.memory_space<vmem>>) attributes {dimension_semantics = [#tpu.dimension_semantics<parallel>, #tpu.dimension_semantics<parallel>, #tpu.dimension_semantics<arbitrary>], iteration_bounds = array<i64: 1, 2, 1>, scalar_prefetch = 0 : i64, scratch_operands = 1 : i64, tpu.core_type = #tpu.core_type<tc>, window_params = [{transform_indices = @transform_0, window_bounds = array<i64: 2, 16>}, {transform_indices = @transform_1, window_bounds = array<i64: 16, 512>}, {transform_indices = @transform_2, window_bounds = array<i64: 2, 512>}]} {
    %c0_i32 = arith.constant 0 : i32
    %0 = arith.cmpi eq, %arg2, %c0_i32 : i32
    %1 = arith.extui %0 : i1 to i32
    %c0_i32_0 = arith.constant 0 : i32
    %2 = arith.cmpi ne, %1, %c0_i32_0 : i32
    scf.if %2 {
      %cst_10 = arith.constant 0.000000e+00 : f32
      %12 = vector.broadcast %cst_10 : f32 to vector<2x512xf32>
      %c0_11 = arith.constant 0 : index
      %c0_12 = arith.constant 0 : index
      %13 = vector.load %arg6[%c0_11, %c0_12] : memref<2x512xf32, #tpu.memory_space<vmem>>, vector<2x512xf32>
      tpu.vector_store %arg6[%c0_11, %c0_12], %12 {strides = array<i32>} : memref<2x512xf32, #tpu.memory_space<vmem>>, vector<2x512xf32>,
    } else {
    }
    %c0 = arith.constant 0 : index
    %c0_1 = arith.constant 0 : index
    %3 = vector.load %arg6[%c0, %c0_1] : memref<2x512xf32, #tpu.memory_space<vmem>>, vector<2x512xf32>
    %c0_2 = arith.constant 0 : index
    %c0_3 = arith.constant 0 : index
    %4 = vector.load %arg3[%c0_2, %c0_3] : memref<2x16xbf16, #tpu.memory_space<vmem>>, vector<2x16xbf16>
    %c0_4 = arith.constant 0 : index
    %c0_5 = arith.constant 0 : index
    %5 = vector.load %arg4[%c0_4, %c0_5] : memref<16x512xbf16, #tpu.memory_space<vmem>>, vector<16x512xbf16>
    %cst = arith.constant dense<0.000000e+00> : vector<2x512xf32>
    %6 = tpu.matmul %4, %5, %cst {dimension_numbers = #tpu.dot_dimension_numbers<[1], [0], [0], [1], [0, 0, 1, 1], [], []>} : vector<2x16xbf16>, vector<16x512xbf16>, vector<2x512xf32> -> vector<2x512xf32>
    %7 = arith.addf %3, %6 : vector<2x512xf32>
    %c0_6 = arith.constant 0 : index
    %c0_7 = arith.constant 0 : index
    %8 = vector.load %arg6[%c0_6, %c0_7] : memref<2x512xf32, #tpu.memory_space<vmem>>, vector<2x512xf32>
    tpu.vector_store %arg6[%c0_6, %c0_7], %7 {strides = array<i32>} : memref<2x512xf32, #tpu.memory_space<vmem>>, vector<2x512xf32>,
    %c0_i32_8 = arith.constant 0 : i32
    %9 = arith.cmpi eq, %arg2, %c0_i32_8 : i32
    %10 = arith.extui %9 : i1 to i32
    %c0_i32_9 = arith.constant 0 : i32
    %11 = arith.cmpi ne, %10, %c0_i32_9 : i32
    scf.if %11 {
      %c0_10 = arith.constant 0 : index
      %c0_11 = arith.constant 0 : index
      %12 = vector.load %arg6[%c0_10, %c0_11] : memref<2x512xf32, #tpu.memory_space<vmem>>, vector<2x512xf32>
      %c0_12 = arith.constant 0 : index
      %c0_13 = arith.constant 0 : index
      %13 = vector.load %arg5[%c0_12, %c0_13] : memref<2x512xf32, #tpu.memory_space<vmem>>, vector<2x512xf32>
      tpu.vector_store %arg5[%c0_12, %c0_13], %12 {strides = array<i32>} : memref<2x512xf32, #tpu.memory_space<vmem>>, vector<2x512xf32>,
    } else {
    }
    return
  }
  func.func @transform_0(%arg0: i32, %arg1: i32, %arg2: i32) -> (i32, i32) {
    %c0_i32 = arith.constant 0 : i32
    return %arg0, %arg2 : i32, i32
  }
  func.func @transform_1(%arg0: i32, %arg1: i32, %arg2: i32) -> (i32, i32) {
    %c0_i32 = arith.constant 0 : i32
    return %arg2, %arg1 : i32, i32
  }
  func.func @transform_2(%arg0: i32, %arg1: i32, %arg2: i32) -> (i32, i32) {
    %c0_i32 = arith.constant 0 : i32
    return %arg0, %arg1 : i32, i32
  }
}

module attributes {stable_mosaic.version = 11 : i64} {
  func.func @_matmul_kernel(%arg0: i32, %arg1: i32, %arg2: i32, %arg3: memref<2x4xbf16, #tpu.memory_space<vmem>>, %arg4: memref<4x512xbf16, #tpu.memory_space<vmem>>, %arg5: memref<2x512xf32, #tpu.memory_space<vmem>>, %arg6: memref<2x512xf32, #tpu.memory_space<vmem>>) attributes {dimension_semantics = [#tpu.dimension_semantics<parallel>, #tpu.dimension_semantics<parallel>, #tpu.dimension_semantics<arbitrary>], iteration_bounds = array<i64: 1, 2, 1>, scalar_prefetch = 0 : i64, scratch_operands = 1 : i64, tpu.core_type = #tpu.core_type<tc>, window_params = [{transform_indices = @transform_0, window_bounds = array<i64: 2, 4>}, {transform_indices = @transform_1, window_bounds = array<i64: 4, 512>}, {transform_indices = @transform_2, window_bounds = array<i64: 2, 512>}]} {
    %c0_i32 = arith.constant 0 : i32
    %0 = arith.cmpi eq, %arg2, %c0_i32 : i32
    %1 = arith.extui %0 : i1 to i32
    %c0_i32_0 = arith.constant 0 : i32
    %2 = arith.cmpi ne, %1, %c0_i32_0 : i32
    scf.if %2 {
      %cst_10 = arith.constant 0.000000e+00 : f32
      %12 = vector.broadcast %cst_10 : f32 to vector<2x512xf32>
      %c0_11 = arith.constant 0 : index
      %c0_12 = arith.constant 0 : index
      %13 = vector.load %arg6[%c0_11, %c0_12] : memref<2x512xf32, #tpu.memory_space<vmem>>, vector<2x512xf32>
      tpu.vector_store %arg6[%c0_11, %c0_12], %12 {strides = array<i32>} : memref<2x512xf32, #tpu.memory_space<vmem>>, vector<2x512xf32>,
    } else {
    }
    %c0 = arith.constant 0 : index
    %c0_1 = arith.constant 0 : index
    %3 = vector.load %arg6[%c0, %c0_1] : memref<2x512xf32, #tpu.memory_space<vmem>>, vector<2x512xf32>
    %c0_2 = arith.constant 0 : index
    %c0_3 = arith.constant 0 : index
    %4 = vector.load %arg3[%c0_2, %c0_3] : memref<2x4xbf16, #tpu.memory_space<vmem>>, vector<2x4xbf16>
    %c0_4 = arith.constant 0 : index
    %c0_5 = arith.constant 0 : index
    %5 = vector.load %arg4[%c0_4, %c0_5] : memref<4x512xbf16, #tpu.memory_space<vmem>>, vector<4x512xbf16>
    %cst = arith.constant dense<0.000000e+00> : vector<2x512xf32>
    %6 = tpu.matmul %4, %5, %cst {dimension_numbers = #tpu.dot_dimension_numbers<[1], [0], [0], [1], [0, 0, 1, 1], [], []>} : vector<2x4xbf16>, vector<4x512xbf16>, vector<2x512xf32> -> vector<2x512xf32>
    %7 = arith.addf %3, %6 : vector<2x512xf32>
    %c0_6 = arith.constant 0 : index
    %c0_7 = arith.constant 0 : index
    %8 = vector.load %arg6[%c0_6, %c0_7] : memref<2x512xf32, #tpu.memory_space<vmem>>, vector<2x512xf32>
    tpu.vector_store %arg6[%c0_6, %c0_7], %7 {strides = array<i32>} : memref<2x512xf32, #tpu.memory_space<vmem>>, vector<2x512xf32>,
    %c0_i32_8 = arith.constant 0 : i32
    %9 = arith.cmpi eq, %arg2, %c0_i32_8 : i32
    %10 = arith.extui %9 : i1 to i32
    %c0_i32_9 = arith.constant 0 : i32
    %11 = arith.cmpi ne, %10, %c0_i32_9 : i32
    scf.if %11 {
      %c0_10 = arith.constant 0 : index
      %c0_11 = arith.constant 0 : index
      %12 = vector.load %arg6[%c0_10, %c0_11] : memref<2x512xf32, #tpu.memory_space<vmem>>, vector<2x512xf32>
      %c0_12 = arith.constant 0 : index
      %c0_13 = arith.constant 0 : index
      %13 = vector.load %arg5[%c0_12, %c0_13] : memref<2x512xf32, #tpu.memory_space<vmem>>, vector<2x512xf32>
      tpu.vector_store %arg5[%c0_12, %c0_13], %12 {strides = array<i32>} : memref<2x512xf32, #tpu.memory_space<vmem>>, vector<2x512xf32>,
    } else {
    }
    return
  }
  func.func @transform_0(%arg0: i32, %arg1: i32, %arg2: i32) -> (i32, i32) {
    %c0_i32 = arith.constant 0 : i32
    return %arg0, %arg2 : i32, i32
  }
  func.func @transform_1(%arg0: i32, %arg1: i32, %arg2: i32) -> (i32, i32) {
    %c0_i32 = arith.constant 0 : i32
    return %arg2, %arg1 : i32, i32
  }
  func.func @transform_2(%arg0: i32, %arg1: i32, %arg2: i32) -> (i32, i32) {
    %c0_i32 = arith.constant 0 : i32
    return %arg0, %arg1 : i32, i32
  }
}

module attributes {stable_mosaic.version = 11 : i64} {
  func.func @_bn_stats_kernel(%arg0: i32, %arg1: memref<32x64xf32, #tpu.memory_space<vmem>>, %arg2: memref<2x64xf32, #tpu.memory_space<vmem>>) attributes {dimension_semantics = [#tpu.dimension_semantics<arbitrary>], iteration_bounds = array<i64: 1>, scalar_prefetch = 0 : i64, scratch_operands = 0 : i64, tpu.core_type = #tpu.core_type<tc>, window_params = [{transform_indices = @transform_0, window_bounds = array<i64: 32, 64>}, {pipeline_mode = #tpu.pipeline_mode<synchronous>, transform_indices = @transform_1, window_bounds = array<i64: 2, 64>}]} {
    %c0_i32 = arith.constant 0 : i32
    %0 = arith.cmpi eq, %arg0, %c0_i32 : i32
    %1 = arith.extui %0 : i1 to i32
    %c0_i32_0 = arith.constant 0 : i32
    %2 = arith.cmpi ne, %1, %c0_i32_0 : i32
    scf.if %2 {
      %cst_7 = arith.constant 0.000000e+00 : f32
      %13 = vector.broadcast %cst_7 : f32 to vector<2x64xf32>
      %c0_8 = arith.constant 0 : index
      %c0_9 = arith.constant 0 : index
      %14 = vector.load %arg2[%c0_8, %c0_9] : memref<2x64xf32, #tpu.memory_space<vmem>>, vector<2x64xf32>
      tpu.vector_store %arg2[%c0_8, %c0_9], %13 {strides = array<i32>} : memref<2x64xf32, #tpu.memory_space<vmem>>, vector<2x64xf32>,
    } else {
    }
    %c0 = arith.constant 0 : index
    %c0_1 = arith.constant 0 : index
    %3 = vector.load %arg1[%c0, %c0_1] : memref<32x64xf32, #tpu.memory_space<vmem>>, vector<32x64xf32>
    %c0_2 = arith.constant 0 : index
    %c0_3 = arith.constant 0 : index
    %4 = vector.load %arg2[%c0_2, %c0_3] : memref<2x64xf32, #tpu.memory_space<vmem>>, vector<2x64xf32>
    %cst = arith.constant dense<0.000000e+00> : vector<64xf32>
    %5 = vector.multi_reduction <add>, %3, %cst [0] : vector<32x64xf32> to vector<64xf32>
    %6 = vector.shape_cast %5 : vector<64xf32> to vector<1x64xf32>
    %7 = arith.mulf %3, %3 : vector<32x64xf32>
    %cst_4 = arith.constant dense<0.000000e+00> : vector<64xf32>
    %8 = vector.multi_reduction <add>, %7, %cst_4 [0] : vector<32x64xf32> to vector<64xf32>
    %9 = vector.shape_cast %8 : vector<64xf32> to vector<1x64xf32>
    %10 = tpu.concatenate %6, %9 in 0 : vector<1x64xf32>, vector<1x64xf32> -> vector<2x64xf32>
    %11 = arith.addf %4, %10 : vector<2x64xf32>
    %c0_5 = arith.constant 0 : index
    %c0_6 = arith.constant 0 : index
    %12 = vector.load %arg2[%c0_5, %c0_6] : memref<2x64xf32, #tpu.memory_space<vmem>>, vector<2x64xf32>
    tpu.vector_store %arg2[%c0_5, %c0_6], %11 {strides = array<i32>} : memref<2x64xf32, #tpu.memory_space<vmem>>, vector<2x64xf32>,
    return
  }
  func.func @transform_0(%arg0: i32) -> (i32, i32) {
    %c0_i32 = arith.constant 0 : i32
    %c0_i32_0 = arith.constant 0 : i32
    return %arg0, %c0_i32 : i32, i32
  }
  func.func @transform_1(%arg0: i32) -> (i32, i32) {
    %c0_i32 = arith.constant 0 : i32
    %c0_i32_0 = arith.constant 0 : i32
    %c0_i32_1 = arith.constant 0 : i32
    return %c0_i32, %c0_i32_0 : i32, i32
  }
}

module attributes {stable_mosaic.version = 11 : i64} {
  func.func @_bn_apply_relu_kernel(%arg0: i32, %arg1: memref<32x64xf32, #tpu.memory_space<vmem>>, %arg2: memref<1x64xf32, #tpu.memory_space<vmem>>, %arg3: memref<1x64xf32, #tpu.memory_space<vmem>>, %arg4: memref<32x64xbf16, #tpu.memory_space<vmem>>) attributes {dimension_semantics = [#tpu.dimension_semantics<parallel>], iteration_bounds = array<i64: 1>, scalar_prefetch = 0 : i64, scratch_operands = 0 : i64, tpu.core_type = #tpu.core_type<tc>, window_params = [{transform_indices = @transform_0, window_bounds = array<i64: 32, 64>}, {pipeline_mode = #tpu.pipeline_mode<synchronous>, transform_indices = @transform_1, window_bounds = array<i64: 1, 64>}, {pipeline_mode = #tpu.pipeline_mode<synchronous>, transform_indices = @transform_2, window_bounds = array<i64: 1, 64>}, {transform_indices = @transform_3, window_bounds = array<i64: 32, 64>}]} {
    %c0 = arith.constant 0 : index
    %c0_0 = arith.constant 0 : index
    %0 = vector.load %arg1[%c0, %c0_0] : memref<32x64xf32, #tpu.memory_space<vmem>>, vector<32x64xf32>
    %c0_1 = arith.constant 0 : index
    %c0_2 = arith.constant 0 : index
    %1 = vector.load %arg2[%c0_1, %c0_2] : memref<1x64xf32, #tpu.memory_space<vmem>>, vector<1x64xf32>
    %2 = vector.broadcast %1 : vector<1x64xf32> to vector<32x64xf32>
    %3 = arith.mulf %0, %2 : vector<32x64xf32>
    %c0_3 = arith.constant 0 : index
    %c0_4 = arith.constant 0 : index
    %4 = vector.load %arg3[%c0_3, %c0_4] : memref<1x64xf32, #tpu.memory_space<vmem>>, vector<1x64xf32>
    %5 = vector.broadcast %4 : vector<1x64xf32> to vector<32x64xf32>
    %6 = arith.addf %3, %5 : vector<32x64xf32>
    %cst = arith.constant 0.000000e+00 : f32
    %7 = vector.broadcast %cst : f32 to vector<32x64xf32>
    %8 = arith.maximumf %6, %7 : vector<32x64xf32>
    %9 = arith.truncf %8 : vector<32x64xf32> to vector<32x64xbf16>
    %c0_5 = arith.constant 0 : index
    %c0_6 = arith.constant 0 : index
    %10 = vector.load %arg4[%c0_5, %c0_6] : memref<32x64xbf16, #tpu.memory_space<vmem>>, vector<32x64xbf16>
    tpu.vector_store %arg4[%c0_5, %c0_6], %9 {strides = array<i32>} : memref<32x64xbf16, #tpu.memory_space<vmem>>, vector<32x64xbf16>,
    return
  }
  func.func @transform_0(%arg0: i32) -> (i32, i32) {
    %c0_i32 = arith.constant 0 : i32
    %c0_i32_0 = arith.constant 0 : i32
    return %arg0, %c0_i32 : i32, i32
  }
  func.func @transform_1(%arg0: i32) -> (i32, i32) {
    %c0_i32 = arith.constant 0 : i32
    %c0_i32_0 = arith.constant 0 : i32
    %c0_i32_1 = arith.constant 0 : i32
    return %c0_i32, %c0_i32_0 : i32, i32
  }
  func.func @transform_2(%arg0: i32) -> (i32, i32) {
    %c0_i32 = arith.constant 0 : i32
    %c0_i32_0 = arith.constant 0 : i32
    %c0_i32_1 = arith.constant 0 : i32
    return %c0_i32, %c0_i32_0 : i32, i32
  }
  func.func @transform_3(%arg0: i32) -> (i32, i32) {
    %c0_i32 = arith.constant 0 : i32
    %c0_i32_0 = arith.constant 0 : i32
    return %arg0, %c0_i32 : i32, i32
  }
}

module attributes {stable_mosaic.version = 11 : i64} {
  func.func @_matmul_kernel(%arg0: i32, %arg1: i32, %arg2: i32, %arg3: memref<32x128xbf16, #tpu.memory_space<vmem>>, %arg4: memref<128x512xbf16, #tpu.memory_space<vmem>>, %arg5: memref<32x512xf32, #tpu.memory_space<vmem>>, %arg6: memref<32x512xf32, #tpu.memory_space<vmem>>) attributes {dimension_semantics = [#tpu.dimension_semantics<parallel>, #tpu.dimension_semantics<parallel>, #tpu.dimension_semantics<arbitrary>], iteration_bounds = array<i64: 1, 2, 1>, scalar_prefetch = 0 : i64, scratch_operands = 1 : i64, tpu.core_type = #tpu.core_type<tc>, window_params = [{transform_indices = @transform_0, window_bounds = array<i64: 32, 128>}, {transform_indices = @transform_1, window_bounds = array<i64: 128, 512>}, {transform_indices = @transform_2, window_bounds = array<i64: 32, 512>}]} {
    %c0_i32 = arith.constant 0 : i32
    %0 = arith.cmpi eq, %arg2, %c0_i32 : i32
    %1 = arith.extui %0 : i1 to i32
    %c0_i32_0 = arith.constant 0 : i32
    %2 = arith.cmpi ne, %1, %c0_i32_0 : i32
    scf.if %2 {
      %cst_10 = arith.constant 0.000000e+00 : f32
      %12 = vector.broadcast %cst_10 : f32 to vector<32x512xf32>
      %c0_11 = arith.constant 0 : index
      %c0_12 = arith.constant 0 : index
      %13 = vector.load %arg6[%c0_11, %c0_12] : memref<32x512xf32, #tpu.memory_space<vmem>>, vector<32x512xf32>
      tpu.vector_store %arg6[%c0_11, %c0_12], %12 {strides = array<i32>} : memref<32x512xf32, #tpu.memory_space<vmem>>, vector<32x512xf32>,
    } else {
    }
    %c0 = arith.constant 0 : index
    %c0_1 = arith.constant 0 : index
    %3 = vector.load %arg6[%c0, %c0_1] : memref<32x512xf32, #tpu.memory_space<vmem>>, vector<32x512xf32>
    %c0_2 = arith.constant 0 : index
    %c0_3 = arith.constant 0 : index
    %4 = vector.load %arg3[%c0_2, %c0_3] : memref<32x128xbf16, #tpu.memory_space<vmem>>, vector<32x128xbf16>
    %c0_4 = arith.constant 0 : index
    %c0_5 = arith.constant 0 : index
    %5 = vector.load %arg4[%c0_4, %c0_5] : memref<128x512xbf16, #tpu.memory_space<vmem>>, vector<128x512xbf16>
    %cst = arith.constant dense<0.000000e+00> : vector<32x512xf32>
    %6 = tpu.matmul %4, %5, %cst {dimension_numbers = #tpu.dot_dimension_numbers<[1], [0], [0], [1], [0, 0, 1, 1], [], []>} : vector<32x128xbf16>, vector<128x512xbf16>, vector<32x512xf32> -> vector<32x512xf32>
    %7 = arith.addf %3, %6 : vector<32x512xf32>
    %c0_6 = arith.constant 0 : index
    %c0_7 = arith.constant 0 : index
    %8 = vector.load %arg6[%c0_6, %c0_7] : memref<32x512xf32, #tpu.memory_space<vmem>>, vector<32x512xf32>
    tpu.vector_store %arg6[%c0_6, %c0_7], %7 {strides = array<i32>} : memref<32x512xf32, #tpu.memory_space<vmem>>, vector<32x512xf32>,
    %c0_i32_8 = arith.constant 0 : i32
    %9 = arith.cmpi eq, %arg2, %c0_i32_8 : i32
    %10 = arith.extui %9 : i1 to i32
    %c0_i32_9 = arith.constant 0 : i32
    %11 = arith.cmpi ne, %10, %c0_i32_9 : i32
    scf.if %11 {
      %c0_10 = arith.constant 0 : index
      %c0_11 = arith.constant 0 : index
      %12 = vector.load %arg6[%c0_10, %c0_11] : memref<32x512xf32, #tpu.memory_space<vmem>>, vector<32x512xf32>
      %c0_12 = arith.constant 0 : index
      %c0_13 = arith.constant 0 : index
      %13 = vector.load %arg5[%c0_12, %c0_13] : memref<32x512xf32, #tpu.memory_space<vmem>>, vector<32x512xf32>
      tpu.vector_store %arg5[%c0_12, %c0_13], %12 {strides = array<i32>} : memref<32x512xf32, #tpu.memory_space<vmem>>, vector<32x512xf32>,
    } else {
    }
    return
  }
  func.func @transform_0(%arg0: i32, %arg1: i32, %arg2: i32) -> (i32, i32) {
    %c0_i32 = arith.constant 0 : i32
    return %arg0, %arg2 : i32, i32
  }
  func.func @transform_1(%arg0: i32, %arg1: i32, %arg2: i32) -> (i32, i32) {
    %c0_i32 = arith.constant 0 : i32
    return %arg2, %arg1 : i32, i32
  }
  func.func @transform_2(%arg0: i32, %arg1: i32, %arg2: i32) -> (i32, i32) {
    %c0_i32 = arith.constant 0 : i32
    return %arg0, %arg1 : i32, i32
  }
}

module attributes {stable_mosaic.version = 11 : i64} {
  func.func @_bn_stats_kernel(%arg0: i32, %arg1: memref<128x64xf32, #tpu.memory_space<vmem>>, %arg2: memref<2x64xf32, #tpu.memory_space<vmem>>) attributes {dimension_semantics = [#tpu.dimension_semantics<arbitrary>], iteration_bounds = array<i64: 1>, scalar_prefetch = 0 : i64, scratch_operands = 0 : i64, tpu.core_type = #tpu.core_type<tc>, window_params = [{transform_indices = @transform_0, window_bounds = array<i64: 128, 64>}, {pipeline_mode = #tpu.pipeline_mode<synchronous>, transform_indices = @transform_1, window_bounds = array<i64: 2, 64>}]} {
    %c0_i32 = arith.constant 0 : i32
    %0 = arith.cmpi eq, %arg0, %c0_i32 : i32
    %1 = arith.extui %0 : i1 to i32
    %c0_i32_0 = arith.constant 0 : i32
    %2 = arith.cmpi ne, %1, %c0_i32_0 : i32
    scf.if %2 {
      %cst_7 = arith.constant 0.000000e+00 : f32
      %13 = vector.broadcast %cst_7 : f32 to vector<2x64xf32>
      %c0_8 = arith.constant 0 : index
      %c0_9 = arith.constant 0 : index
      %14 = vector.load %arg2[%c0_8, %c0_9] : memref<2x64xf32, #tpu.memory_space<vmem>>, vector<2x64xf32>
      tpu.vector_store %arg2[%c0_8, %c0_9], %13 {strides = array<i32>} : memref<2x64xf32, #tpu.memory_space<vmem>>, vector<2x64xf32>,
    } else {
    }
    %c0 = arith.constant 0 : index
    %c0_1 = arith.constant 0 : index
    %3 = vector.load %arg1[%c0, %c0_1] : memref<128x64xf32, #tpu.memory_space<vmem>>, vector<128x64xf32>
    %c0_2 = arith.constant 0 : index
    %c0_3 = arith.constant 0 : index
    %4 = vector.load %arg2[%c0_2, %c0_3] : memref<2x64xf32, #tpu.memory_space<vmem>>, vector<2x64xf32>
    %cst = arith.constant dense<0.000000e+00> : vector<64xf32>
    %5 = vector.multi_reduction <add>, %3, %cst [0] : vector<128x64xf32> to vector<64xf32>
    %6 = vector.shape_cast %5 : vector<64xf32> to vector<1x64xf32>
    %7 = arith.mulf %3, %3 : vector<128x64xf32>
    %cst_4 = arith.constant dense<0.000000e+00> : vector<64xf32>
    %8 = vector.multi_reduction <add>, %7, %cst_4 [0] : vector<128x64xf32> to vector<64xf32>
    %9 = vector.shape_cast %8 : vector<64xf32> to vector<1x64xf32>
    %10 = tpu.concatenate %6, %9 in 0 : vector<1x64xf32>, vector<1x64xf32> -> vector<2x64xf32>
    %11 = arith.addf %4, %10 : vector<2x64xf32>
    %c0_5 = arith.constant 0 : index
    %c0_6 = arith.constant 0 : index
    %12 = vector.load %arg2[%c0_5, %c0_6] : memref<2x64xf32, #tpu.memory_space<vmem>>, vector<2x64xf32>
    tpu.vector_store %arg2[%c0_5, %c0_6], %11 {strides = array<i32>} : memref<2x64xf32, #tpu.memory_space<vmem>>, vector<2x64xf32>,
    return
  }
  func.func @transform_0(%arg0: i32) -> (i32, i32) {
    %c0_i32 = arith.constant 0 : i32
    %c0_i32_0 = arith.constant 0 : i32
    return %arg0, %c0_i32 : i32, i32
  }
  func.func @transform_1(%arg0: i32) -> (i32, i32) {
    %c0_i32 = arith.constant 0 : i32
    %c0_i32_0 = arith.constant 0 : i32
    %c0_i32_1 = arith.constant 0 : i32
    return %c0_i32, %c0_i32_0 : i32, i32
  }
}

module attributes {stable_mosaic.version = 11 : i64} {
  func.func @_bn_apply_relu_kernel(%arg0: i32, %arg1: memref<128x64xf32, #tpu.memory_space<vmem>>, %arg2: memref<1x64xf32, #tpu.memory_space<vmem>>, %arg3: memref<1x64xf32, #tpu.memory_space<vmem>>, %arg4: memref<128x64xbf16, #tpu.memory_space<vmem>>) attributes {dimension_semantics = [#tpu.dimension_semantics<parallel>], iteration_bounds = array<i64: 1>, scalar_prefetch = 0 : i64, scratch_operands = 0 : i64, tpu.core_type = #tpu.core_type<tc>, window_params = [{transform_indices = @transform_0, window_bounds = array<i64: 128, 64>}, {pipeline_mode = #tpu.pipeline_mode<synchronous>, transform_indices = @transform_1, window_bounds = array<i64: 1, 64>}, {pipeline_mode = #tpu.pipeline_mode<synchronous>, transform_indices = @transform_2, window_bounds = array<i64: 1, 64>}, {transform_indices = @transform_3, window_bounds = array<i64: 128, 64>}]} {
    %c0 = arith.constant 0 : index
    %c0_0 = arith.constant 0 : index
    %0 = vector.load %arg1[%c0, %c0_0] : memref<128x64xf32, #tpu.memory_space<vmem>>, vector<128x64xf32>
    %c0_1 = arith.constant 0 : index
    %c0_2 = arith.constant 0 : index
    %1 = vector.load %arg2[%c0_1, %c0_2] : memref<1x64xf32, #tpu.memory_space<vmem>>, vector<1x64xf32>
    %2 = vector.broadcast %1 : vector<1x64xf32> to vector<128x64xf32>
    %3 = arith.mulf %0, %2 : vector<128x64xf32>
    %c0_3 = arith.constant 0 : index
    %c0_4 = arith.constant 0 : index
    %4 = vector.load %arg3[%c0_3, %c0_4] : memref<1x64xf32, #tpu.memory_space<vmem>>, vector<1x64xf32>
    %5 = vector.broadcast %4 : vector<1x64xf32> to vector<128x64xf32>
    %6 = arith.addf %3, %5 : vector<128x64xf32>
    %cst = arith.constant 0.000000e+00 : f32
    %7 = vector.broadcast %cst : f32 to vector<128x64xf32>
    %8 = arith.maximumf %6, %7 : vector<128x64xf32>
    %9 = arith.truncf %8 : vector<128x64xf32> to vector<128x64xbf16>
    %c0_5 = arith.constant 0 : index
    %c0_6 = arith.constant 0 : index
    %10 = vector.load %arg4[%c0_5, %c0_6] : memref<128x64xbf16, #tpu.memory_space<vmem>>, vector<128x64xbf16>
    tpu.vector_store %arg4[%c0_5, %c0_6], %9 {strides = array<i32>} : memref<128x64xbf16, #tpu.memory_space<vmem>>, vector<128x64xbf16>,
    return
  }
  func.func @transform_0(%arg0: i32) -> (i32, i32) {
    %c0_i32 = arith.constant 0 : i32
    %c0_i32_0 = arith.constant 0 : i32
    return %arg0, %c0_i32 : i32, i32
  }
  func.func @transform_1(%arg0: i32) -> (i32, i32) {
    %c0_i32 = arith.constant 0 : i32
    %c0_i32_0 = arith.constant 0 : i32
    %c0_i32_1 = arith.constant 0 : i32
    return %c0_i32, %c0_i32_0 : i32, i32
  }
  func.func @transform_2(%arg0: i32) -> (i32, i32) {
    %c0_i32 = arith.constant 0 : i32
    %c0_i32_0 = arith.constant 0 : i32
    %c0_i32_1 = arith.constant 0 : i32
    return %c0_i32, %c0_i32_0 : i32, i32
  }
  func.func @transform_3(%arg0: i32) -> (i32, i32) {
    %c0_i32 = arith.constant 0 : i32
    %c0_i32_0 = arith.constant 0 : i32
    return %arg0, %c0_i32 : i32, i32
  }
}

module attributes {stable_mosaic.version = 11 : i64} {
  func.func @_matmul_kernel(%arg0: i32, %arg1: i32, %arg2: i32, %arg3: memref<128x64xbf16, #tpu.memory_space<vmem>>, %arg4: memref<64x512xbf16, #tpu.memory_space<vmem>>, %arg5: memref<128x512xf32, #tpu.memory_space<vmem>>, %arg6: memref<128x512xf32, #tpu.memory_space<vmem>>) attributes {dimension_semantics = [#tpu.dimension_semantics<parallel>, #tpu.dimension_semantics<parallel>, #tpu.dimension_semantics<arbitrary>], iteration_bounds = array<i64: 1, 1, 1>, scalar_prefetch = 0 : i64, scratch_operands = 1 : i64, tpu.core_type = #tpu.core_type<tc>, window_params = [{transform_indices = @transform_0, window_bounds = array<i64: 128, 64>}, {transform_indices = @transform_1, window_bounds = array<i64: 64, 512>}, {transform_indices = @transform_2, window_bounds = array<i64: 128, 512>}]} {
    %c0_i32 = arith.constant 0 : i32
    %0 = arith.cmpi eq, %arg2, %c0_i32 : i32
    %1 = arith.extui %0 : i1 to i32
    %c0_i32_0 = arith.constant 0 : i32
    %2 = arith.cmpi ne, %1, %c0_i32_0 : i32
    scf.if %2 {
      %cst_10 = arith.constant 0.000000e+00 : f32
      %12 = vector.broadcast %cst_10 : f32 to vector<128x512xf32>
      %c0_11 = arith.constant 0 : index
      %c0_12 = arith.constant 0 : index
      %13 = vector.load %arg6[%c0_11, %c0_12] : memref<128x512xf32, #tpu.memory_space<vmem>>, vector<128x512xf32>
      tpu.vector_store %arg6[%c0_11, %c0_12], %12 {strides = array<i32>} : memref<128x512xf32, #tpu.memory_space<vmem>>, vector<128x512xf32>,
    } else {
    }
    %c0 = arith.constant 0 : index
    %c0_1 = arith.constant 0 : index
    %3 = vector.load %arg6[%c0, %c0_1] : memref<128x512xf32, #tpu.memory_space<vmem>>, vector<128x512xf32>
    %c0_2 = arith.constant 0 : index
    %c0_3 = arith.constant 0 : index
    %4 = vector.load %arg3[%c0_2, %c0_3] : memref<128x64xbf16, #tpu.memory_space<vmem>>, vector<128x64xbf16>
    %c0_4 = arith.constant 0 : index
    %c0_5 = arith.constant 0 : index
    %5 = vector.load %arg4[%c0_4, %c0_5] : memref<64x512xbf16, #tpu.memory_space<vmem>>, vector<64x512xbf16>
    %cst = arith.constant dense<0.000000e+00> : vector<128x512xf32>
    %6 = tpu.matmul %4, %5, %cst {dimension_numbers = #tpu.dot_dimension_numbers<[1], [0], [0], [1], [0, 0, 1, 1], [], []>} : vector<128x64xbf16>, vector<64x512xbf16>, vector<128x512xf32> -> vector<128x512xf32>
    %7 = arith.addf %3, %6 : vector<128x512xf32>
    %c0_6 = arith.constant 0 : index
    %c0_7 = arith.constant 0 : index
    %8 = vector.load %arg6[%c0_6, %c0_7] : memref<128x512xf32, #tpu.memory_space<vmem>>, vector<128x512xf32>
    tpu.vector_store %arg6[%c0_6, %c0_7], %7 {strides = array<i32>} : memref<128x512xf32, #tpu.memory_space<vmem>>, vector<128x512xf32>,
    %c0_i32_8 = arith.constant 0 : i32
    %9 = arith.cmpi eq, %arg2, %c0_i32_8 : i32
    %10 = arith.extui %9 : i1 to i32
    %c0_i32_9 = arith.constant 0 : i32
    %11 = arith.cmpi ne, %10, %c0_i32_9 : i32
    scf.if %11 {
      %c0_10 = arith.constant 0 : index
      %c0_11 = arith.constant 0 : index
      %12 = vector.load %arg6[%c0_10, %c0_11] : memref<128x512xf32, #tpu.memory_space<vmem>>, vector<128x512xf32>
      %c0_12 = arith.constant 0 : index
      %c0_13 = arith.constant 0 : index
      %13 = vector.load %arg5[%c0_12, %c0_13] : memref<128x512xf32, #tpu.memory_space<vmem>>, vector<128x512xf32>
      tpu.vector_store %arg5[%c0_12, %c0_13], %12 {strides = array<i32>} : memref<128x512xf32, #tpu.memory_space<vmem>>, vector<128x512xf32>,
    } else {
    }
    return
  }
  func.func @transform_0(%arg0: i32, %arg1: i32, %arg2: i32) -> (i32, i32) {
    %c0_i32 = arith.constant 0 : i32
    return %arg0, %arg2 : i32, i32
  }
  func.func @transform_1(%arg0: i32, %arg1: i32, %arg2: i32) -> (i32, i32) {
    %c0_i32 = arith.constant 0 : i32
    return %arg2, %arg1 : i32, i32
  }
  func.func @transform_2(%arg0: i32, %arg1: i32, %arg2: i32) -> (i32, i32) {
    %c0_i32 = arith.constant 0 : i32
    return %arg0, %arg1 : i32, i32
  }
}

module attributes {stable_mosaic.version = 11 : i64} {
  func.func @_bn_stats_kernel(%arg0: i32, %arg1: memref<512x32xf32, #tpu.memory_space<vmem>>, %arg2: memref<2x32xf32, #tpu.memory_space<vmem>>) attributes {dimension_semantics = [#tpu.dimension_semantics<arbitrary>], iteration_bounds = array<i64: 1>, scalar_prefetch = 0 : i64, scratch_operands = 0 : i64, tpu.core_type = #tpu.core_type<tc>, window_params = [{transform_indices = @transform_0, window_bounds = array<i64: 512, 32>}, {pipeline_mode = #tpu.pipeline_mode<synchronous>, transform_indices = @transform_1, window_bounds = array<i64: 2, 32>}]} {
    %c0_i32 = arith.constant 0 : i32
    %0 = arith.cmpi eq, %arg0, %c0_i32 : i32
    %1 = arith.extui %0 : i1 to i32
    %c0_i32_0 = arith.constant 0 : i32
    %2 = arith.cmpi ne, %1, %c0_i32_0 : i32
    scf.if %2 {
      %cst_7 = arith.constant 0.000000e+00 : f32
      %13 = vector.broadcast %cst_7 : f32 to vector<2x32xf32>
      %c0_8 = arith.constant 0 : index
      %c0_9 = arith.constant 0 : index
      %14 = vector.load %arg2[%c0_8, %c0_9] : memref<2x32xf32, #tpu.memory_space<vmem>>, vector<2x32xf32>
      tpu.vector_store %arg2[%c0_8, %c0_9], %13 {strides = array<i32>} : memref<2x32xf32, #tpu.memory_space<vmem>>, vector<2x32xf32>,
    } else {
    }
    %c0 = arith.constant 0 : index
    %c0_1 = arith.constant 0 : index
    %3 = vector.load %arg1[%c0, %c0_1] : memref<512x32xf32, #tpu.memory_space<vmem>>, vector<512x32xf32>
    %c0_2 = arith.constant 0 : index
    %c0_3 = arith.constant 0 : index
    %4 = vector.load %arg2[%c0_2, %c0_3] : memref<2x32xf32, #tpu.memory_space<vmem>>, vector<2x32xf32>
    %cst = arith.constant dense<0.000000e+00> : vector<32xf32>
    %5 = vector.multi_reduction <add>, %3, %cst [0] : vector<512x32xf32> to vector<32xf32>
    %6 = vector.shape_cast %5 : vector<32xf32> to vector<1x32xf32>
    %7 = arith.mulf %3, %3 : vector<512x32xf32>
    %cst_4 = arith.constant dense<0.000000e+00> : vector<32xf32>
    %8 = vector.multi_reduction <add>, %7, %cst_4 [0] : vector<512x32xf32> to vector<32xf32>
    %9 = vector.shape_cast %8 : vector<32xf32> to vector<1x32xf32>
    %10 = tpu.concatenate %6, %9 in 0 : vector<1x32xf32>, vector<1x32xf32> -> vector<2x32xf32>
    %11 = arith.addf %4, %10 : vector<2x32xf32>
    %c0_5 = arith.constant 0 : index
    %c0_6 = arith.constant 0 : index
    %12 = vector.load %arg2[%c0_5, %c0_6] : memref<2x32xf32, #tpu.memory_space<vmem>>, vector<2x32xf32>
    tpu.vector_store %arg2[%c0_5, %c0_6], %11 {strides = array<i32>} : memref<2x32xf32, #tpu.memory_space<vmem>>, vector<2x32xf32>,
    return
  }
  func.func @transform_0(%arg0: i32) -> (i32, i32) {
    %c0_i32 = arith.constant 0 : i32
    %c0_i32_0 = arith.constant 0 : i32
    return %arg0, %c0_i32 : i32, i32
  }
  func.func @transform_1(%arg0: i32) -> (i32, i32) {
    %c0_i32 = arith.constant 0 : i32
    %c0_i32_0 = arith.constant 0 : i32
    %c0_i32_1 = arith.constant 0 : i32
    return %c0_i32, %c0_i32_0 : i32, i32
  }
}

module attributes {stable_mosaic.version = 11 : i64} {
  func.func @_bn_apply_relu_kernel(%arg0: i32, %arg1: memref<512x32xf32, #tpu.memory_space<vmem>>, %arg2: memref<1x32xf32, #tpu.memory_space<vmem>>, %arg3: memref<1x32xf32, #tpu.memory_space<vmem>>, %arg4: memref<512x32xbf16, #tpu.memory_space<vmem>>) attributes {dimension_semantics = [#tpu.dimension_semantics<parallel>], iteration_bounds = array<i64: 1>, scalar_prefetch = 0 : i64, scratch_operands = 0 : i64, tpu.core_type = #tpu.core_type<tc>, window_params = [{transform_indices = @transform_0, window_bounds = array<i64: 512, 32>}, {pipeline_mode = #tpu.pipeline_mode<synchronous>, transform_indices = @transform_1, window_bounds = array<i64: 1, 32>}, {pipeline_mode = #tpu.pipeline_mode<synchronous>, transform_indices = @transform_2, window_bounds = array<i64: 1, 32>}, {transform_indices = @transform_3, window_bounds = array<i64: 512, 32>}]} {
    %c0 = arith.constant 0 : index
    %c0_0 = arith.constant 0 : index
    %0 = vector.load %arg1[%c0, %c0_0] : memref<512x32xf32, #tpu.memory_space<vmem>>, vector<512x32xf32>
    %c0_1 = arith.constant 0 : index
    %c0_2 = arith.constant 0 : index
    %1 = vector.load %arg2[%c0_1, %c0_2] : memref<1x32xf32, #tpu.memory_space<vmem>>, vector<1x32xf32>
    %2 = vector.broadcast %1 : vector<1x32xf32> to vector<512x32xf32>
    %3 = arith.mulf %0, %2 : vector<512x32xf32>
    %c0_3 = arith.constant 0 : index
    %c0_4 = arith.constant 0 : index
    %4 = vector.load %arg3[%c0_3, %c0_4] : memref<1x32xf32, #tpu.memory_space<vmem>>, vector<1x32xf32>
    %5 = vector.broadcast %4 : vector<1x32xf32> to vector<512x32xf32>
    %6 = arith.addf %3, %5 : vector<512x32xf32>
    %cst = arith.constant 0.000000e+00 : f32
    %7 = vector.broadcast %cst : f32 to vector<512x32xf32>
    %8 = arith.maximumf %6, %7 : vector<512x32xf32>
    %9 = arith.truncf %8 : vector<512x32xf32> to vector<512x32xbf16>
    %c0_5 = arith.constant 0 : index
    %c0_6 = arith.constant 0 : index
    %10 = vector.load %arg4[%c0_5, %c0_6] : memref<512x32xbf16, #tpu.memory_space<vmem>>, vector<512x32xbf16>
    tpu.vector_store %arg4[%c0_5, %c0_6], %9 {strides = array<i32>} : memref<512x32xbf16, #tpu.memory_space<vmem>>, vector<512x32xbf16>,
    return
  }
  func.func @transform_0(%arg0: i32) -> (i32, i32) {
    %c0_i32 = arith.constant 0 : i32
    %c0_i32_0 = arith.constant 0 : i32
    return %arg0, %c0_i32 : i32, i32
  }
  func.func @transform_1(%arg0: i32) -> (i32, i32) {
    %c0_i32 = arith.constant 0 : i32
    %c0_i32_0 = arith.constant 0 : i32
    %c0_i32_1 = arith.constant 0 : i32
    return %c0_i32, %c0_i32_0 : i32, i32
  }
  func.func @transform_2(%arg0: i32) -> (i32, i32) {
    %c0_i32 = arith.constant 0 : i32
    %c0_i32_0 = arith.constant 0 : i32
    %c0_i32_1 = arith.constant 0 : i32
    return %c0_i32, %c0_i32_0 : i32, i32
  }
  func.func @transform_3(%arg0: i32) -> (i32, i32) {
    %c0_i32 = arith.constant 0 : i32
    %c0_i32_0 = arith.constant 0 : i32
    return %arg0, %c0_i32 : i32, i32
  }
}

module attributes {stable_mosaic.version = 11 : i64} {
  func.func @_matmul_kernel(%arg0: i32, %arg1: i32, %arg2: i32, %arg3: memref<256x32xbf16, #tpu.memory_space<vmem>>, %arg4: memref<32x16xbf16, #tpu.memory_space<vmem>>, %arg5: memref<256x16xf32, #tpu.memory_space<vmem>>, %arg6: memref<256x16xf32, #tpu.memory_space<vmem>>) attributes {dimension_semantics = [#tpu.dimension_semantics<parallel>, #tpu.dimension_semantics<parallel>, #tpu.dimension_semantics<arbitrary>], iteration_bounds = array<i64: 2, 1, 1>, scalar_prefetch = 0 : i64, scratch_operands = 1 : i64, tpu.core_type = #tpu.core_type<tc>, window_params = [{transform_indices = @transform_0, window_bounds = array<i64: 256, 32>}, {transform_indices = @transform_1, window_bounds = array<i64: 32, 16>}, {transform_indices = @transform_2, window_bounds = array<i64: 256, 16>}]} {
    %c0_i32 = arith.constant 0 : i32
    %0 = arith.cmpi eq, %arg2, %c0_i32 : i32
    %1 = arith.extui %0 : i1 to i32
    %c0_i32_0 = arith.constant 0 : i32
    %2 = arith.cmpi ne, %1, %c0_i32_0 : i32
    scf.if %2 {
      %cst_10 = arith.constant 0.000000e+00 : f32
      %12 = vector.broadcast %cst_10 : f32 to vector<256x16xf32>
      %c0_11 = arith.constant 0 : index
      %c0_12 = arith.constant 0 : index
      %13 = vector.load %arg6[%c0_11, %c0_12] : memref<256x16xf32, #tpu.memory_space<vmem>>, vector<256x16xf32>
      tpu.vector_store %arg6[%c0_11, %c0_12], %12 {strides = array<i32>} : memref<256x16xf32, #tpu.memory_space<vmem>>, vector<256x16xf32>,
    } else {
    }
    %c0 = arith.constant 0 : index
    %c0_1 = arith.constant 0 : index
    %3 = vector.load %arg6[%c0, %c0_1] : memref<256x16xf32, #tpu.memory_space<vmem>>, vector<256x16xf32>
    %c0_2 = arith.constant 0 : index
    %c0_3 = arith.constant 0 : index
    %4 = vector.load %arg3[%c0_2, %c0_3] : memref<256x32xbf16, #tpu.memory_space<vmem>>, vector<256x32xbf16>
    %c0_4 = arith.constant 0 : index
    %c0_5 = arith.constant 0 : index
    %5 = vector.load %arg4[%c0_4, %c0_5] : memref<32x16xbf16, #tpu.memory_space<vmem>>, vector<32x16xbf16>
    %cst = arith.constant dense<0.000000e+00> : vector<256x16xf32>
    %6 = tpu.matmul %4, %5, %cst {dimension_numbers = #tpu.dot_dimension_numbers<[1], [0], [0], [1], [0, 0, 1, 1], [], []>} : vector<256x32xbf16>, vector<32x16xbf16>, vector<256x16xf32> -> vector<256x16xf32>
    %7 = arith.addf %3, %6 : vector<256x16xf32>
    %c0_6 = arith.constant 0 : index
    %c0_7 = arith.constant 0 : index
    %8 = vector.load %arg6[%c0_6, %c0_7] : memref<256x16xf32, #tpu.memory_space<vmem>>, vector<256x16xf32>
    tpu.vector_store %arg6[%c0_6, %c0_7], %7 {strides = array<i32>} : memref<256x16xf32, #tpu.memory_space<vmem>>, vector<256x16xf32>,
    %c0_i32_8 = arith.constant 0 : i32
    %9 = arith.cmpi eq, %arg2, %c0_i32_8 : i32
    %10 = arith.extui %9 : i1 to i32
    %c0_i32_9 = arith.constant 0 : i32
    %11 = arith.cmpi ne, %10, %c0_i32_9 : i32
    scf.if %11 {
      %c0_10 = arith.constant 0 : index
      %c0_11 = arith.constant 0 : index
      %12 = vector.load %arg6[%c0_10, %c0_11] : memref<256x16xf32, #tpu.memory_space<vmem>>, vector<256x16xf32>
      %c0_12 = arith.constant 0 : index
      %c0_13 = arith.constant 0 : index
      %13 = vector.load %arg5[%c0_12, %c0_13] : memref<256x16xf32, #tpu.memory_space<vmem>>, vector<256x16xf32>
      tpu.vector_store %arg5[%c0_12, %c0_13], %12 {strides = array<i32>} : memref<256x16xf32, #tpu.memory_space<vmem>>, vector<256x16xf32>,
    } else {
    }
    return
  }
  func.func @transform_0(%arg0: i32, %arg1: i32, %arg2: i32) -> (i32, i32) {
    %c0_i32 = arith.constant 0 : i32
    return %arg0, %arg2 : i32, i32
  }
  func.func @transform_1(%arg0: i32, %arg1: i32, %arg2: i32) -> (i32, i32) {
    %c0_i32 = arith.constant 0 : i32
    return %arg2, %arg1 : i32, i32
  }
  func.func @transform_2(%arg0: i32, %arg1: i32, %arg2: i32) -> (i32, i32) {
    %c0_i32 = arith.constant 0 : i32
    return %arg0, %arg1 : i32, i32
  }
}

module attributes {stable_mosaic.version = 11 : i64} {
  func.func @_bias_tanh_kernel(%arg0: i32, %arg1: memref<16x128xf32, #tpu.memory_space<vmem>>, %arg2: memref<1x128xf32, #tpu.memory_space<vmem>>, %arg3: memref<16x128xf32, #tpu.memory_space<vmem>>) attributes {dimension_semantics = [#tpu.dimension_semantics<parallel>], iteration_bounds = array<i64: 1>, scalar_prefetch = 0 : i64, scratch_operands = 0 : i64, tpu.core_type = #tpu.core_type<tc>, window_params = [{transform_indices = @transform_0, window_bounds = array<i64: 16, 128>}, {pipeline_mode = #tpu.pipeline_mode<synchronous>, transform_indices = @transform_1, window_bounds = array<i64: 1, 128>}, {transform_indices = @transform_2, window_bounds = array<i64: 16, 128>}]} {
    %c0 = arith.constant 0 : index
    %c0_0 = arith.constant 0 : index
    %0 = vector.load %arg1[%c0, %c0_0] : memref<16x128xf32, #tpu.memory_space<vmem>>, vector<16x128xf32>
    %c0_1 = arith.constant 0 : index
    %c0_2 = arith.constant 0 : index
    %1 = vector.load %arg2[%c0_1, %c0_2] : memref<1x128xf32, #tpu.memory_space<vmem>>, vector<1x128xf32>
    %2 = vector.broadcast %1 : vector<1x128xf32> to vector<16x128xf32>
    %3 = arith.addf %0, %2 : vector<16x128xf32>
    %4 = math.tanh %3 : vector<16x128xf32>
    %c0_3 = arith.constant 0 : index
    %c0_4 = arith.constant 0 : index
    %5 = vector.load %arg3[%c0_3, %c0_4] : memref<16x128xf32, #tpu.memory_space<vmem>>, vector<16x128xf32>
    tpu.vector_store %arg3[%c0_3, %c0_4], %4 {strides = array<i32>} : memref<16x128xf32, #tpu.memory_space<vmem>>, vector<16x128xf32>,
    return
  }
  func.func @transform_0(%arg0: i32) -> (i32, i32) {
    %c0_i32 = arith.constant 0 : i32
    %c0_i32_0 = arith.constant 0 : i32
    return %arg0, %c0_i32 : i32, i32
  }
  func.func @transform_1(%arg0: i32) -> (i32, i32) {
    %c0_i32 = arith.constant 0 : i32
    %c0_i32_0 = arith.constant 0 : i32
    %c0_i32_1 = arith.constant 0 : i32
    return %c0_i32, %c0_i32_0 : i32, i32
  }
  func.func @transform_2(%arg0: i32) -> (i32, i32) {
    %c0_i32 = arith.constant 0 : i32
    %c0_i32_0 = arith.constant 0 : i32
    return %arg0, %c0_i32 : i32, i32
  }
}

</mosaic_0001>

<bundles_post_ra>
// kernel: dccgan_generator_forward.14
= control target key start
LH: loop header
LB: loop body
LE: loop exit
PB: predicated region body
PF: predicated region fallthrough
CT: control target
= control target key end

     0   :  { %s613_s9 = smov 0   ;;  %s615_s10 = smov 0   ;;  %s681_s0 = inlined_call_operand.vmem [shape: bf16[2,16], index: 0, kind: input, shape index: {}]   ;;  %s682_s1 = inlined_call_operand.vmem [shape: bf16[16,1024], index: 1, kind: input, shape index: {}]   ;;  %s683_s2 = inlined_call_operand.vmem [shape: f32[2,1024], index: 2, kind: output, shape index: {}]  }
   0x1   :  { %s617_s11 = smov 0   ;;  %s619_s12 = smov 0  }
   0x2   :  { %s621_s13 = smov 0  }
   0x3 LB: > { %s27_s14 = sadd.s32 1, %s590_s12  ;;  %p75_p1 = scmp.ne.s32.totalorder %s582_s10, %s578_s9  ;;  %s594_s13 = sphi %s621_s13, %s12_s13   ;;  %s590_s12 = sphi %s619_s12, %s687_s12   ;;  %s586_s11 = sphi %s617_s11, %s686_s11   ;;  %s582_s10 = sphi %s615_s10, %s685_s10   ;;  %s578_s9 = sphi %s613_s9, %s684_s9  }
   0x4   : > { %p29_p0 = scmp.ge.s32.totalorder %s27_s14, 2  ;;  %p76_p2 = scmp.eq.s32.totalorder %s594_s13, 0 }
   0x5   : > { %s68_s16 = sadd.s32 1, %s582_s10  ;;  %p491_p5 = scmp.ge.s32.totalorder %s594_s13, 2 }
   0x6   : > { %s689_s14 = smov (%p29_p0, %s27_s14), 0  ;;  %p77_p3 = por %p76_p2, %p75_p1 }
   0x7   : > { %s64_s15 = ssub.s32 %s590_s12, %s689_s14  ;;  %138 = sbr.rel (%p491_p5) target bundleno = 21 (0x15), region = 20 }
   0x8   : > { %p66_p4 = scmp.eq.s32.totalorder %s64_s15, 0 }
   0xa   : > { %s648_s17 = scalar_select %p66_p4, %s582_s10, %s68_s16  }
   0xe   : > { %141 = sbr.rel (!%p77_p3) target bundleno = 21 (0x15), region = 24  ;;  %s143_s18 = sand.u32 (%p77_p3), 1, %s582_s10  }
   0xf   : > { %s507_s19 = sshll.u32 (%p77_p3), %s590_s12, 4  ;;  %s492_s20 = sshll.u32 (%p77_p3), %s143_s18, 5 }
  0x10   : > { %s151_s23 = scalar_lea.vmem (%p77_p3), %s682_s1, %s507_s19  ;;  %s145_s24 = scalar_lea.vmem (%p77_p3), [#allocation3], %s492_s20 }
  0x11   : > { %v164_v0 = vld [vmem:[%s151_s23] sm:$0xff] (%p77_p3)  ;;  %v166_v1 = vld [vmem:[%s151_s23 + $0x8] sm:$0xff] (%p77_p3) }
  0x12   : > { %v168_v2 = vld [vmem:[%s151_s23 + $0x20] sm:$0xff] (%p77_p3)  ;;  %165 = vst [vmem:[%s145_s24] sm:$0xff] (%p77_p3), %v164_v0  ;;  %167 = vst [vmem:[%s145_s24 + $0x8] sm:$0xff] (%p77_p3), %v166_v1  ;;  %v170_v3 = vld [vmem:[%s151_s23 + $0x28] sm:$0xff] (%p77_p3) }
  0x13   : > { %169 = vst [vmem:[%s145_s24 + $0x10] sm:$0xff] (%p77_p3), %v168_v2  ;;  %171 = vst [vmem:[%s145_s24 + $0x18] sm:$0xff] (%p77_p3), %v170_v3 }
  0x15 PF: > { %p495_p6 = scmp.ge.s32.totalorder %s594_s13, 1  ;;  %p176_p7 = scmp.lt.s32.totalorder %s594_s13, 3 }
  0x17   : > { %p177_p8 = pnand %p495_p6, %p176_p7 }
  0x18   : > { %s183_s25 = sand.u32 (!%p177_p8), 1, %s578_s9   ;;  %v596_v4 = vmov (!%p177_p8), 0   ;;  %v239_v9 = vld [vmem:[%s681_s0] sm:$0x1] (!%p177_p8)  ;;  %vm264_vm0 = vcmask (!%p177_p8), 130048   ;;  %s497_s30 = sshll.u32 (!%p177_p8), %s586_s11, 2  ;;  %v359_v12 = vlaneseq (!%p177_p8) }
  0x19   : > { %180 = sbr.rel (%p177_p8) target bundleno = 252 (0xfc), region = 47  ;;  %s496_s26 = sshll.u32 (!%p177_p8), %s183_s25, 5  ;;  %300 = vmatprep.mubr.bf16.mxu0 (!%p177_p8), %v596_v4  ;;  %341 = vmatprep.mubr.bf16.mxu1 (!%p177_p8), %v596_v4  ;;  %v597_v10 = vmov (!%p177_p8), 1983009808  }
  0x1a   : > { %s185_s27 = scalar_lea.vmem (!%p177_p8), [#allocation3], %s496_s26  ;;  %v357_v11 = vunpack.c.l.s4 (!%p177_p8), %v597_v10  ;;  %p225_p9 = scmp.lt.s32.totalorder (!%p177_p8), %s497_s30, 7  ;;  %v360_v14 = vshrl.u32 (!%p177_p8), %v359_v12, 7 }
  0x1b   : > { %v550_v5 = vld [vmem:[%s185_s27 + $0x4] ss:$16 sps:$4 sm:$0xff] (!%p177_p8)   ;;  %v552_v6 = vld [vmem:[%s185_s27 + $0xc] ss:$16 sps:$4 sm:$0xff] (!%p177_p8)   ;;  %v554_v7 = vld [vmem:[%s185_s27] ss:$16 sps:$4 sm:$0xff] (!%p177_p8)  }
  0x1c   : > { %268 = vmatprep.subr.bf16.mxu0 (!%p177_p8), %v550_v5  ;;  %v555_v8 = vld [vmem:[%s185_s27 + $0x8] ss:$16 sps:$4 sm:$0xff] (!%p177_p8)   ;;  %309 = vmatprep.subr.bf16.mxu1 (!%p177_p8), %v552_v6  ;;  %v358_v13 = vunpack.c.0.s8 (!%p177_p8), %v357_v11 }
  0x1d   : > { %269 = vmatpush1.bf16.msra.mxu0 (!%p177_p8), %v554_v7  ;;  %310 = vmatpush1.bf16.msra.mxu1 (!%p177_p8), %v555_v8 }
  0x1e   : > { %v361_v17 = vsub.s32 (!%p177_p8), %v358_v13, %v360_v14 }
  0x20   : > { %503 = vmatmul.mubr.msk.bf16.vlgmr.msra.gmra.mrb[0].mxu0 %vm264_vm0, %v239_v9  ;;  %504 = vmatmul.mubr.msk.bf16.vlgmr.msra.gmra.mrb[0].mxu1 %vm264_vm0, %v239_v9  ;;  %s691_s30 = smov (!%p225_p9, %s497_s30), 7 }
  0x21   : > { %s498_s3 = sshll.u32 %s691_s30, 1 }
  0x22   : > { %s230_s6 = scalar_lea.vmem %s683_s2, %s498_s3 }
  0xf3   : > { %v302_v15 = vpop.f32.mrb[0].mxu0  ;;  %v343_v16 = vpop.f32.mrb[0].mxu1 }
  0xf4   : > { %v304_v18 = vpop.f32.mrb[1].mxu0  ;;  %v345_v19 = vpop.f32.mrb[1].mxu1 }
  0xf5   : > { %v354_v20 = vcombine.low %v302_v15, %v304_v18  ;;  %v355_v21 = vcombine.low %v343_v16, %v345_v19  ;;  %v306_v22 = vpop.f32.mrb[2].mxu0  ;;  %v347_v23 = vpop.f32.mrb[2].mxu1 }
  0xf6   : > { %v307_v24 = vpop.f32.mrb[3].mxu0  ;;  %v348_v25 = vpop.f32.mrb[3].mxu1 }
  0xf7   : > { %v362_v26 = vrot.slane %v354_v20, %v361_v17  ;;  %v369_v27 = vrot.slane %v355_v21, %v361_v17 }
  0xf9   : > { %v370_v28 = vcombine.low %v362_v26, %v369_v27 }
  0xfb   : > { %378 = vst [vmem:[%s230_s6] sm:$0xff] %v370_v28 }
  0xfc PF: > { %s12_s13 = sadd.s32 1, %s594_s13   ;;  %s684_s9 = smov %s582_s10 }
  0xfd   : > { %p9_p10 = scmp.ge.s32.totalorder %s12_s13, 4   ;;  %s685_s10 = smov %s648_s17 }
  0xfe   : > { %s686_s11 = smov %s590_s12  ;;  %s687_s12 = smov %s689_s14 }
  0xff   :  { %11 = sbr.rel (!%p9_p10) target bundleno = 3 (0x3), region = 97 }

// kernel: dccgan_generator_forward.17
= control target key start
LH: loop header
LB: loop body
LE: loop exit
PB: predicated region body
PF: predicated region fallthrough
CT: control target
= control target key end

     0   :  { %s559_s9 = smov 0   ;;  %s561_s10 = smov 0   ;;  %s602_s0 = inlined_call_operand.vmem [shape: bf16[2,4], index: 0, kind: input, shape index: {}]   ;;  %s603_s1 = inlined_call_operand.vmem [shape: bf16[4,1024], index: 1, kind: input, shape index: {}]   ;;  %s604_s2 = inlined_call_operand.vmem [shape: f32[2,1024], index: 2, kind: output, shape index: {}]  }
   0x1   :  { %s563_s11 = smov 0  }
   0x2 LB: > { %s27_s12 = sadd.s32 1, %s536_s10  ;;  %p480_p0 = scmp.ge.s32.totalorder %s540_s11, 1  ;;  %s540_s11 = sphi %s563_s11, %s12_s11   ;;  %s536_s10 = sphi %s561_s10, %s606_s10   ;;  %s532_s9 = sphi %s559_s9, %s605_s9  }
   0x3   : > { %p29_p1 = scmp.ge.s32.totalorder %s27_s12, 2  ;;  %p153_p2 = scmp.lt.s32.totalorder %s540_s11, 3 }
   0x5   : > { %s608_s12 = smov (%p29_p1, %s27_s12), 0  ;;  %p154_p3 = pnand %p480_p0, %p153_p2 }
   0x6   : > { %s481_s13 = sshll.u32 (!%p154_p3), %s532_s9, 2  ;;  %v229_v0 = vlaneseq (!%p154_p3)  ;;  %v542_v1 = vmov (!%p154_p3), 1983009808   ;;  %v543_v3 = vmov (!%p154_p3), 0   ;;  %vm246_vm0 = vcmask (!%p154_p3), 1041408  }
   0x7   : > { %157 = sbr.rel (%p154_p3) target bundleno = 248 (0xf8), region = 28  ;;  %p198_p4 = scmp.lt.s32.totalorder (!%p154_p3), %s481_s13, 7  ;;  %v227_v2 = vunpack.c.l.s4 (!%p154_p3), %v542_v1  ;;  %291 = vmatprep.mubr.bf16.mxu0 (!%p154_p3), %v543_v3  ;;  %332 = vmatprep.mubr.bf16.mxu1 (!%p154_p3), %v543_v3  ;;  %v222_v15 = vld [vmem:[%s602_s0] sm:$0x1] (!%p154_p3)  ;;  %vm242_vm1 = vcmask (!%p154_p3), 31744  }
   0x8   : > { %v230_v4 = vshrl.u32 (!%p154_p3), %v229_v0, 7 }
   0x9   : > { %v228_v5 = vunpack.c.0.s8 (!%p154_p3), %v227_v2 }
   0xb   : > { %v231_v6 = vsub.s32 (!%p154_p3), %v228_v5, %v230_v4 }
   0xe   : > { %s610_s13 = smov (!%p198_p4, %s481_s13), 7 }
   0xf   : > { %s482_s14 = sshll.u32 %s610_s13, 1 }
  0x10   : > { %s203_s17 = scalar_lea.vmem %s603_s1, %s482_s14  ;;  %s213_s22 = scalar_lea.vmem %s604_s2, %s482_s14 }
  0x11   : > { %v223_v7 = vld [vmem:[%s203_s17] sm:$0xff] }
  0x12   : > { %v232_v8 = vrot.slane %v223_v7, %v231_v6  ;;  %v225_v9 = vcombine.high %v223_v7, %v223_v7 }
  0x14   : > { %v240_v10 = vcombine.high %v232_v8, %v232_v8  ;;  %v248_v11 = vsel %vm246_vm0, %v232_v8, 0  ;;  %v239_v12 = vrot.slane %v225_v9, %v231_v6 }
  0x16   : > { %485 = vmatprep.subr.msk.bf16.mxu0 %vm246_vm0, %v240_v10  ;;  %v241_v13 = vcombine.high %v239_v12, %v239_v12  ;;  %v254_v14 = vsel %vm246_vm0, %v239_v12, 0 }
  0x17   : > { %260 = vmatpush1.bf16.msra.mxu0 %v248_v11 }
  0x18   : > { %487 = vmatprep.subr.msk.bf16.mxu1 %vm246_vm0, %v241_v13 }
  0x19   : > { %301 = vmatpush1.bf16.msra.mxu1 %v254_v14 }
  0x1a   : > { %486 = vmatmul.mubr.msk.bf16.vlgmr.msra.gmra.mrb[0].mxu0 %vm242_vm1, %v222_v15 }
  0x1c   : > { %488 = vmatmul.mubr.msk.bf16.vlgmr.msra.gmra.mrb[0].mxu1 %vm242_vm1, %v222_v15 }
  0xed   : > { %v293_v16 = vpop.f32.mrb[0].mxu0 }
  0xee   : > { %v295_v17 = vpop.f32.mrb[1].mxu0 }
  0xef   : > { %v345_v18 = vcombine.low %v293_v16, %v295_v17  ;;  %v297_v19 = vpop.f32.mrb[2].mxu0  ;;  %v334_v20 = vpop.f32.mrb[0].mxu1 }
  0xf0   : > { %v298_v21 = vpop.f32.mrb[3].mxu0  ;;  %v336_v22 = vpop.f32.mrb[1].mxu1 }
  0xf1   : > { %v353_v23 = vrot.slane %v345_v18, %v231_v6  ;;  %v346_v24 = vcombine.low %v334_v20, %v336_v22  ;;  %v338_v25 = vpop.f32.mrb[2].mxu1 }
  0xf2   : > { %v339_v26 = vpop.f32.mrb[3].mxu1 }
  0xf3   : > { %v360_v27 = vrot.slane %v346_v24, %v231_v6 }
  0xf5   : > { %v361_v28 = vcombine.low %v353_v23, %v360_v27 }
  0xf7   : > { %369 = vst [vmem:[%s213_s22] sm:$0xff] %v361_v28 }
  0xf8 PF: > { %s12_s11 = sadd.s32 1, %s540_s11   ;;  %s605_s9 = smov %s536_s10 }
  0xf9   : > { %p9_p5 = scmp.ge.s32.totalorder %s12_s11, 4   ;;  %s606_s10 = smov %s608_s12 }
  0xfb   :  { %11 = sbr.rel (!%p9_p5) target bundleno = 2 (0x2), region = 69 }

// kernel: dccgan_generator_forward.15
= control target key start
LH: loop header
LB: loop body
LE: loop exit
PB: predicated region body
PF: predicated region fallthrough
CT: control target
= control target key end

     0   :  { %vm12_vm0 = vcmask 517120   ;;  %vm19_vm1 = vcmask 523264   ;;  %v60_v0 = vmov 0.0   ;;  %vm50_vm2 = vcmask 1040384   ;;  %s102_s0 = inlined_call_operand.vmem [shape: f32[32,64], index: 0, kind: input, shape index: {}]   ;;  %s103_s1 = inlined_call_operand.vmem [shape: f32[2,64], index: 1, kind: output, shape index: {}]  }
   0x1   :  { %13 = vst.msk [vmem:[%s103_s1] sm:$0x3] %vm12_vm0, %v60_v0  ;;  %v14_v1 = vld [vmem:[%s102_s0] sm:$0xff]  ;;  %v15_v2 = vld [vmem:[%s102_s0 + $0x8] sm:$0xff]  ;;  %v16_v3 = vld [vmem:[%s102_s0 + $0x10] sm:$0xff] }
   0x2   :  { %v17_v4 = vld [vmem:[%s102_s0 + $0x18] sm:$0xff]  ;;  %v20_v5 = vsel %vm19_vm1, %v14_v1, 0.0  ;;  %v21_v6 = vsel %vm19_vm1, %v15_v2, 0.0  ;;  %v23_v7 = vsel %vm19_vm1, %v16_v3, 0.0  ;;  %v33_v8 = vmul.f32 %v14_v1, %v14_v1 }
   0x3   :  { %v22_v9 = vadd.f32 %v21_v6, %v20_v5  ;;  %v34_v10 = vmul.f32 %v15_v2, %v15_v2  ;;  %v35_v11 = vmul.f32 %v16_v3, %v16_v3  ;;  %v25_v12 = vsel %vm19_vm1, %v17_v4, 0.0 }
   0x4   :  { %v36_v13 = vmul.f32 %v17_v4, %v17_v4  ;;  %v37_v14 = vsel %vm19_vm1, %v33_v8, 0.0 }
   0x5   :  { %v24_v15 = vadd.f32 %v23_v7, %v22_v9  ;;  %v38_v16 = vsel %vm19_vm1, %v34_v10, 0.0  ;;  %v40_v17 = vsel %vm19_vm1, %v35_v11, 0.0 }
   0x6   :  { %v39_v18 = vadd.f32 %v38_v16, %v37_v14  ;;  %v42_v20 = vsel %vm19_vm1, %v36_v13, 0.0 }
   0x7   :  { %v26_v19 = vadd.f32 %v25_v12, %v24_v15 }
   0x8   :  { %v41_v21 = vadd.f32 %v40_v17, %v39_v18  ;;  %v18_v34 = vld [vmem:[%s103_s1] sm:$0x3] }
   0x9   :  { %v27_v22 = vrot.slane %v26_v19, 4 }
   0xa   :  { %v43_v23 = vadd.f32 %v42_v20, %v41_v21 }
   0xb   :  { %v28_v24 = vadd.f32 %v27_v22, %v26_v19 }
   0xc   :  { %v44_v25 = vrot.slane %v43_v23, 4 }
   0xd   :  { %v29_v26 = vrot.slane %v28_v24, 2 }
   0xe   :  { %v45_v27 = vadd.f32 %v44_v25, %v43_v23 }
   0xf   :  { %v30_v28 = vadd.f32 %v29_v26, %v28_v24 }
  0x10   :  { %v46_v29 = vrot.slane %v45_v27, 2 }
  0x11   :  { %v31_v30 = vrot.slane %v30_v28, 1 }
  0x12   :  { %v47_v31 = vadd.f32 %v46_v29, %v45_v27 }
  0x13   :  { %v32_v32 = vadd.f32 %v31_v30, %v30_v28 }
  0x14   :  { %v48_v33 = vrot.slane %v47_v31, 1 }
  0x16   :  { %v49_v35 = vadd.f32 %v48_v33, %v47_v31 }
  0x18   :  { %v51_v36 = vsel %vm50_vm2, %v32_v32, %v49_v35 }
  0x19   :  { %v52_v37 = vadd.f32 %v51_v36, %v18_v34 }
  0x1b   :  { %54 = vst.msk [vmem:[%s103_s1] sm:$0x3] %vm12_vm0, %v52_v37 }

// kernel: dccgan_generator_forward.16
= control target key start
LH: loop header
LB: loop body
LE: loop exit
PB: predicated region body
PF: predicated region fallthrough
CT: control target
= control target key end

     0   :  { %vm60_vm0 = vcmask 519168   ;;  %s129_s0 = inlined_call_operand.vmem [shape: f32[32,64], index: 0, kind: input, shape index: {}]   ;;  %s130_s1 = inlined_call_operand.vmem [shape: f32[1,64], index: 1, kind: input, shape index: {}]   ;;  %s131_s2 = inlined_call_operand.vmem [shape: f32[1,64], index: 2, kind: input, shape index: {}]   ;;  %s132_s3 = inlined_call_operand.vmem [shape: bf16[32,64], index: 3, kind: output, shape index: {}]  }
   0x1   :  { %v14_v0 = vld [vmem:[%s129_s0] sm:$0xff]  ;;  %v15_v4 = vld [vmem:[%s129_s0 + $0x8] sm:$0xff]  ;;  %v16_v5 = vld [vmem:[%s129_s0 + $0x10] sm:$0xff] }
   0x2   :  { %v69_v1 = vld [vmem:[%s130_s1] ss:$0 sm:$0xff]  ;;  %v17_v6 = vld [vmem:[%s129_s0 + $0x18] sm:$0xff] }
   0x3   :  { %v70_v2 = vld [vmem:[%s131_s2] ss:$0 sm:$0xff]  ;;  %v25_v3 = vmul.f32 %v69_v1, %v14_v0  ;;  %v26_v7 = vmul.f32 %v69_v1, %v15_v4  ;;  %v27_v8 = vmul.f32 %v69_v1, %v16_v5  ;;  %v28_v9 = vmul.f32 %v69_v1, %v17_v6 }
   0x5   :  { %v36_v10 = vadd.f32 %v70_v2, %v25_v3  ;;  %v37_v11 = vadd.f32 %v70_v2, %v26_v7  ;;  %v38_v12 = vadd.f32 %v70_v2, %v27_v8  ;;  %v39_v13 = vadd.f32 %v70_v2, %v28_v9 }
   0x7   :  { %v40_v14 = vmax.f32 %v36_v10, 0.0  ;;  %v41_v15 = vmax.f32 %v37_v11, 0.0  ;;  %v42_v16 = vmax.f32 %v38_v12, 0.0  ;;  %v43_v17 = vmax.f32 %v39_v13, 0.0 }
   0x9   :  { %v75_v18 = vpack.c.bf16 %v40_v14, %v40_v14  ;;  %v76_v19 = vpack.c.bf16 %v41_v15, %v41_v15  ;;  %v77_v20 = vpack.c.bf16 %v42_v16, %v42_v16  ;;  %v78_v21 = vpack.c.bf16 %v43_v17, %v43_v17 }
   0xb   :  { %61 = vst.msk [vmem:[%s132_s3] sm:$0xf] %vm60_vm0, %v75_v18  ;;  %62 = vst.msk [vmem:[%s132_s3 + $0x4] sm:$0xf] %vm60_vm0, %v76_v19 }
   0xc   :  { %63 = vst.msk [vmem:[%s132_s3 + $0x8] sm:$0xf] %vm60_vm0, %v77_v20  ;;  %64 = vst.msk [vmem:[%s132_s3 + $0xc] sm:$0xf] %vm60_vm0, %v78_v21 }

// kernel: dccgan_generator_forward.20
= control target key start
LH: loop header
LB: loop body
LE: loop exit
PB: predicated region body
PF: predicated region fallthrough
CT: control target
= control target key end

     0   :  { %s1052_s9 = smov 0   ;;  %s1054_s10 = smov 0   ;;  %s1274_s0 = inlined_call_operand.vmem [shape: bf16[32,128], index: 0, kind: input, shape index: {}]   ;;  %s1275_s1 = inlined_call_operand.vmem [shape: bf16[128,1024], index: 1, kind: input, shape index: {}]   ;;  %s1276_s2 = inlined_call_operand.vmem [shape: f32[32,1024], index: 2, kind: output, shape index: {}]  }
   0x1   :  { %s1056_s11 = smov 0   ;;  %s1058_s12 = smov 0  }
   0x2   :  { %s1060_s13 = smov 0  }
   0x3 LB: > { %s27_s14 = sadd.s32 1, %s1030_s12  ;;  %s853_s15 = sadd.s32 4294967295, %s1034_s13   ;;  %s1034_s13 = sphi %s1060_s13, %s12_s13   ;;  %s1030_s12 = sphi %s1058_s12, %s1281_s12   ;;  %s1026_s11 = sphi %s1056_s11, %s1280_s11   ;;  %s1022_s10 = sphi %s1054_s10, %s1279_s10   ;;  %s1018_s9 = sphi %s1052_s9, %s1278_s9  }
   0x4   : > { %p29_p0 = scmp.ge.s32.totalorder %s27_s14, 2  ;;  %p75_p1 = scmp.ne.s32.totalorder %s1022_s10, %s1018_s9 }
   0x5   : > { %p76_p2 = scmp.eq.s32.totalorder %s1034_s13, 0  ;;  %p107_p4 = scmp.eq.s32.totalorder %s853_s15, 1 }
   0x6   : > { %s1283_s14 = smov (%p29_p0, %s27_s14), 0  ;;  %s68_s17 = sadd.s32 1, %s1022_s10 }
   0x7   : > { %p77_p3 = por %p76_p2, %p75_p1  ;;  %s64_s16 = ssub.s32 %s1030_s12, %s1283_s14 }
   0x8   : > { %p66_p5 = scmp.eq.s32.totalorder %s64_s16, 0  ;;  %p1087_p6 = por %p107_p4, %p75_p1 }
   0x9   : > { %p857_p7 = scmp.ge.s32.totalorder %s1034_s13, 2 }
   0xa   : > { %s1092_s19 = scalar_select %p66_p5, %s1022_s10, %s68_s17  }
   0xb   : > { %141 = sbr.rel (%p857_p7) target bundleno = 38 (0x26), region = 20 }
  0x12   : > { %144 = sbr.rel (!%p77_p3) target bundleno = 38 (0x26), region = 24  ;;  %s146_s20 = sand.u32 (%p77_p3), 1, %s1022_s10  }
  0x13   : > { %s903_s21 = sshll.u32 (%p77_p3), %s1030_s12, 4  ;;  %s858_s22 = sshll.u32 (%p77_p3), %s146_s20, 8 }
  0x14   : > { %s1100_s25 = scalar_lea.vmem (%p77_p3), %s1275_s1, %s903_s21  ;;  %s1105_s26 = scalar_lea.vmem (%p77_p3), [#allocation3], %s858_s22 }
  0x15   : > { %v167_v0 = vld [vmem:[%s1100_s25] sm:$0xff] (%p77_p3)  ;;  %v169_v1 = vld [vmem:[%s1100_s25 + $0x8] sm:$0xff] (%p77_p3) }
  0x16   : > { %v171_v2 = vld [vmem:[%s1100_s25 + $0x20] sm:$0xff] (%p77_p3)  ;;  %168 = vst [vmem:[%s1105_s26] sm:$0xff] (%p77_p3), %v167_v0  ;;  %170 = vst [vmem:[%s1105_s26 + $0x8] sm:$0xff] (%p77_p3), %v169_v1  ;;  %v173_v3 = vld [vmem:[%s1100_s25 + $0x28] sm:$0xff] (%p77_p3) }
  0x17   : > { %172 = vst [vmem:[%s1105_s26 + $0x10] sm:$0xff] (%p77_p3), %v171_v2  ;;  %v175_v4 = vld [vmem:[%s1100_s25 + $0x40] sm:$0xff] (%p77_p3)  ;;  %v177_v5 = vld [vmem:[%s1100_s25 + $0x48] sm:$0xff] (%p77_p3)  ;;  %174 = vst [vmem:[%s1105_s26 + $0x18] sm:$0xff] (%p77_p3), %v173_v3 }
  0x18   : > { %176 = vst [vmem:[%s1105_s26 + $0x20] sm:$0xff] (%p77_p3), %v175_v4  ;;  %178 = vst [vmem:[%s1105_s26 + $0x28] sm:$0xff] (%p77_p3), %v177_v5  ;;  %v179_v6 = vld [vmem:[%s1100_s25 + $0x60] sm:$0xff] (%p77_p3)  ;;  %v181_v7 = vld [vmem:[%s1100_s25 + $0x68] sm:$0xff] (%p77_p3) }
  0x19   : > { %v183_v8 = vld [vmem:[%s1100_s25 + $0x80] sm:$0xff]  ;;  %180 = vst [vmem:[%s1105_s26 + $0x30] sm:$0xff] %v179_v6  ;;  %182 = vst [vmem:[%s1105_s26 + $0x38] sm:$0xff] %v181_v7  ;;  %v185_v9 = vld [vmem:[%s1100_s25 + $0x88] sm:$0xff] }
  0x1a   : > { %184 = vst [vmem:[%s1105_s26 + $0x40] sm:$0xff] %v183_v8  ;;  %v187_v10 = vld [vmem:[%s1100_s25 + $0xa0] sm:$0xff]  ;;  %v189_v11 = vld [vmem:[%s1100_s25 + $0xa8] sm:$0xff]  ;;  %186 = vst [vmem:[%s1105_s26 + $0x48] sm:$0xff] %v185_v9 }
  0x1b   : > { %188 = vst [vmem:[%s1105_s26 + $0x50] sm:$0xff] %v187_v10  ;;  %190 = vst [vmem:[%s1105_s26 + $0x58] sm:$0xff] %v189_v11  ;;  %v191_v12 = vld [vmem:[%s1100_s25 + $0xc0] sm:$0xff]  ;;  %v193_v13 = vld [vmem:[%s1100_s25 + $0xc8] sm:$0xff] }
  0x1c   : > { %v195_v14 = vld [vmem:[%s1100_s25 + $0xe0] sm:$0xff]  ;;  %192 = vst [vmem:[%s1105_s26 + $0x60] sm:$0xff] %v191_v12  ;;  %194 = vst [vmem:[%s1105_s26 + $0x68] sm:$0xff] %v193_v13  ;;  %v197_v15 = vld [vmem:[%s1100_s25 + $0xe8] sm:$0xff] }
  0x1d   : > { %196 = vst [vmem:[%s1105_s26 + $0x70] sm:$0xff] %v195_v14  ;;  %v199_v16 = vld [vmem:[%s1100_s25 + $0x100] sm:$0xff]  ;;  %v201_v17 = vld [vmem:[%s1100_s25 + $0x108] sm:$0xff]  ;;  %198 = vst [vmem:[%s1105_s26 + $0x78] sm:$0xff] %v197_v15 }
  0x1e   : > { %200 = vst [vmem:[%s1105_s26 + $0x80] sm:$0xff] %v199_v16  ;;  %202 = vst [vmem:[%s1105_s26 + $0x88] sm:$0xff] %v201_v17  ;;  %v203_v18 = vld [vmem:[%s1100_s25 + $0x120] sm:$0xff]  ;;  %v205_v19 = vld [vmem:[%s1100_s25 + $0x128] sm:$0xff] }
  0x1f   : > { %v207_v20 = vld [vmem:[%s1100_s25 + $0x140] sm:$0xff]  ;;  %204 = vst [vmem:[%s1105_s26 + $0x90] sm:$0xff] %v203_v18  ;;  %206 = vst [vmem:[%s1105_s26 + $0x98] sm:$0xff] %v205_v19  ;;  %v209_v21 = vld [vmem:[%s1100_s25 + $0x148] sm:$0xff] }
  0x20   : > { %208 = vst [vmem:[%s1105_s26 + $0xa0] sm:$0xff] %v207_v20  ;;  %v211_v22 = vld [vmem:[%s1100_s25 + $0x160] sm:$0xff]  ;;  %v213_v23 = vld [vmem:[%s1100_s25 + $0x168] sm:$0xff]  ;;  %210 = vst [vmem:[%s1105_s26 + $0xa8] sm:$0xff] %v209_v21 }
  0x21   : > { %212 = vst [vmem:[%s1105_s26 + $0xb0] sm:$0xff] %v211_v22  ;;  %214 = vst [vmem:[%s1105_s26 + $0xb8] sm:$0xff] %v213_v23  ;;  %v215_v24 = vld [vmem:[%s1100_s25 + $0x180] sm:$0xff]  ;;  %v217_v25 = vld [vmem:[%s1100_s25 + $0x188] sm:$0xff] }
  0x22   : > { %v219_v26 = vld [vmem:[%s1100_s25 + $0x1a0] sm:$0xff]  ;;  %216 = vst [vmem:[%s1105_s26 + $0xc0] sm:$0xff] %v215_v24  ;;  %218 = vst [vmem:[%s1105_s26 + $0xc8] sm:$0xff] %v217_v25  ;;  %v221_v27 = vld [vmem:[%s1100_s25 + $0x1a8] sm:$0xff] }
  0x23   : > { %220 = vst [vmem:[%s1105_s26 + $0xd0] sm:$0xff] %v219_v26  ;;  %v223_v28 = vld [vmem:[%s1100_s25 + $0x1c0] sm:$0xff]  ;;  %v225_v29 = vld [vmem:[%s1100_s25 + $0x1c8] sm:$0xff]  ;;  %222 = vst [vmem:[%s1105_s26 + $0xd8] sm:$0xff] %v221_v27 }
  0x24   : > { %224 = vst [vmem:[%s1105_s26 + $0xe0] sm:$0xff] %v223_v28  ;;  %226 = vst [vmem:[%s1105_s26 + $0xe8] sm:$0xff] %v225_v29  ;;  %v227_v30 = vld [vmem:[%s1100_s25 + $0x1e0] sm:$0xff]  ;;  %v229_v31 = vld [vmem:[%s1100_s25 + $0x1e8] sm:$0xff] }
  0x25   : > { %228 = vst [vmem:[%s1105_s26 + $0xf0] sm:$0xff] %v227_v30  ;;  %230 = vst [vmem:[%s1105_s26 + $0xf8] sm:$0xff] %v229_v31 }
  0x26 PF: > { %p861_p8 = scmp.ge.s32.totalorder %s1034_s13, 1  ;;  %p235_p9 = scmp.lt.s32.totalorder %s1034_s13, 3 }
  0x28   : > { %p236_p10 = pnand %p861_p8, %p235_p9 }
  0x29   : > { %s242_s27 = sand.u32 (!%p236_p10), 1, %s1018_s9   ;;  %v1036_v32 = vmov (!%p236_p10), 0   ;;  %v994_v1 = vld [vmem:[%s1274_s0] sm:$0xff] (!%p236_p10)   ;;  %v995_v2 = vld [vmem:[%s1274_s0 + $0x8] sm:$0xff] (!%p236_p10)  }
  0x2a   : > { %239 = sbr.rel (%p236_p10) target bundleno = 309 (0x135), region = 47  ;;  %s862_s28 = sshll.u32 (!%p236_p10), %s242_s27, 8  ;;  %560 = vmatprep.mubr.bf16.mxu0 (!%p236_p10), %v1036_v32  ;;  %613 = vmatprep.mubr.bf16.mxu1 (!%p236_p10), %v1036_v32 }
  0x2b   : > { %s1175_s29 = scalar_lea.vmem (!%p236_p10), [#allocation3], %s862_s28  ;;  %s863_s6 = sshll.u32 (!%p236_p10), %s242_s27, 7 }
  0x2c   : > { %v946_v33 = vld [vmem:[%s1175_s29 + $0x4] ss:$16 sps:$4 sm:$0xff] (!%p236_p10)   ;;  %v948_v34 = vld [vmem:[%s1175_s29 + $0xc] ss:$16 sps:$4 sm:$0xff] (!%p236_p10)   ;;  %v950_v35 = vld [vmem:[%s1175_s29] ss:$16 sps:$4 sm:$0xff] (!%p236_p10)  }
  0x2d   : > { %528 = vmatprep.subr.bf16.mxu0 (!%p236_p10), %v946_v33  ;;  %v951_v36 = vld [vmem:[%s1175_s29 + $0x8] ss:$16 sps:$4 sm:$0xff] (!%p236_p10)   ;;  %581 = vmatprep.subr.bf16.mxu1 (!%p236_p10), %v948_v34  ;;  %v952_v37 = vld [vmem:[%s1175_s29 + $0x24] ss:$16 sps:$4 sm:$0xff] (!%p236_p10)   ;;  %v954_v38 = vld [vmem:[%s1175_s29 + $0x2c] ss:$16 sps:$4 sm:$0xff] (!%p236_p10)  }
  0x2e   : > { %529 = vmatpush1.bf16.msra.mxu0 (!%p236_p10), %v950_v35  ;;  %582 = vmatpush1.bf16.msra.mxu1 (!%p236_p10), %v951_v36  ;;  %v956_v39 = vld [vmem:[%s1175_s29 + $0x20] ss:$16 sps:$4 sm:$0xff] (!%p236_p10)   ;;  %v957_v40 = vld [vmem:[%s1175_s29 + $0x28] ss:$16 sps:$4 sm:$0xff] (!%p236_p10)   ;;  %v958_v41 = vld [vmem:[%s1175_s29 + $0x44] ss:$16 sps:$4 sm:$0xff] (!%p236_p10)  }
  0x2f   : > { %530 = vmatprep.subr.bf16.mxu0 (!%p236_p10), %v952_v37  ;;  %583 = vmatprep.subr.bf16.mxu1 (!%p236_p10), %v954_v38  ;;  %v960_v42 = vld [vmem:[%s1175_s29 + $0x4c] ss:$16 sps:$4 sm:$0xff] (!%p236_p10)   ;;  %v962_v43 = vld [vmem:[%s1175_s29 + $0x40] ss:$16 sps:$4 sm:$0xff] (!%p236_p10)   ;;  %v963_v44 = vld [vmem:[%s1175_s29 + $0x48] ss:$16 sps:$4 sm:$0xff] (!%p236_p10)  }
  0x30   : > { %v964_v45 = vld [vmem:[%s1175_s29 + $0x64] ss:$16 sps:$4 sm:$0xff] (!%p236_p10)   ;;  %v966_v46 = vld [vmem:[%s1175_s29 + $0x6c] ss:$16 sps:$4 sm:$0xff] (!%p236_p10)   ;;  %v968_v47 = vld [vmem:[%s1175_s29 + $0x60] ss:$16 sps:$4 sm:$0xff] (!%p236_p10)  }
  0x31   : > { %v969_v48 = vld [vmem:[%s1175_s29 + $0x68] ss:$16 sps:$4 sm:$0xff]   ;;  %v970_v49 = vld [vmem:[%s1175_s29 + $0x84] ss:$16 sps:$4 sm:$0xff]   ;;  %v972_v50 = vld [vmem:[%s1175_s29 + $0x8c] ss:$16 sps:$4 sm:$0xff]  }
  0x32   : > { %531 = vmatpush1.bf16.msra.mxu0 %v956_v39  ;;  %584 = vmatpush1.bf16.msra.mxu1 %v957_v40  ;;  %v974_v51 = vld [vmem:[%s1175_s29 + $0x80] ss:$16 sps:$4 sm:$0xff]   ;;  %v975_v52 = vld [vmem:[%s1175_s29 + $0x88] ss:$16 sps:$4 sm:$0xff]   ;;  %v976_v53 = vld [vmem:[%s1175_s29 + $0xa4] ss:$16 sps:$4 sm:$0xff]  }
  0x33   : > { %532 = vmatprep.subr.bf16.mxu0 %v958_v41  ;;  %585 = vmatprep.subr.bf16.mxu1 %v960_v42  ;;  %v978_v54 = vld [vmem:[%s1175_s29 + $0xac] ss:$16 sps:$4 sm:$0xff]   ;;  %v980_v55 = vld [vmem:[%s1175_s29 + $0xa0] ss:$16 sps:$4 sm:$0xff]   ;;  %v981_v56 = vld [vmem:[%s1175_s29 + $0xa8] ss:$16 sps:$4 sm:$0xff]  }
  0x34   : > { %v982_v57 = vld [vmem:[%s1175_s29 + $0xc4] ss:$16 sps:$4 sm:$0xff]   ;;  %v984_v58 = vld [vmem:[%s1175_s29 + $0xcc] ss:$16 sps:$4 sm:$0xff]   ;;  %v986_v59 = vld [vmem:[%s1175_s29 + $0xc0] ss:$16 sps:$4 sm:$0xff]  }
  0x35   : > { %v987_v60 = vld [vmem:[%s1175_s29 + $0xc8] ss:$16 sps:$4 sm:$0xff]   ;;  %v988_v61 = vld [vmem:[%s1175_s29 + $0xe4] ss:$16 sps:$4 sm:$0xff]   ;;  %v990_v62 = vld [vmem:[%s1175_s29 + $0xec] ss:$16 sps:$4 sm:$0xff]  }
  0x36   : > { %533 = vmatpush1.bf16.msra.mxu0 %v962_v43  ;;  %586 = vmatpush1.bf16.msra.mxu1 %v963_v44  ;;  %v992_v63 = vld [vmem:[%s1175_s29 + $0xe0] ss:$16 sps:$4 sm:$0xff]   ;;  %v993_v0 = vld [vmem:[%s1175_s29 + $0xe8] ss:$16 sps:$4 sm:$0xff]   ;;  %s1219_s7 = scalar_lea.vmem [#allocation4], %s863_s6  ;;  %s904_s8 = sshll.u32 (%p1087_p6), %s1026_s11, 5 }
  0x37   : > { %534 = vmatprep.subr.bf16.mxu0 %v964_v45  ;;  %587 = vmatprep.subr.bf16.mxu1 %v966_v46  ;;  %s713_s16 = scalar_lea.vmem (%p1087_p6), %s1276_s2, %s904_s8 }
  0x3a   : > { %535 = vmatpush1.bf16.msra.mxu0 %v968_v47  ;;  %588 = vmatpush1.bf16.msra.mxu1 %v969_v48 }
  0x3b   : > { %536 = vmatprep.subr.bf16.mxu0 %v970_v49  ;;  %589 = vmatprep.subr.bf16.mxu1 %v972_v50 }
  0x3e   : > { %537 = vmatpush1.bf16.msra.mxu0 %v974_v51  ;;  %590 = vmatpush1.bf16.msra.mxu1 %v975_v52 }
  0x3f   : > { %538 = vmatprep.subr.bf16.mxu0 %v976_v53  ;;  %591 = vmatprep.subr.bf16.mxu1 %v978_v54 }
  0x42   : > { %539 = vmatpush1.bf16.msra.mxu0 %v980_v55  ;;  %592 = vmatpush1.bf16.msra.mxu1 %v981_v56 }
  0x43   : > { %540 = vmatprep.subr.bf16.mxu0 %v982_v57  ;;  %593 = vmatprep.subr.bf16.mxu1 %v984_v58 }
  0x46   : > { %541 = vmatpush1.bf16.msra.mxu0 %v986_v59  ;;  %594 = vmatpush1.bf16.msra.mxu1 %v987_v60 }
  0x47   : > { %542 = vmatprep.subr.bf16.mxu0 %v988_v61  ;;  %595 = vmatprep.subr.bf16.mxu1 %v990_v62 }
  0x4a   : > { %543 = vmatpush1.bf16.msra.mxu0 %v992_v63  ;;  %596 = vmatpush1.bf16.msra.mxu1 %v993_v0 }
  0x4d   : > { %561 = vmatmul.mubr.bf16.vlgmr.msra.gmra.mrb[0].mxu0 %v994_v1  ;;  %614 = vmatmul.mubr.bf16.vlgmr.msra.gmra.mrb[0].mxu1 %v994_v1 }
  0x4e   : > { %570 = vmatprep.mubr.bf16.mxu0 %v1036_v32  ;;  %623 = vmatprep.mubr.bf16.mxu1 %v1036_v32 }
  0x55   : > { %571 = vmatmul.mubr.bf16.gmra.mrb[4].mxu0 %v995_v2  ;;  %624 = vmatmul.mubr.bf16.gmra.mrb[4].mxu1 %v995_v2 }
 0x120   : > { %v562_v3 = vpop.f32.mrb[0].mxu0  ;;  %v615_v4 = vpop.f32.mrb[0].mxu1 }
 0x121   : > { %685 = vst [vmem:[%s1219_s7] sm:$0xff] %v562_v3  ;;  %687 = vst [vmem:[%s1219_s7 + $0x10] sm:$0xff] %v615_v4  ;;  %v564_v5 = vpop.f32.mrb[1].mxu0  ;;  %v617_v6 = vpop.f32.mrb[1].mxu1 }
 0x122   : > { %686 = vst [vmem:[%s1219_s7 + $0x8] sm:$0xff] %v564_v5  ;;  %688 = vst [vmem:[%s1219_s7 + $0x18] sm:$0xff] %v617_v6  ;;  %v566_v7 = vpop.f32.mrb[2].mxu0  ;;  %v619_v8 = vpop.f32.mrb[2].mxu1 }
 0x123   : > { %689 = vst [vmem:[%s1219_s7 + $0x20] sm:$0xff] %v566_v7  ;;  %691 = vst [vmem:[%s1219_s7 + $0x30] sm:$0xff] %v619_v8  ;;  %v568_v9 = vpop.f32.mrb[3].mxu0  ;;  %v621_v10 = vpop.f32.mrb[3].mxu1 }
 0x124   : > { %690 = vst [vmem:[%s1219_s7 + $0x28] sm:$0xff] %v568_v9  ;;  %692 = vst [vmem:[%s1219_s7 + $0x38] sm:$0xff] %v621_v10 }
 0x126   : > { %707 = sbr.rel (!%p1087_p6) target bundleno = 309 (0x135), region = 63 }
 0x128   : > { %v572_v11 = vpop.f32.mrb[4].mxu0  ;;  %v625_v12 = vpop.f32.mrb[4].mxu1  ;;  %v726_v19 = vld [vmem:[%s1219_s7] sm:$0xff] (%p1087_p6)  ;;  %v730_v21 = vld [vmem:[%s1219_s7 + $0x10] sm:$0xff] (%p1087_p6) }
 0x129   : > { %693 = vst [vmem:[%s1219_s7 + $0x40] sm:$0xff] %v572_v11  ;;  %695 = vst [vmem:[%s1219_s7 + $0x50] sm:$0xff] %v625_v12  ;;  %v574_v13 = vpop.f32.mrb[5].mxu0  ;;  %v627_v14 = vpop.f32.mrb[5].mxu1  ;;  %v728_v20 = vld [vmem:[%s1219_s7 + $0x8] sm:$0xff] (%p1087_p6)  ;;  %v732_v22 = vld [vmem:[%s1219_s7 + $0x18] sm:$0xff] (%p1087_p6) }
 0x12a   : > { %694 = vst [vmem:[%s1219_s7 + $0x48] sm:$0xff] %v574_v13  ;;  %696 = vst [vmem:[%s1219_s7 + $0x58] sm:$0xff] %v627_v14  ;;  %v576_v15 = vpop.f32.mrb[6].mxu0  ;;  %v629_v16 = vpop.f32.mrb[6].mxu1  ;;  %v734_v23 = vld [vmem:[%s1219_s7 + $0x20] sm:$0xff] (%p1087_p6)  ;;  %v738_v25 = vld [vmem:[%s1219_s7 + $0x30] sm:$0xff] (%p1087_p6) }
 0x12b   : > { %697 = vst [vmem:[%s1219_s7 + $0x60] sm:$0xff] %v576_v15  ;;  %699 = vst [vmem:[%s1219_s7 + $0x70] sm:$0xff] %v629_v16  ;;  %v578_v17 = vpop.f32.mrb[7].mxu0  ;;  %v631_v18 = vpop.f32.mrb[7].mxu1  ;;  %v736_v24 = vld [vmem:[%s1219_s7 + $0x28] sm:$0xff] (%p1087_p6)  ;;  %v740_v26 = vld [vmem:[%s1219_s7 + $0x38] sm:$0xff] (%p1087_p6) }
 0x12c   : > { %698 = vst [vmem:[%s1219_s7 + $0x68] sm:$0xff] %v578_v17  ;;  %700 = vst [vmem:[%s1219_s7 + $0x78] sm:$0xff] %v631_v18 }
 0x12d   : > { %727 = vst [vmem:[%s713_s16] sm:$0xff] %v726_v19  ;;  %729 = vst [vmem:[%s713_s16 + $0x8] sm:$0xff] %v728_v20 }
 0x12e   : > { %731 = vst [vmem:[%s713_s16 + $0x10] sm:$0xff] %v730_v21  ;;  %733 = vst [vmem:[%s713_s16 + $0x18] sm:$0xff] %v732_v22 }
 0x12f   : > { %735 = vst [vmem:[%s713_s16 + $0x40] sm:$0xff] %v734_v23  ;;  %737 = vst [vmem:[%s713_s16 + $0x48] sm:$0xff] %v736_v24 }
 0x130   : > { %v742_v27 = vld [vmem:[%s1219_s7 + $0x40] sm:$0xff]  ;;  %739 = vst [vmem:[%s713_s16 + $0x50] sm:$0xff] %v738_v25  ;;  %741 = vst [vmem:[%s713_s16 + $0x58] sm:$0xff] %v740_v26  ;;  %v746_v29 = vld [vmem:[%s1219_s7 + $0x50] sm:$0xff] }
 0x131   : > { %743 = vst [vmem:[%s713_s16 + $0x80] sm:$0xff] %v742_v27  ;;  %v744_v28 = vld [vmem:[%s1219_s7 + $0x48] sm:$0xff]  ;;  %v748_v30 = vld [vmem:[%s1219_s7 + $0x58] sm:$0xff]  ;;  %747 = vst [vmem:[%s713_s16 + $0x90] sm:$0xff] %v746_v29 }
 0x132   : > { %745 = vst [vmem:[%s713_s16 + $0x88] sm:$0xff] %v744_v28  ;;  %749 = vst [vmem:[%s713_s16 + $0x98] sm:$0xff] %v748_v30  ;;  %v750_v31 = vld [vmem:[%s1219_s7 + $0x60] sm:$0xff]  ;;  %v754_v33 = vld [vmem:[%s1219_s7 + $0x70] sm:$0xff] }
 0x133   : > { %v752_v32 = vld [vmem:[%s1219_s7 + $0x68] sm:$0xff]  ;;  %751 = vst [vmem:[%s713_s16 + $0xc0] sm:$0xff] %v750_v31  ;;  %755 = vst [vmem:[%s713_s16 + $0xd0] sm:$0xff] %v754_v33  ;;  %v756_v34 = vld [vmem:[%s1219_s7 + $0x78] sm:$0xff] }
 0x134   : > { %753 = vst [vmem:[%s713_s16 + $0xc8] sm:$0xff] %v752_v32  ;;  %757 = vst [vmem:[%s713_s16 + $0xd8] sm:$0xff] %v756_v34 }
 0x135 PF: > { %s12_s13 = sadd.s32 1, %s1034_s13   ;;  %s1278_s9 = smov %s1022_s10 }
 0x136   : > { %p9_p11 = scmp.ge.s32.totalorder %s12_s13, 4   ;;  %s1279_s10 = smov %s1092_s19 }
 0x137   : > { %s1280_s11 = smov %s1030_s12  ;;  %s1281_s12 = smov %s1283_s14 }
 0x138   :  { %11 = sbr.rel (!%p9_p11) target bundleno = 3 (0x3), region = 120 }

// kernel: dccgan_generator_forward.21
= control target key start
LH: loop header
LB: loop body
LE: loop exit
PB: predicated region body
PF: predicated region fallthrough
CT: control target
= control target key end

     0   :  { %vm12_vm0 = vcmask 517120   ;;  %vm31_vm1 = vcmask 523264   ;;  %v132_v0 = vmov 0.0   ;;  %vm122_vm2 = vcmask 1040384   ;;  %s234_s0 = inlined_call_operand.vmem [shape: f32[128,64], index: 0, kind: input, shape index: {}]   ;;  %s235_s1 = inlined_call_operand.vmem [shape: f32[2,64], index: 1, kind: output, shape index: {}]  }
   0x1   :  { %13 = vst.msk [vmem:[%s235_s1] sm:$0x3] %vm12_vm0, %v132_v0  ;;  %v14_v1 = vld [vmem:[%s234_s0] sm:$0xff]  ;;  %v15_v2 = vld [vmem:[%s234_s0 + $0x8] sm:$0xff]  ;;  %v16_v3 = vld [vmem:[%s234_s0 + $0x10] sm:$0xff] }
   0x2   :  { %v32_v4 = vsel %vm31_vm1, %v14_v1, 0.0  ;;  %v33_v5 = vsel %vm31_vm1, %v15_v2, 0.0  ;;  %v35_v6 = vsel %vm31_vm1, %v16_v3, 0.0  ;;  %v17_v7 = vld [vmem:[%s234_s0 + $0x18] sm:$0xff]  ;;  %v18_v10 = vld [vmem:[%s234_s0 + $0x20] sm:$0xff]  ;;  %v19_v13 = vld [vmem:[%s234_s0 + $0x28] sm:$0xff]  ;;  %v69_v15 = vmul.f32 %v14_v1, %v14_v1 }
   0x3   :  { %v34_v8 = vadd.f32 %v33_v5, %v32_v4  ;;  %v37_v9 = vsel %vm31_vm1, %v17_v7, 0.0  ;;  %v39_v12 = vsel %vm31_vm1, %v18_v10, 0.0  ;;  %v70_v16 = vmul.f32 %v15_v2, %v15_v2  ;;  %v20_v19 = vld [vmem:[%s234_s0 + $0x30] sm:$0xff]  ;;  %v21_v24 = vld [vmem:[%s234_s0 + $0x38] sm:$0xff]  ;;  %v22_v31 = vld [vmem:[%s234_s0 + $0x40] sm:$0xff] }
   0x4   :  { %v71_v17 = vmul.f32 %v16_v3, %v16_v3  ;;  %v41_v18 = vsel %vm31_vm1, %v19_v13, 0.0  ;;  %v72_v21 = vmul.f32 %v17_v7, %v17_v7  ;;  %v43_v22 = vsel %vm31_vm1, %v20_v19, 0.0  ;;  %v23_v37 = vld [vmem:[%s234_s0 + $0x48] sm:$0xff]  ;;  %v24_v43 = vld [vmem:[%s234_s0 + $0x50] sm:$0xff]  ;;  %v25_v49 = vld [vmem:[%s234_s0 + $0x58] sm:$0xff] }
   0x5   :  { %v36_v11 = vadd.f32 %v35_v6, %v34_v8  ;;  %v73_v23 = vmul.f32 %v18_v10, %v18_v10  ;;  %v85_v26 = vsel %vm31_vm1, %v69_v15, 0.0  ;;  %v86_v27 = vsel %vm31_vm1, %v70_v16, 0.0  ;;  %v26_v55 = vld [vmem:[%s234_s0 + $0x60] sm:$0xff]  ;;  %v27_v61 = vld [vmem:[%s234_s0 + $0x68] sm:$0xff]  ;;  %v28_v3 = vld [vmem:[%s234_s0 + $0x70] sm:$0xff] }
   0x6   :  { %v88_v28 = vsel %vm31_vm1, %v71_v17, 0.0  ;;  %v45_v29 = vsel %vm31_vm1, %v21_v24, 0.0  ;;  %v87_v30 = vadd.f32 %v86_v27, %v85_v26  ;;  %v74_v33 = vmul.f32 %v19_v13, %v19_v13 }
   0x7   :  { %v38_v14 = vadd.f32 %v37_v9, %v36_v11  ;;  %v90_v34 = vsel %vm31_vm1, %v72_v21, 0.0  ;;  %v47_v35 = vsel %vm31_vm1, %v22_v31, 0.0  ;;  %v75_v39 = vmul.f32 %v20_v19, %v20_v19  ;;  %v29_v9 = vld [vmem:[%s234_s0 + $0x78] sm:$0xff] }
   0x8   :  { %v89_v36 = vadd.f32 %v88_v28, %v87_v30  ;;  %v92_v40 = vsel %vm31_vm1, %v73_v23, 0.0  ;;  %v49_v41 = vsel %vm31_vm1, %v23_v37, 0.0  ;;  %v76_v45 = vmul.f32 %v21_v24, %v21_v24 }
   0x9   :  { %v40_v20 = vadd.f32 %v39_v12, %v38_v14  ;;  %v94_v46 = vsel %vm31_vm1, %v74_v33, 0.0  ;;  %v51_v47 = vsel %vm31_vm1, %v24_v43, 0.0  ;;  %v77_v51 = vmul.f32 %v22_v31, %v22_v31 }
   0xa   :  { %v91_v42 = vadd.f32 %v90_v34, %v89_v36  ;;  %v96_v52 = vsel %vm31_vm1, %v75_v39, 0.0  ;;  %v53_v53 = vsel %vm31_vm1, %v25_v49, 0.0  ;;  %v78_v57 = vmul.f32 %v23_v37, %v23_v37 }
   0xb   :  { %v42_v25 = vadd.f32 %v41_v18, %v40_v20  ;;  %v98_v58 = vsel %vm31_vm1, %v76_v45, 0.0  ;;  %v55_v59 = vsel %vm31_vm1, %v26_v55, 0.0  ;;  %v79_v63 = vmul.f32 %v24_v43, %v24_v43 }
   0xc   :  { %v93_v48 = vadd.f32 %v92_v40, %v91_v42  ;;  %v100_v0 = vsel %vm31_vm1, %v77_v51, 0.0  ;;  %v57_v1 = vsel %vm31_vm1, %v27_v61, 0.0  ;;  %v80_v5 = vmul.f32 %v25_v49, %v25_v49  ;;  %v30_v42 = vld [vmem:[%s235_s1] sm:$0x3] }
   0xd   :  { %v44_v32 = vadd.f32 %v43_v22, %v42_v25  ;;  %v102_v6 = vsel %vm31_vm1, %v78_v57, 0.0  ;;  %v59_v7 = vsel %vm31_vm1, %v28_v3, 0.0  ;;  %v81_v11 = vmul.f32 %v26_v55, %v26_v55 }
   0xe   :  { %v95_v54 = vadd.f32 %v94_v46, %v93_v48  ;;  %v104_v12 = vsel %vm31_vm1, %v79_v63, 0.0  ;;  %v61_v13 = vsel %vm31_vm1, %v29_v9, 0.0  ;;  %v82_v16 = vmul.f32 %v27_v61, %v27_v61 }
   0xf   :  { %v46_v38 = vadd.f32 %v45_v29, %v44_v32  ;;  %v106_v17 = vsel %vm31_vm1, %v80_v5, 0.0  ;;  %v83_v20 = vmul.f32 %v28_v3, %v28_v3  ;;  %v108_v21 = vsel %vm31_vm1, %v81_v11, 0.0 }
  0x10   :  { %v97_v60 = vadd.f32 %v96_v52, %v95_v54  ;;  %v84_v24 = vmul.f32 %v29_v9, %v29_v9  ;;  %v110_v25 = vsel %vm31_vm1, %v82_v16, 0.0 }
  0x11   :  { %v48_v44 = vadd.f32 %v47_v35, %v46_v38  ;;  %v112_v28 = vsel %vm31_vm1, %v83_v20, 0.0 }
  0x12   :  { %v99_v2 = vadd.f32 %v98_v58, %v97_v60  ;;  %v114_v30 = vsel %vm31_vm1, %v84_v24, 0.0 }
  0x13   :  { %v50_v50 = vadd.f32 %v49_v41, %v48_v44 }
  0x14   :  { %v101_v8 = vadd.f32 %v100_v0, %v99_v2 }
  0x15   :  { %v52_v56 = vadd.f32 %v51_v47, %v50_v50 }
  0x16   :  { %v103_v14 = vadd.f32 %v102_v6, %v101_v8 }
  0x17   :  { %v54_v62 = vadd.f32 %v53_v53, %v52_v56 }
  0x18   :  { %v105_v18 = vadd.f32 %v104_v12, %v103_v14 }
  0x19   :  { %v56_v4 = vadd.f32 %v55_v59, %v54_v62 }
  0x1a   :  { %v107_v22 = vadd.f32 %v106_v17, %v105_v18 }
  0x1b   :  { %v58_v10 = vadd.f32 %v57_v1, %v56_v4 }
  0x1c   :  { %v109_v26 = vadd.f32 %v108_v21, %v107_v22 }
  0x1d   :  { %v60_v15 = vadd.f32 %v59_v7, %v58_v10 }
  0x1e   :  { %v111_v29 = vadd.f32 %v110_v25, %v109_v26 }
  0x1f   :  { %v62_v19 = vadd.f32 %v61_v13, %v60_v15 }
  0x20   :  { %v113_v32 = vadd.f32 %v112_v28, %v111_v29 }
  0x21   :  { %v63_v23 = vrot.slane %v62_v19, 4 }
  0x22   :  { %v115_v33 = vadd.f32 %v114_v30, %v113_v32 }
  0x23   :  { %v64_v27 = vadd.f32 %v63_v23, %v62_v19 }
  0x24   :  { %v116_v35 = vrot.slane %v115_v33, 4 }
  0x25   :  { %v65_v31 = vrot.slane %v64_v27, 2 }
  0x26   :  { %v117_v36 = vadd.f32 %v116_v35, %v115_v33 }
  0x27   :  { %v66_v34 = vadd.f32 %v65_v31, %v64_v27 }
  0x28   :  { %v118_v38 = vrot.slane %v117_v36, 2 }
  0x29   :  { %v67_v37 = vrot.slane %v66_v34, 1 }
  0x2a   :  { %v119_v39 = vadd.f32 %v118_v38, %v117_v36 }
  0x2b   :  { %v68_v40 = vadd.f32 %v67_v37, %v66_v34 }
  0x2c   :  { %v120_v41 = vrot.slane %v119_v39, 1 }
  0x2e   :  { %v121_v43 = vadd.f32 %v120_v41, %v119_v39 }
  0x30   :  { %v123_v44 = vsel %vm122_vm2, %v68_v40, %v121_v43 }
  0x31   :  { %v124_v45 = vadd.f32 %v123_v44, %v30_v42 }
  0x33   :  { %126 = vst.msk [vmem:[%s235_s1] sm:$0x3] %vm12_vm0, %v124_v45 }

// kernel: dccgan_generator_forward.22
= control target key start
LH: loop header
LB: loop body
LE: loop exit
PB: predicated region body
PF: predicated region fallthrough
CT: control target
= control target key end

     0   :  { %vm156_vm0 = vcmask 519168   ;;  %s385_s0 = inlined_call_operand.vmem [shape: f32[128,64], index: 0, kind: input, shape index: {}]   ;;  %s386_s1 = inlined_call_operand.vmem [shape: f32[1,64], index: 1, kind: input, shape index: {}]   ;;  %s387_s2 = inlined_call_operand.vmem [shape: f32[1,64], index: 2, kind: input, shape index: {}]   ;;  %s388_s3 = inlined_call_operand.vmem [shape: bf16[128,64], index: 3, kind: output, shape index: {}]  }
   0x1   :  { %v14_v0 = vld [vmem:[%s385_s0] sm:$0xff]  ;;  %v15_v4 = vld [vmem:[%s385_s0 + $0x8] sm:$0xff]  ;;  %v16_v5 = vld [vmem:[%s385_s0 + $0x10] sm:$0xff] }
   0x2   :  { %v237_v1 = vld [vmem:[%s386_s1] ss:$0 sm:$0xff]  ;;  %v17_v6 = vld [vmem:[%s385_s0 + $0x18] sm:$0xff]  ;;  %v19_v11 = vld [vmem:[%s385_s0 + $0x28] sm:$0xff] }
   0x3   :  { %v242_v2 = vld [vmem:[%s387_s2] ss:$0 sm:$0xff]  ;;  %v37_v3 = vmul.f32 %v237_v1, %v14_v0  ;;  %v38_v7 = vmul.f32 %v237_v1, %v15_v4  ;;  %v39_v8 = vmul.f32 %v237_v1, %v16_v5  ;;  %v40_v9 = vmul.f32 %v237_v1, %v17_v6  ;;  %v20_v12 = vld [vmem:[%s385_s0 + $0x30] sm:$0xff]  ;;  %v21_v17 = vld [vmem:[%s385_s0 + $0x38] sm:$0xff] }
   0x4   :  { %v18_v10 = vld [vmem:[%s385_s0 + $0x20] sm:$0xff]  ;;  %v42_v15 = vmul.f32 %v237_v1, %v19_v11  ;;  %v43_v16 = vmul.f32 %v237_v1, %v20_v12  ;;  %v44_v21 = vmul.f32 %v237_v1, %v21_v17  ;;  %v23_v35 = vld [vmem:[%s385_s0 + $0x48] sm:$0xff]  ;;  %v24_v36 = vld [vmem:[%s385_s0 + $0x50] sm:$0xff] }
   0x5   :  { %v60_v13 = vadd.f32 %v242_v2, %v37_v3  ;;  %v41_v14 = vmul.f32 %v237_v1, %v18_v10  ;;  %v61_v18 = vadd.f32 %v242_v2, %v38_v7  ;;  %v62_v19 = vadd.f32 %v242_v2, %v39_v8  ;;  %v22_v30 = vld [vmem:[%s385_s0 + $0x40] sm:$0xff]  ;;  %v25_v37 = vld [vmem:[%s385_s0 + $0x58] sm:$0xff]  ;;  %v27_v43 = vld [vmem:[%s385_s0 + $0x68] sm:$0xff] }
   0x6   :  { %v63_v20 = vadd.f32 %v242_v2, %v40_v9  ;;  %v65_v24 = vadd.f32 %v242_v2, %v42_v15  ;;  %v66_v25 = vadd.f32 %v242_v2, %v43_v16  ;;  %v67_v29 = vadd.f32 %v242_v2, %v44_v21  ;;  %v26_v42 = vld [vmem:[%s385_s0 + $0x60] sm:$0xff]  ;;  %v28_v44 = vld [vmem:[%s385_s0 + $0x70] sm:$0xff]  ;;  %v29_v49 = vld [vmem:[%s385_s0 + $0x78] sm:$0xff] }
   0x7   :  { %v76_v22 = vmax.f32 %v60_v13, 0.0  ;;  %v64_v23 = vadd.f32 %v242_v2, %v41_v14  ;;  %v77_v26 = vmax.f32 %v61_v18, 0.0  ;;  %v78_v27 = vmax.f32 %v62_v19, 0.0 }
   0x8   :  { %v79_v28 = vmax.f32 %v63_v20, 0.0  ;;  %v81_v33 = vmax.f32 %v65_v24, 0.0  ;;  %v82_v34 = vmax.f32 %v66_v25, 0.0  ;;  %v83_v41 = vmax.f32 %v67_v29, 0.0 }
   0x9   :  { %v195_v31 = vpack.c.bf16 %v76_v22, %v76_v22  ;;  %v80_v32 = vmax.f32 %v64_v23, 0.0  ;;  %v196_v38 = vpack.c.bf16 %v77_v26, %v77_v26  ;;  %v197_v39 = vpack.c.bf16 %v78_v27, %v78_v27 }
   0xa   :  { %v198_v40 = vpack.c.bf16 %v79_v28, %v79_v28  ;;  %v200_v46 = vpack.c.bf16 %v81_v33, %v81_v33  ;;  %v201_v47 = vpack.c.bf16 %v82_v34, %v82_v34  ;;  %v45_v48 = vmul.f32 %v237_v1, %v22_v30 }
   0xb   :  { %157 = vst.msk [vmem:[%s388_s3] sm:$0xf] %vm156_vm0, %v195_v31  ;;  %v199_v45 = vpack.c.bf16 %v80_v32, %v80_v32  ;;  %158 = vst.msk [vmem:[%s388_s3 + $0x4] sm:$0xf] %vm156_vm0, %v196_v38  ;;  %v202_v50 = vpack.c.bf16 %v83_v41, %v83_v41  ;;  %v46_v51 = vmul.f32 %v237_v1, %v23_v35 }
   0xc   :  { %159 = vst.msk [vmem:[%s388_s3 + $0x8] sm:$0xf] %vm156_vm0, %v197_v39  ;;  %160 = vst.msk [vmem:[%s388_s3 + $0xc] sm:$0xf] %vm156_vm0, %v198_v40  ;;  %v47_v52 = vmul.f32 %v237_v1, %v24_v36  ;;  %v48_v53 = vmul.f32 %v237_v1, %v25_v37  ;;  %v68_v54 = vadd.f32 %v242_v2, %v45_v48 }
   0xd   :  { %161 = vst.msk [vmem:[%s388_s3 + $0x10] sm:$0xf] %vm156_vm0, %v199_v45  ;;  %162 = vst.msk [vmem:[%s388_s3 + $0x14] sm:$0xf] %vm156_vm0, %v200_v46  ;;  %v49_v55 = vmul.f32 %v237_v1, %v26_v42  ;;  %v50_v56 = vmul.f32 %v237_v1, %v27_v43  ;;  %v51_v57 = vmul.f32 %v237_v1, %v28_v44 }
   0xe   :  { %163 = vst.msk [vmem:[%s388_s3 + $0x18] sm:$0xf] %vm156_vm0, %v201_v47  ;;  %164 = vst.msk [vmem:[%s388_s3 + $0x1c] sm:$0xf] %vm156_vm0, %v202_v50  ;;  %v69_v58 = vadd.f32 %v242_v2, %v46_v51  ;;  %v70_v59 = vadd.f32 %v242_v2, %v47_v52  ;;  %v71_v60 = vadd.f32 %v242_v2, %v48_v53  ;;  %v84_v62 = vmax.f32 %v68_v54, 0.0 }
   0xf   :  { %v52_v61 = vmul.f32 %v237_v1, %v29_v49  ;;  %v72_v63 = vadd.f32 %v242_v2, %v49_v55  ;;  %v73_v0 = vadd.f32 %v242_v2, %v50_v56  ;;  %v74_v3 = vadd.f32 %v242_v2, %v51_v57 }
  0x10   :  { %v85_v4 = vmax.f32 %v69_v58, 0.0  ;;  %v86_v5 = vmax.f32 %v70_v59, 0.0  ;;  %v87_v6 = vmax.f32 %v71_v60, 0.0  ;;  %v203_v8 = vpack.c.bf16 %v84_v62, %v84_v62 }
  0x11   :  { %v75_v7 = vadd.f32 %v242_v2, %v52_v61  ;;  %v88_v9 = vmax.f32 %v72_v63, 0.0  ;;  %v89_v10 = vmax.f32 %v73_v0, 0.0  ;;  %v90_v11 = vmax.f32 %v74_v3, 0.0 }
  0x12   :  { %v204_v12 = vpack.c.bf16 %v85_v4, %v85_v4  ;;  %v205_v13 = vpack.c.bf16 %v86_v5, %v86_v5  ;;  %v206_v14 = vpack.c.bf16 %v87_v6, %v87_v6  ;;  %165 = vst.msk [vmem:[%s388_s3 + $0x20] sm:$0xf] %vm156_vm0, %v203_v8 }
  0x13   :  { %v91_v1 = vmax.f32 %v75_v7, 0.0  ;;  %v207_v15 = vpack.c.bf16 %v88_v9, %v88_v9  ;;  %v208_v16 = vpack.c.bf16 %v89_v10, %v89_v10  ;;  %v209_v17 = vpack.c.bf16 %v90_v11, %v90_v11 }
  0x14   :  { %166 = vst.msk [vmem:[%s388_s3 + $0x24] sm:$0xf] %vm156_vm0, %v204_v12  ;;  %167 = vst.msk [vmem:[%s388_s3 + $0x28] sm:$0xf] %vm156_vm0, %v205_v13 }
  0x15   :  { %168 = vst.msk [vmem:[%s388_s3 + $0x2c] sm:$0xf] %vm156_vm0, %v206_v14  ;;  %v210_v2 = vpack.c.bf16 %v91_v1, %v91_v1  ;;  %169 = vst.msk [vmem:[%s388_s3 + $0x30] sm:$0xf] %vm156_vm0, %v207_v15 }
  0x16   :  { %170 = vst.msk [vmem:[%s388_s3 + $0x34] sm:$0xf] %vm156_vm0, %v208_v16  ;;  %171 = vst.msk [vmem:[%s388_s3 + $0x38] sm:$0xf] %vm156_vm0, %v209_v17 }
  0x17   :  { %172 = vst.msk [vmem:[%s388_s3 + $0x3c] sm:$0xf] %vm156_vm0, %v210_v2 }

// kernel: dccgan_generator_forward.23
= control target key start
LH: loop header
LB: loop body
LE: loop exit
PB: predicated region body
PF: predicated region fallthrough
CT: control target
= control target key end

     0   :  { %v883_v1 = vmov 0   ;;  %vm296_vm0 = vcmask 523264   ;;  %s1195_s1 = inlined_call_operand.vmem [shape: bf16[64,512], index: 1, kind: input, shape index: {}]   ;;  %s1196_s0 = inlined_call_operand.vmem [shape: bf16[128,64], index: 0, kind: input, shape index: {}]   ;;  %s1197_s2 = inlined_call_operand.vmem [shape: f32[128,512], index: 2, kind: output, shape index: {}]  }
   0x1   :  { %v851_v0 = vld [vmem:[%s1195_s1 + $0x4] ss:$16 sps:$4 sm:$0xff]   ;;  %353 = vmatprep.mubr.bf16.mxu0 %v883_v1  ;;  %466 = vmatprep.mubr.bf16.mxu1 %v883_v1  ;;  %v853_v2 = vld [vmem:[%s1195_s1 + $0xc] ss:$16 sps:$4 sm:$0xff]   ;;  %v855_v3 = vld [vmem:[%s1195_s1] ss:$16 sps:$4 sm:$0xff]  }
   0x2   :  { %321 = vmatprep.subr.bf16.mxu0 %v851_v0  ;;  %v856_v4 = vld [vmem:[%s1195_s1 + $0x8] ss:$16 sps:$4 sm:$0xff]   ;;  %434 = vmatprep.subr.bf16.mxu1 %v853_v2  ;;  %v857_v5 = vld [vmem:[%s1195_s1 + $0x24] ss:$16 sps:$4 sm:$0xff]   ;;  %v859_v6 = vld [vmem:[%s1195_s1 + $0x2c] ss:$16 sps:$4 sm:$0xff]  }
   0x3   :  { %322 = vmatpush1.bf16.msra.mxu0 %v855_v3  ;;  %435 = vmatpush1.bf16.msra.mxu1 %v856_v4  ;;  %v861_v7 = vld [vmem:[%s1195_s1 + $0x20] ss:$16 sps:$4 sm:$0xff]   ;;  %v862_v8 = vld [vmem:[%s1195_s1 + $0x28] ss:$16 sps:$4 sm:$0xff]   ;;  %v863_v9 = vld [vmem:[%s1195_s1 + $0x44] ss:$16 sps:$4 sm:$0xff]  }
   0x4   :  { %323 = vmatprep.subr.bf16.mxu0 %v857_v5  ;;  %436 = vmatprep.subr.bf16.mxu1 %v859_v6  ;;  %v865_v10 = vld [vmem:[%s1195_s1 + $0x4c] ss:$16 sps:$4 sm:$0xff]   ;;  %v867_v11 = vld [vmem:[%s1195_s1 + $0x40] ss:$16 sps:$4 sm:$0xff]   ;;  %v868_v12 = vld [vmem:[%s1195_s1 + $0x48] ss:$16 sps:$4 sm:$0xff]  }
   0x5   :  { %v869_v13 = vld [vmem:[%s1195_s1 + $0x64] ss:$16 sps:$4 sm:$0xff]   ;;  %v871_v14 = vld [vmem:[%s1195_s1 + $0x6c] ss:$16 sps:$4 sm:$0xff]   ;;  %v873_v15 = vld [vmem:[%s1195_s1 + $0x60] ss:$16 sps:$4 sm:$0xff]  }
   0x6   :  { %v874_v16 = vld [vmem:[%s1195_s1 + $0x68] ss:$16 sps:$4 sm:$0xff]   ;;  %v875_v17 = vld [vmem:[%s1196_s0] sm:$0xff]   ;;  %v877_v19 = vld [vmem:[%s1196_s0 + $0x10] sm:$0xff]  }
   0x7   :  { %324 = vmatpush1.bf16.msra.mxu0 %v861_v7  ;;  %437 = vmatpush1.bf16.msra.mxu1 %v862_v8  ;;  %v876_v18 = vld [vmem:[%s1196_s0 + $0x8] sm:$0xff]   ;;  %v878_v20 = vld [vmem:[%s1196_s0 + $0x18] sm:$0xff]   ;;  %v879_v21 = vld [vmem:[%s1196_s0 + $0x20] sm:$0xff]  }
   0x8   :  { %325 = vmatprep.subr.bf16.mxu0 %v863_v9  ;;  %438 = vmatprep.subr.bf16.mxu1 %v865_v10  ;;  %v880_v22 = vld [vmem:[%s1196_s0 + $0x28] sm:$0xff]   ;;  %v881_v23 = vld [vmem:[%s1196_s0 + $0x30] sm:$0xff]   ;;  %v882_v24 = vld [vmem:[%s1196_s0 + $0x38] sm:$0xff]  }
   0xb   :  { %326 = vmatpush1.bf16.msra.mxu0 %v867_v11  ;;  %439 = vmatpush1.bf16.msra.mxu1 %v868_v12 }
   0xc   :  { %327 = vmatprep.subr.bf16.mxu0 %v869_v13  ;;  %440 = vmatprep.subr.bf16.mxu1 %v871_v14 }
   0xf   :  { %328 = vmatpush1.bf16.msra.mxu0 %v873_v15  ;;  %441 = vmatpush1.bf16.msra.mxu1 %v874_v16 }
  0x12   :  { %834 = vmatmul.mubr.msk.bf16.vlgmr.msra.gmra.mrb[0].mxu0 %vm296_vm0, %v875_v17  ;;  %842 = vmatmul.mubr.msk.bf16.vlgmr.msra.gmra.mrb[0].mxu1 %vm296_vm0, %v875_v17 }
  0x13   :  { %363 = vmatprep.mubr.bf16.mxu0 %v883_v1  ;;  %476 = vmatprep.mubr.bf16.mxu1 %v883_v1 }
  0x1a   :  { %835 = vmatmul.mubr.msk.bf16.gmra.mrb[4].mxu0 %vm296_vm0, %v876_v18  ;;  %843 = vmatmul.mubr.msk.bf16.gmra.mrb[4].mxu1 %vm296_vm0, %v876_v18 }
  0x1b   :  { %373 = vmatprep.mubr.bf16.mxu0 %v883_v1  ;;  %486 = vmatprep.mubr.bf16.mxu1 %v883_v1 }
  0x22   :  { %836 = vmatmul.mubr.msk.bf16.gmra.mrb[8].mxu0 %vm296_vm0, %v877_v19  ;;  %844 = vmatmul.mubr.msk.bf16.gmra.mrb[8].mxu1 %vm296_vm0, %v877_v19 }
  0x23   :  { %383 = vmatprep.mubr.bf16.mxu0 %v883_v1  ;;  %496 = vmatprep.mubr.bf16.mxu1 %v883_v1 }
  0x2a   :  { %837 = vmatmul.mubr.msk.bf16.gmra.mrb[12].mxu0 %vm296_vm0, %v878_v20  ;;  %845 = vmatmul.mubr.msk.bf16.gmra.mrb[12].mxu1 %vm296_vm0, %v878_v20 }
  0x2b   :  { %393 = vmatprep.mubr.bf16.mxu0 %v883_v1  ;;  %506 = vmatprep.mubr.bf16.mxu1 %v883_v1 }
  0x32   :  { %838 = vmatmul.mubr.msk.bf16.gmra.mrb[16].mxu0 %vm296_vm0, %v879_v21  ;;  %846 = vmatmul.mubr.msk.bf16.gmra.mrb[16].mxu1 %vm296_vm0, %v879_v21 }
  0x33   :  { %403 = vmatprep.mubr.bf16.mxu0 %v883_v1  ;;  %516 = vmatprep.mubr.bf16.mxu1 %v883_v1 }
  0x3a   :  { %839 = vmatmul.mubr.msk.bf16.gmra.mrb[20].mxu0 %vm296_vm0, %v880_v22  ;;  %847 = vmatmul.mubr.msk.bf16.gmra.mrb[20].mxu1 %vm296_vm0, %v880_v22 }
  0x3b   :  { %413 = vmatprep.mubr.bf16.mxu0 %v883_v1  ;;  %526 = vmatprep.mubr.bf16.mxu1 %v883_v1 }
  0x42   :  { %840 = vmatmul.mubr.msk.bf16.gmra.mrb[24].mxu0 %vm296_vm0, %v881_v23  ;;  %848 = vmatmul.mubr.msk.bf16.gmra.mrb[24].mxu1 %vm296_vm0, %v881_v23 }
  0x43   :  { %423 = vmatprep.mubr.bf16.mxu0 %v883_v1  ;;  %536 = vmatprep.mubr.bf16.mxu1 %v883_v1 }
  0x4a   :  { %841 = vmatmul.mubr.msk.bf16.gmra.mrb[28].mxu0 %vm296_vm0, %v882_v24  ;;  %849 = vmatmul.mubr.msk.bf16.gmra.mrb[28].mxu1 %vm296_vm0, %v882_v24 }
  0xe5   :  { %v355_v25 = vpop.f32.mrb[0].mxu0  ;;  %v468_v26 = vpop.f32.mrb[0].mxu1 }
  0xe6   :  { %742 = vst [vmem:[%s1197_s2] sm:$0xff] %v355_v25  ;;  %744 = vst [vmem:[%s1197_s2 + $0x10] sm:$0xff] %v468_v26  ;;  %v357_v27 = vpop.f32.mrb[1].mxu0  ;;  %v470_v28 = vpop.f32.mrb[1].mxu1 }
  0xe7   :  { %743 = vst [vmem:[%s1197_s2 + $0x8] sm:$0xff] %v357_v27  ;;  %745 = vst [vmem:[%s1197_s2 + $0x18] sm:$0xff] %v470_v28  ;;  %v359_v29 = vpop.f32.mrb[2].mxu0  ;;  %v472_v30 = vpop.f32.mrb[2].mxu1 }
  0xe8   :  { %746 = vst [vmem:[%s1197_s2 + $0x20] sm:$0xff] %v359_v29  ;;  %748 = vst [vmem:[%s1197_s2 + $0x30] sm:$0xff] %v472_v30  ;;  %v361_v31 = vpop.f32.mrb[3].mxu0  ;;  %v474_v32 = vpop.f32.mrb[3].mxu1 }
  0xe9   :  { %747 = vst [vmem:[%s1197_s2 + $0x28] sm:$0xff] %v361_v31  ;;  %749 = vst [vmem:[%s1197_s2 + $0x38] sm:$0xff] %v474_v32 }
  0xed   :  { %v365_v33 = vpop.f32.mrb[4].mxu0  ;;  %v478_v34 = vpop.f32.mrb[4].mxu1 }
  0xee   :  { %750 = vst [vmem:[%s1197_s2 + $0x40] sm:$0xff] %v365_v33  ;;  %752 = vst [vmem:[%s1197_s2 + $0x50] sm:$0xff] %v478_v34  ;;  %v367_v35 = vpop.f32.mrb[5].mxu0  ;;  %v480_v36 = vpop.f32.mrb[5].mxu1 }
  0xef   :  { %751 = vst [vmem:[%s1197_s2 + $0x48] sm:$0xff] %v367_v35  ;;  %753 = vst [vmem:[%s1197_s2 + $0x58] sm:$0xff] %v480_v36  ;;  %v369_v37 = vpop.f32.mrb[6].mxu0  ;;  %v482_v38 = vpop.f32.mrb[6].mxu1 }
  0xf0   :  { %754 = vst [vmem:[%s1197_s2 + $0x60] sm:$0xff] %v369_v37  ;;  %756 = vst [vmem:[%s1197_s2 + $0x70] sm:$0xff] %v482_v38  ;;  %v371_v39 = vpop.f32.mrb[7].mxu0  ;;  %v484_v40 = vpop.f32.mrb[7].mxu1 }
  0xf1   :  { %755 = vst [vmem:[%s1197_s2 + $0x68] sm:$0xff] %v371_v39  ;;  %757 = vst [vmem:[%s1197_s2 + $0x78] sm:$0xff] %v484_v40 }
  0xf5   :  { %v375_v41 = vpop.f32.mrb[8].mxu0  ;;  %v488_v42 = vpop.f32.mrb[8].mxu1 }
  0xf6   :  { %758 = vst [vmem:[%s1197_s2 + $0x80] sm:$0xff] %v375_v41  ;;  %760 = vst [vmem:[%s1197_s2 + $0x90] sm:$0xff] %v488_v42  ;;  %v377_v43 = vpop.f32.mrb[9].mxu0  ;;  %v490_v44 = vpop.f32.mrb[9].mxu1 }
  0xf7   :  { %759 = vst [vmem:[%s1197_s2 + $0x88] sm:$0xff] %v377_v43  ;;  %761 = vst [vmem:[%s1197_s2 + $0x98] sm:$0xff] %v490_v44  ;;  %v379_v45 = vpop.f32.mrb[10].mxu0  ;;  %v492_v46 = vpop.f32.mrb[10].mxu1 }
  0xf8   :  { %762 = vst [vmem:[%s1197_s2 + $0xa0] sm:$0xff] %v379_v45  ;;  %764 = vst [vmem:[%s1197_s2 + $0xb0] sm:$0xff] %v492_v46  ;;  %v381_v47 = vpop.f32.mrb[11].mxu0  ;;  %v494_v48 = vpop.f32.mrb[11].mxu1 }
  0xf9   :  { %763 = vst [vmem:[%s1197_s2 + $0xa8] sm:$0xff] %v381_v47  ;;  %765 = vst [vmem:[%s1197_s2 + $0xb8] sm:$0xff] %v494_v48 }
  0xfd   :  { %v385_v49 = vpop.f32.mrb[12].mxu0  ;;  %v498_v50 = vpop.f32.mrb[12].mxu1 }
  0xfe   :  { %766 = vst [vmem:[%s1197_s2 + $0xc0] sm:$0xff] %v385_v49  ;;  %768 = vst [vmem:[%s1197_s2 + $0xd0] sm:$0xff] %v498_v50  ;;  %v387_v51 = vpop.f32.mrb[13].mxu0  ;;  %v500_v52 = vpop.f32.mrb[13].mxu1 }
  0xff   :  { %767 = vst [vmem:[%s1197_s2 + $0xc8] sm:$0xff] %v387_v51  ;;  %769 = vst [vmem:[%s1197_s2 + $0xd8] sm:$0xff] %v500_v52  ;;  %v389_v53 = vpop.f32.mrb[14].mxu0  ;;  %v502_v54 = vpop.f32.mrb[14].mxu1 }
 0x100   :  { %770 = vst [vmem:[%s1197_s2 + $0xe0] sm:$0xff] %v389_v53  ;;  %772 = vst [vmem:[%s1197_s2 + $0xf0] sm:$0xff] %v502_v54  ;;  %v391_v55 = vpop.f32.mrb[15].mxu0  ;;  %v504_v56 = vpop.f32.mrb[15].mxu1 }
 0x101   :  { %771 = vst [vmem:[%s1197_s2 + $0xe8] sm:$0xff] %v391_v55  ;;  %773 = vst [vmem:[%s1197_s2 + $0xf8] sm:$0xff] %v504_v56 }
 0x105   :  { %v395_v57 = vpop.f32.mrb[16].mxu0  ;;  %v508_v58 = vpop.f32.mrb[16].mxu1 }
 0x106   :  { %774 = vst [vmem:[%s1197_s2 + $0x100] sm:$0xff] %v395_v57  ;;  %776 = vst [vmem:[%s1197_s2 + $0x110] sm:$0xff] %v508_v58  ;;  %v397_v59 = vpop.f32.mrb[17].mxu0  ;;  %v510_v60 = vpop.f32.mrb[17].mxu1 }
 0x107   :  { %775 = vst [vmem:[%s1197_s2 + $0x108] sm:$0xff] %v397_v59  ;;  %777 = vst [vmem:[%s1197_s2 + $0x118] sm:$0xff] %v510_v60  ;;  %v399_v61 = vpop.f32.mrb[18].mxu0  ;;  %v512_v62 = vpop.f32.mrb[18].mxu1 }
 0x108   :  { %778 = vst [vmem:[%s1197_s2 + $0x120] sm:$0xff] %v399_v61  ;;  %780 = vst [vmem:[%s1197_s2 + $0x130] sm:$0xff] %v512_v62  ;;  %v401_v63 = vpop.f32.mrb[19].mxu0  ;;  %v514_v0 = vpop.f32.mrb[19].mxu1 }
 0x109   :  { %779 = vst [vmem:[%s1197_s2 + $0x128] sm:$0xff] %v401_v63  ;;  %781 = vst [vmem:[%s1197_s2 + $0x138] sm:$0xff] %v514_v0 }
 0x10d   :  { %v405_v1 = vpop.f32.mrb[20].mxu0  ;;  %v518_v2 = vpop.f32.mrb[20].mxu1 }
 0x10e   :  { %782 = vst [vmem:[%s1197_s2 + $0x140] sm:$0xff] %v405_v1  ;;  %784 = vst [vmem:[%s1197_s2 + $0x150] sm:$0xff] %v518_v2  ;;  %v407_v3 = vpop.f32.mrb[21].mxu0  ;;  %v520_v4 = vpop.f32.mrb[21].mxu1 }
 0x10f   :  { %783 = vst [vmem:[%s1197_s2 + $0x148] sm:$0xff] %v407_v3  ;;  %785 = vst [vmem:[%s1197_s2 + $0x158] sm:$0xff] %v520_v4  ;;  %v409_v5 = vpop.f32.mrb[22].mxu0  ;;  %v522_v6 = vpop.f32.mrb[22].mxu1 }
 0x110   :  { %786 = vst [vmem:[%s1197_s2 + $0x160] sm:$0xff] %v409_v5  ;;  %788 = vst [vmem:[%s1197_s2 + $0x170] sm:$0xff] %v522_v6  ;;  %v411_v7 = vpop.f32.mrb[23].mxu0  ;;  %v524_v8 = vpop.f32.mrb[23].mxu1 }
 0x111   :  { %787 = vst [vmem:[%s1197_s2 + $0x168] sm:$0xff] %v411_v7  ;;  %789 = vst [vmem:[%s1197_s2 + $0x178] sm:$0xff] %v524_v8 }
 0x115   :  { %v415_v9 = vpop.f32.mrb[24].mxu0  ;;  %v528_v10 = vpop.f32.mrb[24].mxu1 }
 0x116   :  { %790 = vst [vmem:[%s1197_s2 + $0x180] sm:$0xff] %v415_v9  ;;  %792 = vst [vmem:[%s1197_s2 + $0x190] sm:$0xff] %v528_v10  ;;  %v417_v11 = vpop.f32.mrb[25].mxu0  ;;  %v530_v12 = vpop.f32.mrb[25].mxu1 }
 0x117   :  { %791 = vst [vmem:[%s1197_s2 + $0x188] sm:$0xff] %v417_v11  ;;  %793 = vst [vmem:[%s1197_s2 + $0x198] sm:$0xff] %v530_v12  ;;  %v419_v13 = vpop.f32.mrb[26].mxu0  ;;  %v532_v14 = vpop.f32.mrb[26].mxu1 }
 0x118   :  { %794 = vst [vmem:[%s1197_s2 + $0x1a0] sm:$0xff] %v419_v13  ;;  %796 = vst [vmem:[%s1197_s2 + $0x1b0] sm:$0xff] %v532_v14  ;;  %v421_v15 = vpop.f32.mrb[27].mxu0  ;;  %v534_v16 = vpop.f32.mrb[27].mxu1 }
 0x119   :  { %795 = vst [vmem:[%s1197_s2 + $0x1a8] sm:$0xff] %v421_v15  ;;  %797 = vst [vmem:[%s1197_s2 + $0x1b8] sm:$0xff] %v534_v16 }
 0x11d   :  { %v425_v17 = vpop.f32.mrb[28].mxu0  ;;  %v538_v18 = vpop.f32.mrb[28].mxu1 }
 0x11e   :  { %798 = vst [vmem:[%s1197_s2 + $0x1c0] sm:$0xff] %v425_v17  ;;  %800 = vst [vmem:[%s1197_s2 + $0x1d0] sm:$0xff] %v538_v18  ;;  %v427_v19 = vpop.f32.mrb[29].mxu0  ;;  %v540_v20 = vpop.f32.mrb[29].mxu1 }
 0x11f   :  { %799 = vst [vmem:[%s1197_s2 + $0x1c8] sm:$0xff] %v427_v19  ;;  %801 = vst [vmem:[%s1197_s2 + $0x1d8] sm:$0xff] %v540_v20  ;;  %v429_v21 = vpop.f32.mrb[30].mxu0  ;;  %v542_v22 = vpop.f32.mrb[30].mxu1 }
 0x120   :  { %802 = vst [vmem:[%s1197_s2 + $0x1e0] sm:$0xff] %v429_v21  ;;  %804 = vst [vmem:[%s1197_s2 + $0x1f0] sm:$0xff] %v542_v22  ;;  %v431_v23 = vpop.f32.mrb[31].mxu0  ;;  %v544_v24 = vpop.f32.mrb[31].mxu1 }
 0x121   :  { %803 = vst [vmem:[%s1197_s2 + $0x1e8] sm:$0xff] %v431_v23  ;;  %805 = vst [vmem:[%s1197_s2 + $0x1f8] sm:$0xff] %v544_v24 }

// kernel: dccgan_generator_forward.24
= control target key start
LH: loop header
LB: loop body
LE: loop exit
PB: predicated region body
PF: predicated region fallthrough
CT: control target
= control target key end

     0   :  { %vm12_vm0 = vcmask 254976   ;;  %vm79_vm1 = vcmask 261120   ;;  %v420_v0 = vmov 0.0   ;;  %vm410_vm2 = vcmask 1040384   ;;  %s1294_s0 = inlined_call_operand.vmem [shape: f32[512,32], index: 0, kind: input, shape index: {}]   ;;  %s1295_s1 = inlined_call_operand.vmem [shape: f32[2,32], index: 1, kind: output, shape index: {}]  }
   0x1   :  { %13 = vst.msk [vmem:[%s1295_s1] sm:$0x3] %vm12_vm0, %v420_v0  ;;  %v438_v1 = vld [vmem:[%s1294_s0] sm:$0xff]  ;;  %v443_v2 = vld [vmem:[%s1294_s0 + $0x8] sm:$0xff]  ;;  %v448_v3 = vld [vmem:[%s1294_s0 + $0x10] sm:$0xff] }
   0x2   :  { %v80_v4 = vsel %vm79_vm1, %v438_v1, 0.0  ;;  %v81_v5 = vsel %vm79_vm1, %v443_v2, 0.0  ;;  %v83_v6 = vsel %vm79_vm1, %v448_v3, 0.0  ;;  %v459_v7 = vld [vmem:[%s1294_s0 + $0x18] sm:$0xff]  ;;  %v466_v10 = vld [vmem:[%s1294_s0 + $0x20] sm:$0xff]  ;;  %v473_v13 = vld [vmem:[%s1294_s0 + $0x28] sm:$0xff] }
   0x3   :  { %v82_v8 = vadd.f32 %v81_v5, %v80_v4  ;;  %v85_v9 = vsel %vm79_vm1, %v459_v7, 0.0  ;;  %v87_v12 = vsel %vm79_vm1, %v466_v10, 0.0  ;;  %v89_v15 = vsel %vm79_vm1, %v473_v13, 0.0  ;;  %v480_v16 = vld [vmem:[%s1294_s0 + $0x30] sm:$0xff]  ;;  %v485_v18 = vld [vmem:[%s1294_s0 + $0x38] sm:$0xff]  ;;  %v490_v19 = vld [vmem:[%s1294_s0 + $0x40] sm:$0xff] }
   0x4   :  { %v91_v20 = vsel %vm79_vm1, %v480_v16, 0.0  ;;  %v497_v21 = vld [vmem:[%s1294_s0 + $0x48] sm:$0xff]  ;;  %v502_v22 = vld [vmem:[%s1294_s0 + $0x50] sm:$0xff]  ;;  %v507_v23 = vld [vmem:[%s1294_s0 + $0x58] sm:$0xff]  ;;  %v93_v25 = vsel %vm79_vm1, %v485_v18, 0.0  ;;  %v95_v26 = vsel %vm79_vm1, %v490_v19, 0.0 }
   0x5   :  { %v84_v11 = vadd.f32 %v83_v6, %v82_v8  ;;  %v516_v27 = vld [vmem:[%s1294_s0 + $0x108] sm:$0xff]  ;;  %v521_v28 = vld [vmem:[%s1294_s0 + $0x110] sm:$0xff]  ;;  %v526_v29 = vld [vmem:[%s1294_s0 + $0x118] sm:$0xff]  ;;  %v97_v30 = vsel %vm79_vm1, %v497_v21, 0.0  ;;  %v99_v31 = vsel %vm79_vm1, %v502_v22, 0.0  ;;  %v534_v32 = vsel %vm79_vm1, %v507_v23, 0.0 }
   0x6   :  { %v539_v33 = vld [vmem:[%s1294_s0 + $0x120] sm:$0xff]  ;;  %v544_v34 = vld [vmem:[%s1294_s0 + $0x128] sm:$0xff]  ;;  %v549_v35 = vld [vmem:[%s1294_s0 + $0x130] sm:$0xff]  ;;  %v553_v37 = vsel %vm79_vm1, %v516_v27, 0.0  ;;  %v557_v38 = vsel %vm79_vm1, %v521_v28, 0.0  ;;  %v561_v39 = vsel %vm79_vm1, %v526_v29, 0.0 }
   0x7   :  { %v86_v14 = vadd.f32 %v85_v9, %v84_v11  ;;  %1314 = vst [vmem:[#allocation2_spill] sm:$0xff] %v553_v37  ;;  %1315 = vst [vmem:[#allocation3_spill] sm:$0xff] %v557_v38  ;;  %v566_v40 = vld [vmem:[%s1294_s0 + $0x138] sm:$0xff]  ;;  %v571_v41 = vld [vmem:[%s1294_s0 + $0x140] sm:$0xff]  ;;  %v580_v43 = vsel %vm79_vm1, %v539_v33, 0.0  ;;  %v584_v44 = vsel %vm79_vm1, %v544_v34, 0.0  ;;  %v215_v37 = vmul.f32 %v448_v3, %v448_v3 }
   0x8   :  { %1316 = vst [vmem:[#allocation4_spill] sm:$0xff] %v561_v39  ;;  %v576_v42 = vld [vmem:[%s1294_s0 + $0x148] sm:$0xff]  ;;  %1317 = vst [vmem:[#allocation5_spill] sm:$0xff] %v580_v43  ;;  %v588_v45 = vsel %vm79_vm1, %v549_v35, 0.0  ;;  %v593_v46 = vld [vmem:[%s1294_s0 + $0x150] sm:$0xff]  ;;  %v607_v50 = vsel %vm79_vm1, %v566_v40, 0.0 }
   0x9   :  { %v88_v17 = vadd.f32 %v87_v12, %v86_v14  ;;  %1318 = vst [vmem:[#allocation6_spill] sm:$0xff] %v584_v44  ;;  %1319 = vst [vmem:[#allocation7_spill] sm:$0xff] %v588_v45  ;;  %v598_v47 = vld [vmem:[%s1294_s0 + $0x158] sm:$0xff]  ;;  %v603_v48 = vld [vmem:[%s1294_s0 + $0x160] sm:$0xff]  ;;  %v611_v51 = vsel %vm79_vm1, %v571_v41, 0.0  ;;  %v615_v52 = vsel %vm79_vm1, %v576_v42, 0.0 }
   0xa   :  { %1320 = vst [vmem:[#allocation8_spill] sm:$0xff] %v607_v50  ;;  %1321 = vst [vmem:[#allocation9_spill] sm:$0xff] %v611_v51  ;;  %v620_v53 = vld [vmem:[%s1294_s0 + $0x168] sm:$0xff]  ;;  %v625_v54 = vld [vmem:[%s1294_s0 + $0x170] sm:$0xff]  ;;  %v634_v56 = vsel %vm79_vm1, %v593_v46, 0.0  ;;  %v638_v57 = vsel %vm79_vm1, %v598_v47, 0.0 }
   0xb   :  { %v90_v24 = vadd.f32 %v89_v15, %v88_v17  ;;  %1322 = vst [vmem:[#allocation10_spill] sm:$0xff] %v615_v52  ;;  %v630_v55 = vld [vmem:[%s1294_s0 + $0x178] sm:$0xff]  ;;  %1323 = vst [vmem:[#allocation11_spill] sm:$0xff] %v634_v56  ;;  %v642_v58 = vsel %vm79_vm1, %v603_v48, 0.0  ;;  %v647_v59 = vld [vmem:[%s1294_s0 + $0x180] sm:$0xff]  ;;  %v661_v63 = vsel %vm79_vm1, %v620_v53, 0.0 }
   0xc   :  { %1324 = vst [vmem:[#allocation12_spill] sm:$0xff] %v638_v57  ;;  %1325 = vst [vmem:[#allocation13_spill] sm:$0xff] %v642_v58  ;;  %v652_v60 = vld [vmem:[%s1294_s0 + $0x188] sm:$0xff]  ;;  %v657_v61 = vld [vmem:[%s1294_s0 + $0x190] sm:$0xff]  ;;  %v665_v0 = vsel %vm79_vm1, %v625_v54, 0.0  ;;  %v669_v4 = vsel %vm79_vm1, %v630_v55, 0.0 }
   0xd   :  { %v92_v36 = vadd.f32 %v91_v20, %v90_v24  ;;  %1326 = vst [vmem:[#allocation14_spill] sm:$0xff] %v661_v63  ;;  %1327 = vst [vmem:[#allocation15_spill] sm:$0xff] %v665_v0  ;;  %v674_v5 = vld [vmem:[%s1294_s0 + $0x198] sm:$0xff]  ;;  %v679_v6 = vld [vmem:[%s1294_s0 + $0x1a0] sm:$0xff]  ;;  %v688_v9 = vsel %vm79_vm1, %v647_v59, 0.0  ;;  %v692_v11 = vsel %vm79_vm1, %v652_v60, 0.0 }
   0xe   :  { %1328 = vst [vmem:[#allocation16_spill] sm:$0xff] %v669_v4  ;;  %v684_v8 = vld [vmem:[%s1294_s0 + $0x1a8] sm:$0xff]  ;;  %1329 = vst [vmem:[#allocation17_spill] sm:$0xff] %v688_v9  ;;  %v696_v12 = vsel %vm79_vm1, %v657_v61, 0.0  ;;  %v701_v14 = vld [vmem:[%s1294_s0 + $0x60] sm:$0xff] }
   0xf   :  { %v94_v49 = vadd.f32 %v93_v25, %v92_v36  ;;  %1330 = vst [vmem:[#allocation18_spill] sm:$0xff] %v692_v11  ;;  %1331 = vst [vmem:[#allocation19_spill] sm:$0xff] %v696_v12  ;;  %v706_v15 = vld [vmem:[%s1294_s0 + $0x1b0] sm:$0xff]  ;;  %v711_v17 = vld [vmem:[%s1294_s0 + $0x1b8] sm:$0xff]  ;;  %v720_v25 = vsel %vm79_vm1, %v674_v5, 0.0  ;;  %v728_v36 = vsel %vm79_vm1, %v684_v8, 0.0 }
  0x10   :  { %v716_v20 = vld [vmem:[%s1294_s0 + $0x1c0] sm:$0xff]  ;;  %1332 = vst [vmem:[#allocation20_spill] sm:$0xff] %v720_v25  ;;  %1334 = vst [vmem:[#allocation22_spill] sm:$0xff] %v728_v36  ;;  %v751_v36 = vsel %vm79_vm1, %v711_v17, 0.0  ;;  %v765_v11 = vld [vmem:[%s1294_s0 + $0x1e8] sm:$0xff] }
  0x11   :  { %v96_v62 = vadd.f32 %v95_v26, %v94_v49  ;;  %v724_v26 = vsel %vm79_vm1, %v679_v6, 0.0  ;;  %v733_v49 = vld [vmem:[%s1294_s0 + $0x1c8] sm:$0xff]  ;;  %1336 = vst [vmem:[#allocation24_spill] sm:$0xff] %v751_v36  ;;  %v755_v25 = vsel %vm79_vm1, %v716_v20, 0.0  ;;  %v760_v12 = vld [vmem:[%s1294_s0 + $0x1e0] sm:$0xff]  ;;  %v787_v0 = vld [vmem:[%s1294_s0 + $0x1f8] sm:$0xff] }
  0x12   :  { %1333 = vst [vmem:[#allocation21_spill] sm:$0xff] %v724_v26  ;;  %v747_v26 = vsel %vm79_vm1, %v706_v15, 0.0  ;;  %1337 = vst [vmem:[#allocation25_spill] sm:$0xff] %v755_v25  ;;  %v774_v9 = vsel %vm79_vm1, %v733_v49, 0.0  ;;  %v809_v58 = vsel %vm79_vm1, %v787_v0, 0.0  ;;  %v838_v56 = vld [vmem:[%s1294_s0 + $0x90] sm:$0xff] }
  0x13   :  { %v98_v24 = vadd.f32 %v97_v30, %v96_v62  ;;  %v738_v30 = vld [vmem:[%s1294_s0 + $0x1d0] sm:$0xff]  ;;  %v743_v62 = vld [vmem:[%s1294_s0 + $0x1d8] sm:$0xff]  ;;  %1335 = vst [vmem:[#allocation23_spill] sm:$0xff] %v747_v26  ;;  %1339 = vst [vmem:[#allocation27_spill] sm:$0xff] %v774_v9  ;;  %v797_v9 = vsel %vm79_vm1, %v765_v11, 0.0 }
  0x14   :  { %v770_v26 = vld [vmem:[%s1294_s0 + $0x1f0] sm:$0xff]  ;;  %v778_v25 = vsel %vm79_vm1, %v738_v30, 0.0  ;;  %v782_v4 = vsel %vm79_vm1, %v743_v62, 0.0  ;;  %1342 = vst [vmem:[#allocation30_spill] sm:$0xff] %v787_v0  ;;  %1344 = vst [vmem:[#allocation32_spill] sm:$0xff] %v797_v9  ;;  %v843_v52 = vld [vmem:[%s1294_s0 + $0x98] sm:$0xff] }
  0x15   :  { %1338 = vst [vmem:[#allocation26_spill] sm:$0xff] %v770_v26  ;;  %v100_v36 = vadd.f32 %v99_v31, %v98_v24  ;;  %1340 = vst [vmem:[#allocation28_spill] sm:$0xff] %v778_v25  ;;  %v103_v31 = vsel %vm79_vm1, %v701_v14, 0.0  ;;  %v793_v24 = vsel %vm79_vm1, %v760_v12, 0.0  ;;  %v801_v25 = vsel %vm79_vm1, %v770_v26, 0.0  ;;  %v28_v9 = vld [vmem:[%s1294_s0 + $0x70] sm:$0xff] }
  0x16   :  { %1341 = vst [vmem:[#allocation29_spill] sm:$0xff] %v782_v4  ;;  %1343 = vst [vmem:[#allocation31_spill] sm:$0xff] %v793_v24  ;;  %v27_v4 = vld [vmem:[%s1294_s0 + $0x68] sm:$0xff]  ;;  %v848_v51 = vld [vmem:[%s1294_s0 + $0xa0] sm:$0xff]  ;;  %v117_v39 = vsel %vm79_vm1, %v843_v52, 0.0 }
  0x17   :  { %1345 = vst [vmem:[#allocation33_spill] sm:$0xff] %v801_v25  ;;  %v102_v63 = vadd.f32 %v534_v32, %v100_v36  ;;  %1346 = vst [vmem:[#allocation34_spill] sm:$0xff] %v809_v58  ;;  %v105_v24 = vsel %vm79_vm1, %v27_v4, 0.0  ;;  %v818_v25 = vld [vmem:[%s1294_s0 + $0x78] sm:$0xff]  ;;  %v823_v32 = vld [vmem:[%s1294_s0 + $0x80] sm:$0xff]  ;;  %v107_v58 = vsel %vm79_vm1, %v28_v9, 0.0 }
  0x18   :  { %1347 = vst [vmem:[#allocation35_spill] sm:$0xff] %v818_v25  ;;  %1348 = vst [vmem:[#allocation36_spill] sm:$0xff] %v823_v32  ;;  %v828_v36 = vld [vmem:[%s1294_s0 + $0x88] sm:$0xff]  ;;  %v864_v43 = vld [vmem:[%s1294_s0 + $0xb0] sm:$0xff]  ;;  %v119_v38 = vsel %vm79_vm1, %v848_v51, 0.0 }
  0x19   :  { %v104_v57 = vadd.f32 %v103_v31, %v102_v63  ;;  %1349 = vst [vmem:[#allocation37_spill] sm:$0xff] %v828_v36  ;;  %v213_v63 = vmul.f32 %v438_v1, %v438_v1  ;;  %v214_v31 = vmul.f32 %v443_v2, %v443_v2  ;;  %1350 = vst [vmem:[#allocation38_spill] sm:$0xff] %v838_v56  ;;  %v109_v1 = vsel %vm79_vm1, %v818_v25, 0.0  ;;  %v859_v44 = vld [vmem:[%s1294_s0 + $0xa8] sm:$0xff]  ;;  %v905_v0 = vld [vmem:[%s1294_s0 + $0xd8] sm:$0xff] }
  0x1a   :  { %1351 = vst [vmem:[#allocation39_spill] sm:$0xff] %v843_v52  ;;  %1352 = vst [vmem:[#allocation40_spill] sm:$0xff] %v848_v51  ;;  %v111_v2 = vsel %vm79_vm1, %v823_v32, 0.0  ;;  %v113_v45 = vsel %vm79_vm1, %v828_v36, 0.0  ;;  %v882_v36 = vld [vmem:[%s1294_s0 + $0xc0] sm:$0xff]  ;;  %v887_v32 = vld [vmem:[%s1294_s0 + $0xc8] sm:$0xff]  ;;  %v216_v25 = vmul.f32 %v459_v7, %v459_v7 }
  0x1b   :  { %v106_v50 = vadd.f32 %v105_v24, %v104_v57  ;;  %1353 = vst [vmem:[#allocation41_spill] sm:$0xff] %v859_v44  ;;  %1354 = vst [vmem:[#allocation42_spill] sm:$0xff] %v864_v43  ;;  %v869_v57 = vld [vmem:[%s1294_s0 + $0xb8] sm:$0xff]  ;;  %v115_v24 = vsel %vm79_vm1, %v838_v56, 0.0  ;;  %v892_v52 = vld [vmem:[%s1294_s0 + $0xd0] sm:$0xff]  ;;  %v121_v51 = vsel %vm79_vm1, %v859_v44, 0.0 }
  0x1c   :  { %1355 = vst [vmem:[#allocation43_spill] sm:$0xff] %v869_v57  ;;  %1356 = vst [vmem:[#allocation44_spill] sm:$0xff] %v882_v36  ;;  %v898_v3 = vsel %vm79_vm1, %v864_v43, 0.0  ;;  %v910_v26 = vld [vmem:[%s1294_s0 + $0xe0] sm:$0xff]  ;;  %v922_v7 = vsel %vm79_vm1, %v887_v32, 0.0  ;;  %v926_v43 = vsel %vm79_vm1, %v892_v52, 0.0 }
  0x1d   :  { %1357 = vst [vmem:[#allocation45_spill] sm:$0xff] %v887_v32  ;;  %1358 = vst [vmem:[#allocation46_spill] sm:$0xff] %v892_v52  ;;  %v108_v56 = vadd.f32 %v107_v58, %v106_v50  ;;  %v914_v50 = vsel %vm79_vm1, %v869_v57, 0.0  ;;  %v918_v58 = vsel %vm79_vm1, %v882_v36, 0.0  ;;  %v931_v44 = vld [vmem:[%s1294_s0 + $0xe8] sm:$0xff]  ;;  %v936_v57 = vld [vmem:[%s1294_s0 + $0xf0] sm:$0xff]  ;;  %v217_v52 = vmul.f32 %v466_v10, %v466_v10 }
  0x1e   :  { %1359 = vst [vmem:[#allocation47_spill] sm:$0xff] %v905_v0  ;;  %1360 = vst [vmem:[#allocation48_spill] sm:$0xff] %v910_v26  ;;  %v944_v32 = vsel %vm79_vm1, %v910_v26, 0.0  ;;  %v220_v26 = vmul.f32 %v485_v18, %v485_v18  ;;  %v221_v10 = vmul.f32 %v490_v19, %v490_v19  ;;  %v246_v18 = vmul.f32 %v516_v27, %v516_v27 }
  0x1f   :  { %1361 = vst [vmem:[#allocation49_spill] sm:$0xff] %v918_v58  ;;  %1362 = vst [vmem:[#allocation50_spill] sm:$0xff] %v922_v7  ;;  %v110_v36 = vadd.f32 %v109_v1, %v108_v56  ;;  %v940_v58 = vsel %vm79_vm1, %v905_v0, 0.0  ;;  %v954_v7 = vsel %vm79_vm1, %v936_v57, 0.0  ;;  %v218_v56 = vmul.f32 %v473_v13, %v473_v13 }
  0x20   :  { %1363 = vst [vmem:[#allocation51_spill] sm:$0xff] %v926_v43  ;;  %1364 = vst [vmem:[#allocation52_spill] sm:$0xff] %v931_v44  ;;  %v950_v43 = vsel %vm79_vm1, %v931_v44, 0.0  ;;  %v219_v1 = vmul.f32 %v480_v16, %v480_v16  ;;  %v222_v44 = vmul.f32 %v497_v21, %v497_v21  ;;  %v225_v13 = vmul.f32 %v701_v14, %v701_v14 }
  0x21   :  { %1365 = vst [vmem:[#allocation53_spill] sm:$0xff] %v936_v57  ;;  %1366 = vst [vmem:[#allocation54_spill] sm:$0xff] %v954_v7  ;;  %v112_v0 = vadd.f32 %v111_v2, %v110_v36  ;;  %v223_v57 = vmul.f32 %v502_v22, %v502_v22  ;;  %v224_v7 = vmul.f32 %v507_v23, %v507_v23 }
  0x22   :  { %v972_v16 = vmul.f32 %v27_v4, %v27_v4  ;;  %v974_v2 = vmul.f32 %v28_v9, %v28_v9  ;;  %v247_v19 = vmul.f32 %v521_v28, %v521_v28  ;;  %v248_v21 = vmul.f32 %v526_v29, %v526_v29 }
  0x23   :  { %v114_v36 = vadd.f32 %v113_v45, %v112_v0  ;;  %v249_v22 = vmul.f32 %v539_v33, %v539_v33  ;;  %v250_v23 = vmul.f32 %v544_v34, %v544_v34  ;;  %v251_v45 = vmul.f32 %v549_v35, %v549_v35 }
  0x24   :  { %v252_v4 = vmul.f32 %v566_v40, %v566_v40  ;;  %v253_v27 = vmul.f32 %v571_v41, %v571_v41  ;;  %v254_v28 = vmul.f32 %v576_v42, %v576_v42  ;;  %v255_v29 = vmul.f32 %v593_v46, %v593_v46 }
  0x25   :  { %v116_v0 = vadd.f32 %v115_v24, %v114_v36  ;;  %v256_v33 = vmul.f32 %v598_v47, %v598_v47  ;;  %v277_v34 = vsel %vm79_vm1, %v213_v63, 0.0  ;;  %v278_v35 = vsel %vm79_vm1, %v214_v31, 0.0 }
  0x26   :  { %v257_v40 = vmul.f32 %v603_v48, %v603_v48  ;;  %v279_v14 = vadd.f32 %v278_v35, %v277_v34  ;;  %v280_v41 = vsel %vm79_vm1, %v215_v37, 0.0  ;;  %v258_v42 = vmul.f32 %v620_v53, %v620_v53  ;;  %v1368_v34 = vld [vmem:[#allocation30_spill] sm:$0xff] }
  0x27   :  { %v118_v9 = vadd.f32 %v117_v39, %v116_v0  ;;  %v259_v46 = vmul.f32 %v625_v54, %v625_v54  ;;  %v260_v47 = vmul.f32 %v630_v55, %v630_v55  ;;  %v282_v63 = vsel %vm79_vm1, %v216_v25, 0.0  ;;  %v1367_v0 = vld [vmem:[#allocation26_spill] sm:$0xff] }
  0x28   :  { %v261_v39 = vmul.f32 %v647_v59, %v647_v59  ;;  %v262_v48 = vmul.f32 %v652_v60, %v652_v60  ;;  %v281_v31 = vadd.f32 %v280_v41, %v279_v14  ;;  %v263_v37 = vmul.f32 %v657_v61, %v657_v61  ;;  %v1369_v41 = vld [vmem:[#allocation49_spill] sm:$0xff] }
  0x29   :  { %v120_v24 = vadd.f32 %v119_v38, %v118_v9  ;;  %v264_v53 = vmul.f32 %v674_v5, %v674_v5  ;;  %v265_v54 = vmul.f32 %v679_v6, %v679_v6  ;;  %v284_v55 = vsel %vm79_vm1, %v217_v52, 0.0 }
  0x2a   :  { %v266_v38 = vmul.f32 %v684_v8, %v684_v8  ;;  %v267_v59 = vmul.f32 %v706_v15, %v706_v15  ;;  %v283_v60 = vadd.f32 %v282_v63, %v281_v31  ;;  %v268_v36 = vmul.f32 %v711_v17, %v711_v17 }
  0x2b   :  { %v122_v25 = vadd.f32 %v121_v51, %v120_v24  ;;  %v269_v61 = vmul.f32 %v716_v20, %v716_v20  ;;  %v270_v5 = vmul.f32 %v733_v49, %v733_v49  ;;  %v286_v6 = vsel %vm79_vm1, %v218_v56, 0.0 }
  0x2c   :  { %v271_v52 = vmul.f32 %v738_v30, %v738_v30  ;;  %v272_v8 = vmul.f32 %v743_v62, %v743_v62  ;;  %v285_v15 = vadd.f32 %v284_v55, %v283_v60  ;;  %v273_v17 = vmul.f32 %v760_v12, %v760_v12 }
  0x2d   :  { %v124_v51 = vadd.f32 %v898_v3, %v122_v25  ;;  %v274_v20 = vmul.f32 %v765_v11, %v765_v11  ;;  %v275_v49 = vmul.f32 %v1367_v0, %v1367_v0  ;;  %v288_v56 = vsel %vm79_vm1, %v219_v1, 0.0  ;;  %v1371_v25 = vld [vmem:[#allocation51_spill] sm:$0xff] }
  0x2e   :  { %v276_v30 = vmul.f32 %v1368_v34, %v1368_v34  ;;  %v287_v35 = vadd.f32 %v286_v6, %v285_v15  ;;  %v290_v62 = vsel %vm79_vm1, %v220_v26, 0.0  ;;  %v292_v9 = vsel %vm79_vm1, %v221_v10, 0.0  ;;  %v1373_v34 = vld [vmem:[#allocation54_spill] sm:$0xff] }
  0x2f   :  { %v126_v3 = vadd.f32 %v914_v50, %v124_v51  ;;  %v294_v12 = vsel %vm79_vm1, %v222_v44, 0.0  ;;  %v296_v14 = vsel %vm79_vm1, %v223_v57, 0.0  ;;  %v298_v11 = vsel %vm79_vm1, %v224_v7, 0.0  ;;  %v1370_v7 = vld [vmem:[#allocation50_spill] sm:$0xff] }
  0x30   :  { %v289_v24 = vadd.f32 %v288_v56, %v287_v35  ;;  %v300_v1 = vsel %vm79_vm1, %v225_v13, 0.0  ;;  %v1055_v50 = vsel %vm79_vm1, %v246_v18, 0.0  ;;  %v1058_v31 = vsel %vm79_vm1, %v247_v19, 0.0  ;;  %v1372_v56 = vld [vmem:[#allocation35_spill] sm:$0xff] }
  0x31   :  { %v128_v63 = vadd.f32 %v1369_v41, %v126_v3  ;;  %v1061_v26 = vsel %vm79_vm1, %v248_v21, 0.0  ;;  %v1064_v44 = vsel %vm79_vm1, %v249_v22, 0.0  ;;  %v1067_v57 = vsel %vm79_vm1, %v250_v23, 0.0 }
  0x32   :  { %v291_v55 = vadd.f32 %v290_v62, %v289_v24  ;;  %v1071_v13 = vsel %vm79_vm1, %v251_v45, 0.0  ;;  %v1074_v18 = vsel %vm79_vm1, %v252_v4, 0.0  ;;  %v1077_v19 = vsel %vm79_vm1, %v253_v27, 0.0  ;;  %v1374_v62 = vld [vmem:[#allocation36_spill] sm:$0xff] }
  0x33   :  { %v130_v10 = vadd.f32 %v1370_v7, %v128_v63  ;;  %v1080_v21 = vsel %vm79_vm1, %v254_v28, 0.0  ;;  %v1083_v22 = vsel %vm79_vm1, %v255_v29, 0.0  ;;  %v1086_v23 = vsel %vm79_vm1, %v256_v33, 0.0 }
  0x34   :  { %v293_v6 = vadd.f32 %v292_v9, %v291_v55  ;;  %v1090_v45 = vsel %vm79_vm1, %v257_v40, 0.0  ;;  %v1093_v4 = vsel %vm79_vm1, %v258_v42, 0.0  ;;  %v1096_v27 = vsel %vm79_vm1, %v259_v46, 0.0 }
  0x35   :  { %v132_v60 = vadd.f32 %v1371_v25, %v130_v10  ;;  %v1099_v28 = vsel %vm79_vm1, %v260_v47, 0.0  ;;  %v1102_v29 = vsel %vm79_vm1, %v261_v39, 0.0  ;;  %v1105_v33 = vsel %vm79_vm1, %v262_v48, 0.0  ;;  %v1376_v10 = vld [vmem:[#allocation38_spill] sm:$0xff] }
  0x36   :  { %v295_v15 = vadd.f32 %v294_v12, %v293_v6  ;;  %v1109_v40 = vsel %vm79_vm1, %v263_v37, 0.0  ;;  %v1112_v42 = vsel %vm79_vm1, %v264_v53, 0.0  ;;  %v1115_v46 = vsel %vm79_vm1, %v265_v54, 0.0  ;;  %v1377_v25 = vld [vmem:[#allocation2_spill] sm:$0xff] }
  0x37   :  { %v134_v51 = vadd.f32 %v940_v58, %v132_v60  ;;  %v1118_v47 = vsel %vm79_vm1, %v266_v38, 0.0  ;;  %v1121_v39 = vsel %vm79_vm1, %v267_v59, 0.0  ;;  %v1124_v48 = vsel %vm79_vm1, %v268_v36, 0.0 }
  0x38   :  { %v297_v0 = vadd.f32 %v296_v14, %v295_v15  ;;  %v1128_v37 = vsel %vm79_vm1, %v269_v61, 0.0  ;;  %v1131_v53 = vsel %vm79_vm1, %v270_v5, 0.0  ;;  %v1134_v54 = vsel %vm79_vm1, %v271_v52, 0.0 }
  0x39   :  { %v136_v58 = vadd.f32 %v944_v32, %v134_v51  ;;  %v1137_v38 = vsel %vm79_vm1, %v272_v8, 0.0  ;;  %v1140_v59 = vsel %vm79_vm1, %v273_v17, 0.0  ;;  %v1143_v36 = vsel %vm79_vm1, %v274_v20, 0.0  ;;  %v1148_v32 = vld [vmem:[%s1294_s0 + $0xf8] sm:$0xff]  ;;  %v1378_v51 = vld [vmem:[#allocation39_spill] sm:$0xff] }
  0x3a   :  { %v299_v5 = vadd.f32 %v298_v11, %v297_v0  ;;  %v1152_v52 = vsel %vm79_vm1, %v275_v49, 0.0  ;;  %v1155_v8 = vsel %vm79_vm1, %v276_v30, 0.0  ;;  %v141_v17 = vsel %vm79_vm1, %v1148_v32, 0.0 }
  0x3b   :  { %v138_v61 = vadd.f32 %v950_v43, %v136_v58  ;;  %v228_v20 = vmul.f32 %v1372_v56, %v1372_v56  ;;  %v302_v3 = vsel %vm79_vm1, %v972_v16, 0.0  ;;  %v1166_v43 = vld [vmem:[%s1294_s0 + $0x100] sm:$0xff]  ;;  %v229_v9 = vmul.f32 %v1374_v62, %v1374_v62  ;;  %v1375_v16 = vld [vmem:[#allocation37_spill] sm:$0xff]  ;;  %v1379_v58 = vld [vmem:[#allocation3_spill] sm:$0xff] }
  0x3c   :  { %v301_v35 = vadd.f32 %v300_v1, %v299_v5  ;;  %v143_v30 = vsel %vm79_vm1, %v1166_v43, 0.0  ;;  %v304_v12 = vsel %vm79_vm1, %v974_v2, 0.0  ;;  %v230_v41 = vmul.f32 %v1375_v16, %v1375_v16  ;;  %v1380_v5 = vld [vmem:[#allocation40_spill] sm:$0xff]  ;;  %v1383_v62 = vld [vmem:[#allocation5_spill] sm:$0xff] }
  0x3d   :  { %v140_v49 = vadd.f32 %v1373_v34, %v138_v61  ;;  %v306_v63 = vsel %vm79_vm1, %v228_v20, 0.0  ;;  %v231_v1 = vmul.f32 %v1376_v10, %v1376_v10  ;;  %v308_v55 = vsel %vm79_vm1, %v229_v9, 0.0  ;;  %v1381_v20 = vld [vmem:[#allocation4_spill] sm:$0xff] }
  0x3e   :  { %v303_v11 = vadd.f32 %v302_v3, %v301_v35  ;;  %v232_v2 = vmul.f32 %v1378_v51, %v1378_v51  ;;  %v310_v15 = vsel %vm79_vm1, %v230_v41, 0.0  ;;  %v1385_v41 = vld [vmem:[#allocation6_spill] sm:$0xff] }
  0x3f   :  { %v142_v14 = vadd.f32 %v141_v17, %v140_v49  ;;  %v233_v17 = vmul.f32 %v1380_v5, %v1380_v5  ;;  %v312_v56 = vsel %vm79_vm1, %v231_v1, 0.0  ;;  %v1382_v49 = vld [vmem:[#allocation41_spill] sm:$0xff] }
  0x40   :  { %v305_v7 = vadd.f32 %v304_v12, %v303_v11  ;;  %v234_v35 = vmul.f32 %v1382_v49, %v1382_v49 }
  0x41   :  { %v144_v24 = vadd.f32 %v143_v30, %v142_v14  ;;  %v314_v30 = vsel %vm79_vm1, %v232_v2, 0.0  ;;  %v1384_v14 = vld [vmem:[#allocation42_spill] sm:$0xff]  ;;  %v316_v16 = vsel %vm79_vm1, %v233_v17, 0.0 }
  0x42   :  { %v307_v6 = vadd.f32 %v306_v63, %v305_v7  ;;  %v235_v11 = vmul.f32 %v1384_v14, %v1384_v14  ;;  %v1386_v7 = vld [vmem:[#allocation43_spill] sm:$0xff]  ;;  %v318_v1 = vsel %vm79_vm1, %v234_v35, 0.0 }
  0x43   :  { %v146_v60 = vadd.f32 %v1377_v25, %v144_v24  ;;  %v236_v10 = vmul.f32 %v1386_v7, %v1386_v7 }
  0x44   :  { %v309_v61 = vadd.f32 %v308_v55, %v307_v6  ;;  %v1387_v55 = vld [vmem:[#allocation7_spill] sm:$0xff]  ;;  %v1388_v6 = vld [vmem:[#allocation44_spill] sm:$0xff]  ;;  %v320_v2 = vsel %vm79_vm1, %v235_v11, 0.0 }
  0x45   :  { %v148_v0 = vadd.f32 %v1379_v58, %v146_v60  ;;  %v237_v51 = vmul.f32 %v1388_v6, %v1388_v6  ;;  %v322_v17 = vsel %vm79_vm1, %v236_v10, 0.0 }
  0x46   :  { %v311_v34 = vadd.f32 %v310_v15, %v309_v61  ;;  %v1389_v15 = vld [vmem:[#allocation8_spill] sm:$0xff]  ;;  %v1390_v61 = vld [vmem:[#allocation45_spill] sm:$0xff] }
  0x47   :  { %v150_v3 = vadd.f32 %v1381_v20, %v148_v0  ;;  %v238_v5 = vmul.f32 %v1390_v61, %v1390_v61  ;;  %v324_v35 = vsel %vm79_vm1, %v237_v51, 0.0 }
  0x48   :  { %v313_v12 = vadd.f32 %v312_v56, %v311_v34  ;;  %v1391_v56 = vld [vmem:[#allocation9_spill] sm:$0xff]  ;;  %v1392_v34 = vld [vmem:[#allocation46_spill] sm:$0xff] }
  0x49   :  { %v152_v9 = vadd.f32 %v1383_v62, %v150_v3  ;;  %v239_v49 = vmul.f32 %v1392_v34, %v1392_v34  ;;  %v326_v11 = vsel %vm79_vm1, %v238_v5, 0.0 }
  0x4a   :  { %v315_v24 = vadd.f32 %v314_v30, %v313_v12  ;;  %v1393_v30 = vld [vmem:[#allocation10_spill] sm:$0xff]  ;;  %v1394_v12 = vld [vmem:[#allocation47_spill] sm:$0xff] }
  0x4b   :  { %v154_v63 = vadd.f32 %v1385_v41, %v152_v9  ;;  %v240_v14 = vmul.f32 %v1394_v12, %v1394_v12  ;;  %v328_v10 = vsel %vm79_vm1, %v239_v49, 0.0  ;;  %v1402_v49 = vld [vmem:[#allocation15_spill] sm:$0xff]  ;;  %v1403_v12 = vld [vmem:[#allocation16_spill] sm:$0xff] }
  0x4c   :  { %v317_v60 = vadd.f32 %v316_v16, %v315_v24  ;;  %v1395_v16 = vld [vmem:[#allocation11_spill] sm:$0xff]  ;;  %v1396_v24 = vld [vmem:[#allocation48_spill] sm:$0xff] }
  0x4d   :  { %v156_v25 = vadd.f32 %v1387_v55, %v154_v63  ;;  %v241_v7 = vmul.f32 %v1396_v24, %v1396_v24  ;;  %v330_v51 = vsel %vm79_vm1, %v240_v14, 0.0 }
  0x4e   :  { %v319_v0 = vadd.f32 %v318_v1, %v317_v60  ;;  %v1397_v1 = vld [vmem:[#allocation12_spill] sm:$0xff] }
  0x4f   :  { %v158_v58 = vadd.f32 %v1389_v15, %v156_v25  ;;  %v1398_v60 = vld [vmem:[#allocation52_spill] sm:$0xff]  ;;  %v332_v5 = vsel %vm79_vm1, %v241_v7, 0.0  ;;  %v1405_v7 = vld [vmem:[#allocation18_spill] sm:$0xff] }
  0x50   :  { %v321_v3 = vadd.f32 %v320_v2, %v319_v0  ;;  %v242_v6 = vmul.f32 %v1398_v60, %v1398_v60  ;;  %v1399_v2 = vld [vmem:[#allocation13_spill] sm:$0xff] }
  0x51   :  { %v160_v20 = vadd.f32 %v1391_v56, %v158_v58  ;;  %v1400_v0 = vld [vmem:[#allocation53_spill] sm:$0xff] }
  0x52   :  { %v323_v9 = vadd.f32 %v322_v17, %v321_v3  ;;  %v243_v61 = vmul.f32 %v1400_v0, %v1400_v0  ;;  %v1401_v17 = vld [vmem:[#allocation14_spill] sm:$0xff]  ;;  %v244_v3 = vmul.f32 %v1148_v32, %v1148_v32  ;;  %v334_v34 = vsel %vm79_vm1, %v242_v6, 0.0  ;;  %v1407_v6 = vld [vmem:[#allocation20_spill] sm:$0xff] }
  0x53   :  { %v162_v62 = vadd.f32 %v1393_v30, %v160_v20  ;;  %v1409_v0 = vld [vmem:[#allocation22_spill] sm:$0xff] }
  0x54   :  { %v325_v63 = vadd.f32 %v324_v35, %v323_v9  ;;  %v336_v9 = vsel %vm79_vm1, %v243_v61, 0.0 }
  0x55   :  { %v164_v41 = vadd.f32 %v1395_v16, %v162_v62  ;;  %v245_v62 = vmul.f32 %v1166_v43, %v1166_v43  ;;  %v338_v16 = vsel %vm79_vm1, %v244_v3, 0.0  ;;  %v1411_v3 = vld [vmem:[#allocation24_spill] sm:$0xff] }
  0x56   :  { %v327_v25 = vadd.f32 %v326_v11, %v325_v63 }
  0x57   :  { %v166_v55 = vadd.f32 %v1397_v1, %v164_v41  ;;  %v1404_v41 = vld [vmem:[#allocation17_spill] sm:$0xff]  ;;  %v340_v32 = vsel %vm79_vm1, %v245_v62, 0.0  ;;  %v1413_v62 = vld [vmem:[#allocation27_spill] sm:$0xff] }
  0x58   :  { %v329_v58 = vadd.f32 %v328_v10, %v327_v25 }
  0x59   :  { %v168_v15 = vadd.f32 %v1399_v2, %v166_v55  ;;  %v1406_v55 = vld [vmem:[#allocation19_spill] sm:$0xff]  ;;  %v1408_v2 = vld [vmem:[#allocation21_spill] sm:$0xff] }
  0x5a   :  { %v331_v20 = vadd.f32 %v330_v51, %v329_v58 }
  0x5b   :  { %v170_v56 = vadd.f32 %v1401_v17, %v168_v15  ;;  %v1410_v17 = vld [vmem:[#allocation23_spill] sm:$0xff] }
  0x5c   :  { %v333_v30 = vadd.f32 %v332_v5, %v331_v20 }
  0x5d   :  { %v172_v35 = vadd.f32 %v1402_v49, %v170_v56 }
  0x5e   :  { %v335_v11 = vadd.f32 %v334_v34, %v333_v30 }
  0x5f   :  { %v174_v14 = vadd.f32 %v1403_v12, %v172_v35  ;;  %v1412_v35 = vld [vmem:[#allocation25_spill] sm:$0xff]  ;;  %v1414_v12 = vld [vmem:[#allocation28_spill] sm:$0xff] }
  0x60   :  { %v337_v24 = vadd.f32 %v336_v9, %v335_v11  ;;  %v1415_v11 = vld [vmem:[#allocation29_spill] sm:$0xff] }
  0x61   :  { %v176_v63 = vadd.f32 %v1404_v41, %v174_v14  ;;  %v1416_v41 = vld [vmem:[#allocation31_spill] sm:$0xff] }
  0x62   :  { %v339_v1 = vadd.f32 %v338_v16, %v337_v24  ;;  %v1417_v24 = vld [vmem:[#allocation32_spill] sm:$0xff] }
  0x63   :  { %v178_v10 = vadd.f32 %v1405_v7, %v176_v63  ;;  %v1418_v7 = vld [vmem:[#allocation33_spill] sm:$0xff] }
  0x64   :  { %v341_v60 = vadd.f32 %v340_v32, %v339_v1  ;;  %v1419_v1 = vld [vmem:[#allocation34_spill] sm:$0xff] }
  0x65   :  { %v180_v25 = vadd.f32 %v1406_v55, %v178_v10 }
  0x66   :  { %v343_v51 = vadd.f32 %v1055_v50, %v341_v60 }
  0x67   :  { %v182_v43 = vadd.f32 %v1407_v6, %v180_v25 }
  0x68   :  { %v345_v58 = vadd.f32 %v1058_v31, %v343_v51 }
  0x69   :  { %v184_v15 = vadd.f32 %v1408_v2, %v182_v43 }
  0x6a   :  { %v347_v5 = vadd.f32 %v1061_v26, %v345_v58 }
  0x6b   :  { %v186_v61 = vadd.f32 %v1409_v0, %v184_v15 }
  0x6c   :  { %v349_v20 = vadd.f32 %v1064_v44, %v347_v5 }
  0x6d   :  { %v188_v56 = vadd.f32 %v1410_v17, %v186_v61 }
  0x6e   :  { %v351_v49 = vadd.f32 %v1067_v57, %v349_v20 }
  0x6f   :  { %v190_v34 = vadd.f32 %v1411_v3, %v188_v56 }
  0x70   :  { %v353_v50 = vadd.f32 %v1071_v13, %v351_v49 }
  0x71   :  { %v192_v30 = vadd.f32 %v1412_v35, %v190_v34 }
  0x72   :  { %v355_v31 = vadd.f32 %v1074_v18, %v353_v50 }
  0x73   :  { %v194_v9 = vadd.f32 %v1413_v62, %v192_v30 }
  0x74   :  { %v357_v26 = vadd.f32 %v1077_v19, %v355_v31 }
  0x75   :  { %v196_v14 = vadd.f32 %v1414_v12, %v194_v9 }
  0x76   :  { %v359_v44 = vadd.f32 %v1080_v21, %v357_v26 }
  0x77   :  { %v198_v16 = vadd.f32 %v1415_v11, %v196_v14 }
  0x78   :  { %v361_v57 = vadd.f32 %v1083_v22, %v359_v44 }
  0x79   :  { %v200_v63 = vadd.f32 %v1416_v41, %v198_v16 }
  0x7a   :  { %v363_v13 = vadd.f32 %v1086_v23, %v361_v57 }
  0x7b   :  { %v202_v32 = vadd.f32 %v1417_v24, %v200_v63 }
  0x7c   :  { %v365_v18 = vadd.f32 %v1090_v45, %v363_v13 }
  0x7d   :  { %v204_v10 = vadd.f32 %v1418_v7, %v202_v32 }
  0x7e   :  { %v367_v19 = vadd.f32 %v1093_v4, %v365_v18 }
  0x7f   :  { %v206_v55 = vadd.f32 %v1419_v1, %v204_v10 }
  0x80   :  { %v369_v25 = vadd.f32 %v1096_v27, %v367_v19 }
  0x81   :  { %v207_v2 = vrot.slane %v206_v55, 4 }
  0x82   :  { %v371_v21 = vadd.f32 %v1099_v28, %v369_v25 }
  0x84   :  { %v373_v60 = vadd.f32 %v1102_v29, %v371_v21 }
  0x86   :  { %v375_v22 = vadd.f32 %v1105_v33, %v373_v60 }
  0x88   :  { %v377_v6 = vadd.f32 %v1109_v40, %v375_v22  ;;  %v208_v40 = vadd.f32 %v207_v2, %v206_v55 }
  0x8a   :  { %v379_v23 = vadd.f32 %v1112_v42, %v377_v6  ;;  %v209_v15 = vrot.slane %v208_v40, 2 }
  0x8c   :  { %v381_v43 = vadd.f32 %v1115_v46, %v379_v23 }
  0x8e   :  { %v383_v45 = vadd.f32 %v1118_v47, %v381_v43 }
  0x90   :  { %v385_v51 = vadd.f32 %v1121_v39, %v383_v45 }
  0x92   :  { %v387_v4 = vadd.f32 %v1124_v48, %v385_v51  ;;  %v210_v48 = vadd.f32 %v209_v15, %v208_v40 }
  0x94   :  { %v389_v27 = vadd.f32 %v1128_v37, %v387_v4  ;;  %v211_v0 = vrot.slane %v210_v48, 1 }
  0x96   :  { %v391_v28 = vadd.f32 %v1131_v53, %v389_v27  ;;  %v212_v5 = vadd.f32 %v211_v0, %v210_v48 }
  0x98   :  { %v393_v29 = vadd.f32 %v1134_v54, %v391_v28 }
  0x9a   :  { %v395_v33 = vadd.f32 %v1137_v38, %v393_v29  ;;  %v78_v38 = vld [vmem:[%s1295_s1] sm:$0x3] }
  0x9c   :  { %v397_v42 = vadd.f32 %v1140_v59, %v395_v33 }
  0x9e   :  { %v399_v46 = vadd.f32 %v1143_v36, %v397_v42 }
  0xa0   :  { %v401_v47 = vadd.f32 %v1152_v52, %v399_v46 }
  0xa2   :  { %v403_v39 = vadd.f32 %v1155_v8, %v401_v47 }
  0xa4   :  { %v404_v58 = vrot.slane %v403_v39, 4 }
  0xa6   :  { %v405_v37 = vadd.f32 %v404_v58, %v403_v39 }
  0xa8   :  { %v406_v53 = vrot.slane %v405_v37, 2 }
  0xaa   :  { %v407_v61 = vadd.f32 %v406_v53, %v405_v37 }
  0xac   :  { %v408_v54 = vrot.slane %v407_v61, 1 }
  0xae   :  { %v409_v59 = vadd.f32 %v408_v54, %v407_v61 }
  0xb0   :  { %v411_v36 = vsel %vm410_vm2, %v212_v5, %v409_v59 }
  0xb1   :  { %v412_v17 = vadd.f32 %v411_v36, %v78_v38 }
  0xb3   :  { %414 = vst.msk [vmem:[%s1295_s1] sm:$0x3] %vm12_vm0, %v412_v17 }

// kernel: dccgan_generator_forward.25
= control target key start
LH: loop header
LB: loop body
LE: loop exit
PB: predicated region body
PF: predicated region fallthrough
CT: control target
= control target key end

     0   :  { %vm540_vm0 = vcmask 257024   ;;  %s1345_s0 = inlined_call_operand.vmem [shape: f32[512,32], index: 0, kind: input, shape index: {}]   ;;  %s1346_s1 = inlined_call_operand.vmem [shape: f32[1,32], index: 1, kind: input, shape index: {}]   ;;  %s1347_s2 = inlined_call_operand.vmem [shape: f32[1,32], index: 2, kind: input, shape index: {}]   ;;  %s1348_s3 = inlined_call_operand.vmem [shape: bf16[512,32], index: 3, kind: output, shape index: {}]  }
   0x1   :  { %v14_v0 = vld [vmem:[%s1345_s0] sm:$0xff]  ;;  %v15_v4 = vld [vmem:[%s1345_s0 + $0x8] sm:$0xff]  ;;  %v16_v5 = vld [vmem:[%s1345_s0 + $0x10] sm:$0xff] }
   0x2   :  { %v765_v1 = vld [vmem:[%s1346_s1] ss:$0 sm:$0xff]  ;;  %v17_v6 = vld [vmem:[%s1345_s0 + $0x18] sm:$0xff]  ;;  %v19_v11 = vld [vmem:[%s1345_s0 + $0x28] sm:$0xff] }
   0x3   :  { %v770_v2 = vld [vmem:[%s1347_s2] ss:$0 sm:$0xff]  ;;  %v85_v3 = vmul.f32 %v765_v1, %v14_v0  ;;  %v86_v7 = vmul.f32 %v765_v1, %v15_v4  ;;  %v87_v8 = vmul.f32 %v765_v1, %v16_v5  ;;  %v88_v9 = vmul.f32 %v765_v1, %v17_v6  ;;  %v20_v12 = vld [vmem:[%s1345_s0 + $0x30] sm:$0xff]  ;;  %v21_v17 = vld [vmem:[%s1345_s0 + $0x38] sm:$0xff] }
   0x4   :  { %v18_v10 = vld [vmem:[%s1345_s0 + $0x20] sm:$0xff]  ;;  %v90_v15 = vmul.f32 %v765_v1, %v19_v11  ;;  %v91_v16 = vmul.f32 %v765_v1, %v20_v12  ;;  %v92_v21 = vmul.f32 %v765_v1, %v21_v17  ;;  %v23_v35 = vld [vmem:[%s1345_s0 + $0x48] sm:$0xff]  ;;  %v24_v36 = vld [vmem:[%s1345_s0 + $0x50] sm:$0xff] }
   0x5   :  { %v156_v13 = vadd.f32 %v770_v2, %v85_v3  ;;  %v89_v14 = vmul.f32 %v765_v1, %v18_v10  ;;  %v157_v18 = vadd.f32 %v770_v2, %v86_v7  ;;  %v158_v19 = vadd.f32 %v770_v2, %v87_v8  ;;  %v22_v30 = vld [vmem:[%s1345_s0 + $0x40] sm:$0xff]  ;;  %v25_v37 = vld [vmem:[%s1345_s0 + $0x58] sm:$0xff]  ;;  %v27_v43 = vld [vmem:[%s1345_s0 + $0x68] sm:$0xff] }
   0x6   :  { %v159_v20 = vadd.f32 %v770_v2, %v88_v9  ;;  %v161_v24 = vadd.f32 %v770_v2, %v90_v15  ;;  %v162_v25 = vadd.f32 %v770_v2, %v91_v16  ;;  %v163_v29 = vadd.f32 %v770_v2, %v92_v21  ;;  %v26_v42 = vld [vmem:[%s1345_s0 + $0x60] sm:$0xff]  ;;  %v28_v44 = vld [vmem:[%s1345_s0 + $0x70] sm:$0xff]  ;;  %v29_v49 = vld [vmem:[%s1345_s0 + $0x78] sm:$0xff] }
   0x7   :  { %v220_v22 = vmax.f32 %v156_v13, 0.0  ;;  %v160_v23 = vadd.f32 %v770_v2, %v89_v14  ;;  %v221_v26 = vmax.f32 %v157_v18, 0.0  ;;  %v222_v27 = vmax.f32 %v158_v19, 0.0  ;;  %v30_v8 = vld [vmem:[%s1345_s0 + $0x80] sm:$0xff]  ;;  %v31_v13 = vld [vmem:[%s1345_s0 + $0x88] sm:$0xff]  ;;  %v32_v14 = vld [vmem:[%s1345_s0 + $0x90] sm:$0xff] }
   0x8   :  { %v223_v28 = vmax.f32 %v159_v20, 0.0  ;;  %v225_v33 = vmax.f32 %v161_v24, 0.0  ;;  %v226_v34 = vmax.f32 %v162_v25, 0.0  ;;  %v227_v41 = vmax.f32 %v163_v29, 0.0  ;;  %v33_v15 = vld [vmem:[%s1345_s0 + $0x98] sm:$0xff]  ;;  %v34_v20 = vld [vmem:[%s1345_s0 + $0xa0] sm:$0xff] }
   0x9   :  { %v675_v31 = vpack.c.bf16 %v220_v22, %v220_v22  ;;  %v224_v32 = vmax.f32 %v160_v23, 0.0  ;;  %v676_v38 = vpack.c.bf16 %v221_v26, %v221_v26  ;;  %v677_v39 = vpack.c.bf16 %v222_v27, %v222_v27  ;;  %v35_v21 = vld [vmem:[%s1345_s0 + $0xa8] sm:$0xff]  ;;  %v36_v22 = vld [vmem:[%s1345_s0 + $0xb0] sm:$0xff]  ;;  %v37_v27 = vld [vmem:[%s1345_s0 + $0xb8] sm:$0xff] }
   0xa   :  { %v678_v40 = vpack.c.bf16 %v223_v28, %v223_v28  ;;  %v680_v46 = vpack.c.bf16 %v225_v33, %v225_v33  ;;  %v681_v47 = vpack.c.bf16 %v226_v34, %v226_v34  ;;  %v93_v48 = vmul.f32 %v765_v1, %v22_v30 }
   0xb   :  { %541 = vst.msk [vmem:[%s1348_s3] sm:$0xf] %vm540_vm0, %v675_v31  ;;  %v679_v45 = vpack.c.bf16 %v224_v32, %v224_v32  ;;  %542 = vst.msk [vmem:[%s1348_s3 + $0x4] sm:$0xf] %vm540_vm0, %v676_v38  ;;  %v682_v50 = vpack.c.bf16 %v227_v41, %v227_v41  ;;  %v94_v51 = vmul.f32 %v765_v1, %v23_v35 }
   0xc   :  { %543 = vst.msk [vmem:[%s1348_s3 + $0x8] sm:$0xf] %vm540_vm0, %v677_v39  ;;  %544 = vst.msk [vmem:[%s1348_s3 + $0xc] sm:$0xf] %vm540_vm0, %v678_v40  ;;  %v95_v52 = vmul.f32 %v765_v1, %v24_v36  ;;  %v96_v53 = vmul.f32 %v765_v1, %v25_v37  ;;  %v164_v54 = vadd.f32 %v770_v2, %v93_v48  ;;  %v38_v48 = vld [vmem:[%s1345_s0 + $0xc0] sm:$0xff] }
   0xd   :  { %545 = vst.msk [vmem:[%s1348_s3 + $0x10] sm:$0xf] %vm540_vm0, %v679_v45  ;;  %546 = vst.msk [vmem:[%s1348_s3 + $0x14] sm:$0xf] %vm540_vm0, %v680_v46  ;;  %v97_v55 = vmul.f32 %v765_v1, %v26_v42  ;;  %v98_v56 = vmul.f32 %v765_v1, %v27_v43  ;;  %v99_v57 = vmul.f32 %v765_v1, %v28_v44 }
   0xe   :  { %547 = vst.msk [vmem:[%s1348_s3 + $0x18] sm:$0xf] %vm540_vm0, %v681_v47  ;;  %548 = vst.msk [vmem:[%s1348_s3 + $0x1c] sm:$0xf] %vm540_vm0, %v682_v50  ;;  %v165_v58 = vadd.f32 %v770_v2, %v94_v51  ;;  %v166_v59 = vadd.f32 %v770_v2, %v95_v52  ;;  %v167_v60 = vadd.f32 %v770_v2, %v96_v53  ;;  %v228_v62 = vmax.f32 %v164_v54, 0.0  ;;  %v39_v53 = vld [vmem:[%s1345_s0 + $0xc8] sm:$0xff] }
   0xf   :  { %v100_v61 = vmul.f32 %v765_v1, %v29_v49  ;;  %v168_v63 = vadd.f32 %v770_v2, %v97_v55  ;;  %v169_v0 = vadd.f32 %v770_v2, %v98_v56  ;;  %v170_v3 = vadd.f32 %v770_v2, %v99_v57  ;;  %v40_v54 = vld [vmem:[%s1345_s0 + $0xd0] sm:$0xff]  ;;  %v41_v55 = vld [vmem:[%s1345_s0 + $0xd8] sm:$0xff] }
  0x10   :  { %v229_v4 = vmax.f32 %v165_v58, 0.0  ;;  %v230_v5 = vmax.f32 %v166_v59, 0.0  ;;  %v231_v6 = vmax.f32 %v167_v60, 0.0  ;;  %v683_v9 = vpack.c.bf16 %v228_v62, %v228_v62  ;;  %v42_v60 = vld [vmem:[%s1345_s0 + $0xe0] sm:$0xff]  ;;  %v44_v62 = vld [vmem:[%s1345_s0 + $0xf0] sm:$0xff] }
  0x11   :  { %v171_v7 = vadd.f32 %v770_v2, %v100_v61  ;;  %v232_v10 = vmax.f32 %v168_v63, 0.0  ;;  %v233_v11 = vmax.f32 %v169_v0, 0.0  ;;  %v234_v12 = vmax.f32 %v170_v3, 0.0  ;;  %v43_v61 = vld [vmem:[%s1345_s0 + $0xe8] sm:$0xff] }
  0x12   :  { %v684_v16 = vpack.c.bf16 %v229_v4, %v229_v4  ;;  %v685_v17 = vpack.c.bf16 %v230_v5, %v230_v5  ;;  %v686_v18 = vpack.c.bf16 %v231_v6, %v231_v6  ;;  %549 = vst.msk [vmem:[%s1348_s3 + $0x20] sm:$0xf] %vm540_vm0, %v683_v9  ;;  %v101_v26 = vmul.f32 %v765_v1, %v30_v8  ;;  %v45_v5 = vld [vmem:[%s1345_s0 + $0xf8] sm:$0xff] }
  0x13   :  { %v235_v19 = vmax.f32 %v171_v7, 0.0  ;;  %v687_v23 = vpack.c.bf16 %v232_v10, %v232_v10  ;;  %v688_v24 = vpack.c.bf16 %v233_v11, %v233_v11  ;;  %v689_v25 = vpack.c.bf16 %v234_v12, %v234_v12 }
  0x14   :  { %550 = vst.msk [vmem:[%s1348_s3 + $0x24] sm:$0xf] %vm540_vm0, %v684_v16  ;;  %551 = vst.msk [vmem:[%s1348_s3 + $0x28] sm:$0xf] %vm540_vm0, %v685_v17  ;;  %v102_v29 = vmul.f32 %v765_v1, %v31_v13  ;;  %v103_v30 = vmul.f32 %v765_v1, %v32_v14  ;;  %v104_v31 = vmul.f32 %v765_v1, %v33_v15 }
  0x15   :  { %552 = vst.msk [vmem:[%s1348_s3 + $0x2c] sm:$0xf] %vm540_vm0, %v686_v18  ;;  %v690_v28 = vpack.c.bf16 %v235_v19, %v235_v19  ;;  %553 = vst.msk [vmem:[%s1348_s3 + $0x30] sm:$0xf] %vm540_vm0, %v687_v23  ;;  %v172_v32 = vadd.f32 %v770_v2, %v101_v26  ;;  %v105_v33 = vmul.f32 %v765_v1, %v34_v20  ;;  %v46_v26 = vld [vmem:[%s1345_s0 + $0x100] sm:$0xff] }
  0x16   :  { %554 = vst.msk [vmem:[%s1348_s3 + $0x34] sm:$0xf] %vm540_vm0, %v688_v24  ;;  %555 = vst.msk [vmem:[%s1348_s3 + $0x38] sm:$0xf] %vm540_vm0, %v689_v25  ;;  %v106_v34 = vmul.f32 %v765_v1, %v35_v21  ;;  %v107_v35 = vmul.f32 %v765_v1, %v36_v22  ;;  %v173_v36 = vadd.f32 %v770_v2, %v102_v29 }
  0x17   :  { %556 = vst.msk [vmem:[%s1348_s3 + $0x3c] sm:$0xf] %vm540_vm0, %v690_v28  ;;  %v174_v37 = vadd.f32 %v770_v2, %v103_v30  ;;  %v175_v38 = vadd.f32 %v770_v2, %v104_v31  ;;  %v108_v39 = vmul.f32 %v765_v1, %v37_v27  ;;  %v236_v40 = vmax.f32 %v172_v32, 0.0  ;;  %v47_v31 = vld [vmem:[%s1345_s0 + $0x108] sm:$0xff]  ;;  %v48_v32 = vld [vmem:[%s1345_s0 + $0x110] sm:$0xff] }
  0x18   :  { %v176_v41 = vadd.f32 %v770_v2, %v105_v33  ;;  %v177_v42 = vadd.f32 %v770_v2, %v106_v34  ;;  %v178_v43 = vadd.f32 %v770_v2, %v107_v35  ;;  %v237_v44 = vmax.f32 %v173_v36, 0.0  ;;  %v49_v33 = vld [vmem:[%s1345_s0 + $0x118] sm:$0xff] }
  0x19   :  { %v238_v45 = vmax.f32 %v174_v37, 0.0  ;;  %v239_v46 = vmax.f32 %v175_v38, 0.0  ;;  %v179_v47 = vadd.f32 %v770_v2, %v108_v39  ;;  %v691_v49 = vpack.c.bf16 %v236_v40, %v236_v40  ;;  %v50_v38 = vld [vmem:[%s1345_s0 + $0x120] sm:$0xff]  ;;  %v51_v39 = vld [vmem:[%s1345_s0 + $0x128] sm:$0xff]  ;;  %v52_v40 = vld [vmem:[%s1345_s0 + $0x130] sm:$0xff] }
  0x1a   :  { %v240_v50 = vmax.f32 %v176_v41, 0.0  ;;  %v241_v51 = vmax.f32 %v177_v42, 0.0  ;;  %v242_v52 = vmax.f32 %v178_v43, 0.0  ;;  %v692_v56 = vpack.c.bf16 %v237_v44, %v237_v44 }
  0x1b   :  { %v693_v57 = vpack.c.bf16 %v238_v45, %v238_v45  ;;  %v694_v58 = vpack.c.bf16 %v239_v46, %v239_v46  ;;  %v243_v59 = vmax.f32 %v179_v47, 0.0  ;;  %557 = vst.msk [vmem:[%s1348_s3 + $0x40] sm:$0xf] %vm540_vm0, %v691_v49  ;;  %v109_v4 = vmul.f32 %v765_v1, %v38_v48  ;;  %v53_v45 = vld [vmem:[%s1345_s0 + $0x138] sm:$0xff] }
  0x1c   :  { %v695_v63 = vpack.c.bf16 %v240_v50, %v240_v50  ;;  %v696_v0 = vpack.c.bf16 %v241_v51, %v241_v51  ;;  %v697_v3 = vpack.c.bf16 %v242_v52, %v242_v52  ;;  %558 = vst.msk [vmem:[%s1348_s3 + $0x44] sm:$0xf] %vm540_vm0, %v692_v56  ;;  %v110_v7 = vmul.f32 %v765_v1, %v39_v53 }
  0x1d   :  { %559 = vst.msk [vmem:[%s1348_s3 + $0x48] sm:$0xf] %vm540_vm0, %v693_v57  ;;  %560 = vst.msk [vmem:[%s1348_s3 + $0x4c] sm:$0xf] %vm540_vm0, %v694_v58  ;;  %v698_v6 = vpack.c.bf16 %v243_v59, %v243_v59  ;;  %v111_v8 = vmul.f32 %v765_v1, %v40_v54  ;;  %v112_v9 = vmul.f32 %v765_v1, %v41_v55 }
  0x1e   :  { %561 = vst.msk [vmem:[%s1348_s3 + $0x50] sm:$0xf] %vm540_vm0, %v695_v63  ;;  %562 = vst.msk [vmem:[%s1348_s3 + $0x54] sm:$0xf] %vm540_vm0, %v696_v0  ;;  %v180_v10 = vadd.f32 %v770_v2, %v109_v4  ;;  %v113_v11 = vmul.f32 %v765_v1, %v42_v60  ;;  %v114_v12 = vmul.f32 %v765_v1, %v43_v61  ;;  %v54_v4 = vld [vmem:[%s1345_s0 + $0x140] sm:$0xff] }
  0x1f   :  { %563 = vst.msk [vmem:[%s1348_s3 + $0x58] sm:$0xf] %vm540_vm0, %v697_v3  ;;  %v115_v13 = vmul.f32 %v765_v1, %v44_v62  ;;  %564 = vst.msk [vmem:[%s1348_s3 + $0x5c] sm:$0xf] %vm540_vm0, %v698_v6  ;;  %v181_v14 = vadd.f32 %v770_v2, %v110_v7  ;;  %v182_v15 = vadd.f32 %v770_v2, %v111_v8 }
  0x20   :  { %v183_v16 = vadd.f32 %v770_v2, %v112_v9  ;;  %v116_v17 = vmul.f32 %v765_v1, %v45_v5  ;;  %v244_v18 = vmax.f32 %v180_v10, 0.0  ;;  %v184_v19 = vadd.f32 %v770_v2, %v113_v11  ;;  %v55_v9 = vld [vmem:[%s1345_s0 + $0x148] sm:$0xff]  ;;  %v56_v10 = vld [vmem:[%s1345_s0 + $0x150] sm:$0xff]  ;;  %v57_v11 = vld [vmem:[%s1345_s0 + $0x158] sm:$0xff] }
  0x21   :  { %v185_v20 = vadd.f32 %v770_v2, %v114_v12  ;;  %v186_v21 = vadd.f32 %v770_v2, %v115_v13  ;;  %v245_v22 = vmax.f32 %v181_v14, 0.0  ;;  %v246_v23 = vmax.f32 %v182_v15, 0.0 }
  0x22   :  { %v247_v24 = vmax.f32 %v183_v16, 0.0  ;;  %v187_v25 = vadd.f32 %v770_v2, %v116_v17  ;;  %v699_v27 = vpack.c.bf16 %v244_v18, %v244_v18  ;;  %v248_v28 = vmax.f32 %v184_v19, 0.0  ;;  %v58_v16 = vld [vmem:[%s1345_s0 + $0x160] sm:$0xff]  ;;  %v59_v17 = vld [vmem:[%s1345_s0 + $0x168] sm:$0xff]  ;;  %v60_v18 = vld [vmem:[%s1345_s0 + $0x170] sm:$0xff] }
  0x23   :  { %v249_v29 = vmax.f32 %v185_v20, 0.0  ;;  %v250_v30 = vmax.f32 %v186_v21, 0.0  ;;  %v700_v34 = vpack.c.bf16 %v245_v22, %v245_v22  ;;  %v701_v35 = vpack.c.bf16 %v246_v23, %v246_v23  ;;  %v61_v23 = vld [vmem:[%s1345_s0 + $0x178] sm:$0xff] }
  0x24   :  { %v702_v36 = vpack.c.bf16 %v247_v24, %v247_v24  ;;  %v251_v37 = vmax.f32 %v187_v25, 0.0  ;;  %565 = vst.msk [vmem:[%s1348_s3 + $0x60] sm:$0xf] %vm540_vm0, %v699_v27  ;;  %v703_v41 = vpack.c.bf16 %v248_v28, %v248_v28  ;;  %v117_v44 = vmul.f32 %v765_v1, %v46_v26 }
  0x25   :  { %v704_v42 = vpack.c.bf16 %v249_v29, %v249_v29  ;;  %v705_v43 = vpack.c.bf16 %v250_v30, %v250_v30  ;;  %566 = vst.msk [vmem:[%s1348_s3 + $0x64] sm:$0xf] %vm540_vm0, %v700_v34  ;;  %567 = vst.msk [vmem:[%s1348_s3 + $0x68] sm:$0xf] %vm540_vm0, %v701_v35  ;;  %v118_v47 = vmul.f32 %v765_v1, %v47_v31 }
  0x26   :  { %568 = vst.msk [vmem:[%s1348_s3 + $0x6c] sm:$0xf] %vm540_vm0, %v702_v36  ;;  %v706_v46 = vpack.c.bf16 %v251_v37, %v251_v37  ;;  %v119_v48 = vmul.f32 %v765_v1, %v48_v32  ;;  %v120_v49 = vmul.f32 %v765_v1, %v49_v33  ;;  %569 = vst.msk [vmem:[%s1348_s3 + $0x70] sm:$0xf] %vm540_vm0, %v703_v41 }
  0x27   :  { %570 = vst.msk [vmem:[%s1348_s3 + $0x74] sm:$0xf] %vm540_vm0, %v704_v42  ;;  %571 = vst.msk [vmem:[%s1348_s3 + $0x78] sm:$0xf] %vm540_vm0, %v705_v43  ;;  %v188_v50 = vadd.f32 %v770_v2, %v117_v44  ;;  %v121_v51 = vmul.f32 %v765_v1, %v50_v38  ;;  %v122_v52 = vmul.f32 %v765_v1, %v51_v39  ;;  %v62_v44 = vld [vmem:[%s1345_s0 + $0x180] sm:$0xff] }
  0x28   :  { %v123_v53 = vmul.f32 %v765_v1, %v52_v40  ;;  %572 = vst.msk [vmem:[%s1348_s3 + $0x7c] sm:$0xf] %vm540_vm0, %v706_v46  ;;  %v189_v54 = vadd.f32 %v770_v2, %v118_v47  ;;  %v190_v55 = vadd.f32 %v770_v2, %v119_v48  ;;  %v191_v56 = vadd.f32 %v770_v2, %v120_v49  ;;  %v63_v49 = vld [vmem:[%s1345_s0 + $0x188] sm:$0xff] }
  0x29   :  { %v124_v57 = vmul.f32 %v765_v1, %v53_v45  ;;  %v252_v58 = vmax.f32 %v188_v50, 0.0  ;;  %v192_v59 = vadd.f32 %v770_v2, %v121_v51  ;;  %v193_v60 = vadd.f32 %v770_v2, %v122_v52  ;;  %v64_v50 = vld [vmem:[%s1345_s0 + $0x190] sm:$0xff]  ;;  %v65_v51 = vld [vmem:[%s1345_s0 + $0x198] sm:$0xff] }
  0x2a   :  { %v194_v61 = vadd.f32 %v770_v2, %v123_v53  ;;  %v253_v62 = vmax.f32 %v189_v54, 0.0  ;;  %v254_v63 = vmax.f32 %v190_v55, 0.0  ;;  %v255_v0 = vmax.f32 %v191_v56, 0.0  ;;  %v66_v56 = vld [vmem:[%s1345_s0 + $0x1a0] sm:$0xff] }
  0x2b   :  { %v195_v3 = vadd.f32 %v770_v2, %v124_v57  ;;  %v707_v5 = vpack.c.bf16 %v252_v58, %v252_v58  ;;  %v256_v6 = vmax.f32 %v192_v59, 0.0  ;;  %v257_v7 = vmax.f32 %v193_v60, 0.0  ;;  %v67_v57 = vld [vmem:[%s1345_s0 + $0x1a8] sm:$0xff]  ;;  %v68_v58 = vld [vmem:[%s1345_s0 + $0x1b0] sm:$0xff] }
  0x2c   :  { %v258_v8 = vmax.f32 %v194_v61, 0.0  ;;  %v708_v12 = vpack.c.bf16 %v253_v62, %v253_v62  ;;  %v709_v13 = vpack.c.bf16 %v254_v63, %v254_v63  ;;  %v710_v14 = vpack.c.bf16 %v255_v0, %v255_v0  ;;  %v69_v63 = vld [vmem:[%s1345_s0 + $0x1b8] sm:$0xff] }
  0x2d   :  { %v259_v15 = vmax.f32 %v195_v3, 0.0  ;;  %573 = vst.msk [vmem:[%s1348_s3 + $0x80] sm:$0xf] %vm540_vm0, %v707_v5  ;;  %v711_v19 = vpack.c.bf16 %v256_v6, %v256_v6  ;;  %v712_v20 = vpack.c.bf16 %v257_v7, %v257_v7  ;;  %v125_v22 = vmul.f32 %v765_v1, %v54_v4 }
  0x2e   :  { %v713_v21 = vpack.c.bf16 %v258_v8, %v258_v8  ;;  %574 = vst.msk [vmem:[%s1348_s3 + $0x84] sm:$0xf] %vm540_vm0, %v708_v12  ;;  %575 = vst.msk [vmem:[%s1348_s3 + $0x88] sm:$0xf] %vm540_vm0, %v709_v13  ;;  %v126_v25 = vmul.f32 %v765_v1, %v55_v9  ;;  %v127_v26 = vmul.f32 %v765_v1, %v56_v10 }
  0x2f   :  { %576 = vst.msk [vmem:[%s1348_s3 + $0x8c] sm:$0xf] %vm540_vm0, %v710_v14  ;;  %v714_v24 = vpack.c.bf16 %v259_v15, %v259_v15  ;;  %v128_v27 = vmul.f32 %v765_v1, %v57_v11  ;;  %577 = vst.msk [vmem:[%s1348_s3 + $0x90] sm:$0xf] %vm540_vm0, %v711_v19  ;;  %v196_v28 = vadd.f32 %v770_v2, %v125_v22  ;;  %v70_v22 = vld [vmem:[%s1345_s0 + $0x1c0] sm:$0xff] }
  0x30   :  { %578 = vst.msk [vmem:[%s1348_s3 + $0x94] sm:$0xf] %vm540_vm0, %v712_v20  ;;  %579 = vst.msk [vmem:[%s1348_s3 + $0x98] sm:$0xf] %vm540_vm0, %v713_v21  ;;  %v129_v29 = vmul.f32 %v765_v1, %v58_v16  ;;  %v130_v30 = vmul.f32 %v765_v1, %v59_v17  ;;  %v131_v31 = vmul.f32 %v765_v1, %v60_v18 }
  0x31   :  { %580 = vst.msk [vmem:[%s1348_s3 + $0x9c] sm:$0xf] %vm540_vm0, %v714_v24  ;;  %v197_v32 = vadd.f32 %v770_v2, %v126_v25  ;;  %v198_v33 = vadd.f32 %v770_v2, %v127_v26  ;;  %v199_v34 = vadd.f32 %v770_v2, %v128_v27  ;;  %v132_v35 = vmul.f32 %v765_v1, %v61_v23  ;;  %v71_v27 = vld [vmem:[%s1345_s0 + $0x1c8] sm:$0xff] }
  0x32   :  { %v260_v36 = vmax.f32 %v196_v28, 0.0  ;;  %v200_v37 = vadd.f32 %v770_v2, %v129_v29  ;;  %v201_v38 = vadd.f32 %v770_v2, %v130_v30  ;;  %v202_v39 = vadd.f32 %v770_v2, %v131_v31  ;;  %v72_v28 = vld [vmem:[%s1345_s0 + $0x1d0] sm:$0xff]  ;;  %v73_v29 = vld [vmem:[%s1345_s0 + $0x1d8] sm:$0xff] }
  0x33   :  { %v261_v40 = vmax.f32 %v197_v32, 0.0  ;;  %v262_v41 = vmax.f32 %v198_v33, 0.0  ;;  %v263_v42 = vmax.f32 %v199_v34, 0.0  ;;  %v203_v43 = vadd.f32 %v770_v2, %v132_v35  ;;  %v74_v34 = vld [vmem:[%s1345_s0 + $0x1e0] sm:$0xff]  ;;  %v75_v35 = vld [vmem:[%s1345_s0 + $0x1e8] sm:$0xff] }
  0x34   :  { %v715_v45 = vpack.c.bf16 %v260_v36, %v260_v36  ;;  %v264_v46 = vmax.f32 %v200_v37, 0.0  ;;  %v265_v47 = vmax.f32 %v201_v38, 0.0  ;;  %v266_v48 = vmax.f32 %v202_v39, 0.0  ;;  %v76_v36 = vld [vmem:[%s1345_s0 + $0x1f0] sm:$0xff] }
  0x35   :  { %v716_v52 = vpack.c.bf16 %v261_v40, %v261_v40  ;;  %v717_v53 = vpack.c.bf16 %v262_v41, %v262_v41  ;;  %v718_v54 = vpack.c.bf16 %v263_v42, %v263_v42  ;;  %v267_v55 = vmax.f32 %v203_v43, 0.0  ;;  %v77_v41 = vld [vmem:[%s1345_s0 + $0x1f8] sm:$0xff] }
  0x36   :  { %581 = vst.msk [vmem:[%s1348_s3 + $0xa0] sm:$0xf] %vm540_vm0, %v715_v45  ;;  %v719_v59 = vpack.c.bf16 %v264_v46, %v264_v46  ;;  %v720_v60 = vpack.c.bf16 %v265_v47, %v265_v47  ;;  %v721_v61 = vpack.c.bf16 %v266_v48, %v266_v48  ;;  %v133_v62 = vmul.f32 %v765_v1, %v62_v44 }
  0x37   :  { %582 = vst.msk [vmem:[%s1348_s3 + $0xa4] sm:$0xf] %vm540_vm0, %v716_v52  ;;  %583 = vst.msk [vmem:[%s1348_s3 + $0xa8] sm:$0xf] %vm540_vm0, %v717_v53  ;;  %v722_v0 = vpack.c.bf16 %v267_v55, %v267_v55  ;;  %v134_v3 = vmul.f32 %v765_v1, %v63_v49  ;;  %v135_v4 = vmul.f32 %v765_v1, %v64_v50 }
  0x38   :  { %584 = vst.msk [vmem:[%s1348_s3 + $0xac] sm:$0xf] %vm540_vm0, %v718_v54  ;;  %v136_v5 = vmul.f32 %v765_v1, %v65_v51  ;;  %585 = vst.msk [vmem:[%s1348_s3 + $0xb0] sm:$0xf] %vm540_vm0, %v719_v59  ;;  %v204_v6 = vadd.f32 %v770_v2, %v133_v62  ;;  %v137_v7 = vmul.f32 %v765_v1, %v66_v56 }
  0x39   :  { %586 = vst.msk [vmem:[%s1348_s3 + $0xb4] sm:$0xf] %vm540_vm0, %v720_v60  ;;  %587 = vst.msk [vmem:[%s1348_s3 + $0xb8] sm:$0xf] %vm540_vm0, %v721_v61  ;;  %v138_v8 = vmul.f32 %v765_v1, %v67_v57  ;;  %v139_v9 = vmul.f32 %v765_v1, %v68_v58  ;;  %v205_v10 = vadd.f32 %v770_v2, %v134_v3 }
  0x3a   :  { %588 = vst.msk [vmem:[%s1348_s3 + $0xbc] sm:$0xf] %vm540_vm0, %v722_v0  ;;  %v206_v11 = vadd.f32 %v770_v2, %v135_v4  ;;  %v207_v12 = vadd.f32 %v770_v2, %v136_v5  ;;  %v140_v13 = vmul.f32 %v765_v1, %v69_v63  ;;  %v268_v14 = vmax.f32 %v204_v6, 0.0 }
  0x3b   :  { %v208_v15 = vadd.f32 %v770_v2, %v137_v7  ;;  %v209_v16 = vadd.f32 %v770_v2, %v138_v8  ;;  %v210_v17 = vadd.f32 %v770_v2, %v139_v9  ;;  %v269_v18 = vmax.f32 %v205_v10, 0.0 }
  0x3c   :  { %v270_v19 = vmax.f32 %v206_v11, 0.0  ;;  %v271_v20 = vmax.f32 %v207_v12, 0.0  ;;  %v211_v21 = vadd.f32 %v770_v2, %v140_v13  ;;  %v723_v23 = vpack.c.bf16 %v268_v14, %v268_v14 }
  0x3d   :  { %v272_v24 = vmax.f32 %v208_v15, 0.0  ;;  %v273_v25 = vmax.f32 %v209_v16, 0.0  ;;  %v274_v26 = vmax.f32 %v210_v17, 0.0  ;;  %v724_v30 = vpack.c.bf16 %v269_v18, %v269_v18 }
  0x3e   :  { %v725_v31 = vpack.c.bf16 %v270_v19, %v270_v19  ;;  %v726_v32 = vpack.c.bf16 %v271_v20, %v271_v20  ;;  %v275_v33 = vmax.f32 %v211_v21, 0.0  ;;  %589 = vst.msk [vmem:[%s1348_s3 + $0xc0] sm:$0xf] %vm540_vm0, %v723_v23  ;;  %v141_v40 = vmul.f32 %v765_v1, %v70_v22 }
  0x3f   :  { %v727_v37 = vpack.c.bf16 %v272_v24, %v272_v24  ;;  %v728_v38 = vpack.c.bf16 %v273_v25, %v273_v25  ;;  %v729_v39 = vpack.c.bf16 %v274_v26, %v274_v26  ;;  %590 = vst.msk [vmem:[%s1348_s3 + $0xc4] sm:$0xf] %vm540_vm0, %v724_v30  ;;  %v142_v43 = vmul.f32 %v765_v1, %v71_v27 }
  0x40   :  { %591 = vst.msk [vmem:[%s1348_s3 + $0xc8] sm:$0xf] %vm540_vm0, %v725_v31  ;;  %592 = vst.msk [vmem:[%s1348_s3 + $0xcc] sm:$0xf] %vm540_vm0, %v726_v32  ;;  %v730_v42 = vpack.c.bf16 %v275_v33, %v275_v33  ;;  %v143_v44 = vmul.f32 %v765_v1, %v72_v28  ;;  %v144_v45 = vmul.f32 %v765_v1, %v73_v29 }
  0x41   :  { %593 = vst.msk [vmem:[%s1348_s3 + $0xd0] sm:$0xf] %vm540_vm0, %v727_v37  ;;  %594 = vst.msk [vmem:[%s1348_s3 + $0xd4] sm:$0xf] %vm540_vm0, %v728_v38  ;;  %v212_v46 = vadd.f32 %v770_v2, %v141_v40  ;;  %v145_v47 = vmul.f32 %v765_v1, %v74_v34  ;;  %v146_v48 = vmul.f32 %v765_v1, %v75_v35 }
  0x42   :  { %595 = vst.msk [vmem:[%s1348_s3 + $0xd8] sm:$0xf] %vm540_vm0, %v729_v39  ;;  %v147_v49 = vmul.f32 %v765_v1, %v76_v36  ;;  %596 = vst.msk [vmem:[%s1348_s3 + $0xdc] sm:$0xf] %vm540_vm0, %v730_v42  ;;  %v213_v50 = vadd.f32 %v770_v2, %v142_v43  ;;  %v214_v51 = vadd.f32 %v770_v2, %v143_v44 }
  0x43   :  { %v215_v52 = vadd.f32 %v770_v2, %v144_v45  ;;  %v148_v53 = vmul.f32 %v765_v1, %v77_v41  ;;  %v276_v54 = vmax.f32 %v212_v46, 0.0  ;;  %v216_v55 = vadd.f32 %v770_v2, %v145_v47 }
  0x44   :  { %v217_v56 = vadd.f32 %v770_v2, %v146_v48  ;;  %v218_v57 = vadd.f32 %v770_v2, %v147_v49  ;;  %v277_v58 = vmax.f32 %v213_v50, 0.0  ;;  %v278_v59 = vmax.f32 %v214_v51, 0.0 }
  0x45   :  { %v279_v60 = vmax.f32 %v215_v52, 0.0  ;;  %v219_v61 = vadd.f32 %v770_v2, %v148_v53  ;;  %v731_v62 = vpack.c.bf16 %v276_v54, %v276_v54  ;;  %v280_v63 = vmax.f32 %v216_v55, 0.0 }
  0x46   :  { %v281_v0 = vmax.f32 %v217_v56, 0.0  ;;  %v282_v3 = vmax.f32 %v218_v57, 0.0  ;;  %v732_v4 = vpack.c.bf16 %v277_v58, %v277_v58  ;;  %v733_v5 = vpack.c.bf16 %v278_v59, %v278_v59 }
  0x47   :  { %v734_v6 = vpack.c.bf16 %v279_v60, %v279_v60  ;;  %v283_v1 = vmax.f32 %v219_v61, 0.0  ;;  %597 = vst.msk [vmem:[%s1348_s3 + $0xe0] sm:$0xf] %vm540_vm0, %v731_v62  ;;  %v735_v7 = vpack.c.bf16 %v280_v63, %v280_v63 }
  0x48   :  { %v736_v8 = vpack.c.bf16 %v281_v0, %v281_v0  ;;  %v737_v9 = vpack.c.bf16 %v282_v3, %v282_v3  ;;  %598 = vst.msk [vmem:[%s1348_s3 + $0xe4] sm:$0xf] %vm540_vm0, %v732_v4  ;;  %599 = vst.msk [vmem:[%s1348_s3 + $0xe8] sm:$0xf] %vm540_vm0, %v733_v5 }
  0x49   :  { %600 = vst.msk [vmem:[%s1348_s3 + $0xec] sm:$0xf] %vm540_vm0, %v734_v6  ;;  %v738_v2 = vpack.c.bf16 %v283_v1, %v283_v1  ;;  %601 = vst.msk [vmem:[%s1348_s3 + $0xf0] sm:$0xf] %vm540_vm0, %v735_v7 }
  0x4a   :  { %602 = vst.msk [vmem:[%s1348_s3 + $0xf4] sm:$0xf] %vm540_vm0, %v736_v8  ;;  %603 = vst.msk [vmem:[%s1348_s3 + $0xf8] sm:$0xf] %vm540_vm0, %v737_v9 }
  0x4b   :  { %604 = vst.msk [vmem:[%s1348_s3 + $0xfc] sm:$0xf] %vm540_vm0, %v738_v2 }

// kernel: dccgan_generator_forward.26
= control target key start
LH: loop header
LB: loop body
LE: loop exit
PB: predicated region body
PF: predicated region fallthrough
CT: control target
= control target key end

     0   :  { %s1044_s9 = smov 0   ;;  %s1046_s10 = smov 0   ;;  %s1251_s0 = inlined_call_operand.vmem [shape: bf16[512,32], index: 0, kind: input, shape index: {}]   ;;  %s1252_s1 = inlined_call_operand.vmem [shape: bf16[32,16], index: 1, kind: input, shape index: {}]   ;;  %s1253_s2 = inlined_call_operand.vmem [shape: f32[512,16], index: 2, kind: output, shape index: {}]  }
   0x1   :  { %s1048_s11 = smov 0  }
   0x2 LB: > { %s31_s12 = sadd.s32 1, %s1022_s10  ;;  %p862_p0 = scmp.ge.s32.totalorder %s1026_s11, 1  ;;  %s1026_s11 = sphi %s1048_s11, %s12_s11   ;;  %s1022_s10 = sphi %s1046_s10, %s1255_s10   ;;  %s1018_s9 = sphi %s1044_s9, %s1254_s9  }
   0x3   : > { %p33_p1 = scmp.ge.s32.totalorder %s31_s12, 2  ;;  %p155_p2 = scmp.lt.s32.totalorder %s1026_s11, 3 }
   0x5   : > { %s1257_s12 = smov (%p33_p1, %s31_s12), 0  ;;  %p156_p3 = pnand %p862_p0, %p155_p2 }
   0x6   : > { %v986_v0 = vld [vmem:[%s1252_s1] sm:$0xff] (!%p156_p3)   ;;  %s863_s15 = sshll.u32 (!%p156_p3), %s1018_s9, 5  ;;  %v987_v1 = vld [vmem:[%s1252_s1 + $0x8] sm:$0xff] (!%p156_p3)   ;;  %vm223_vm0 = vcmask (!%p156_p3), 130048   ;;  %v1028_v2 = vmov (!%p156_p3), 0.0   ;;  %vm416_vm1 = vcmask (!%p156_p3), 261120  }
   0x7   : > { %159 = sbr.rel (%p156_p3) target bundleno = 273 (0x111), region = 28  ;;  %p192_p4 = scmp.lt.s32.totalorder (!%p156_p3), %s863_s15, 63  ;;  %921 = vmatprep.subr.bf16.mxu0 (!%p156_p3), %v986_v0  ;;  %957 = vmatprep.subr.bf16.mxu1 (!%p156_p3), %v986_v0  ;;  %226 = vst.msk [vmem:[#allocation2 + $0x10] sm:$0xff] (!%p156_p3), %vm223_vm0, %v1028_v2  ;;  %224 = vst.msk [vmem:[#allocation2] sm:$0xff] (!%p156_p3), %vm223_vm0, %v1028_v2 }
   0x8   : > { %922 = vmatpush3.bf16.msra.mxu0 (!%p156_p3), %v986_v0  ;;  %959 = vmatpush3.bf16.msra.mxu1 (!%p156_p3), %v986_v0  ;;  %225 = vst.msk [vmem:[#allocation2 + $0x8] sm:$0xff] (!%p156_p3), %vm223_vm0, %v1028_v2  ;;  %227 = vst.msk [vmem:[#allocation2 + $0x18] sm:$0xff] (!%p156_p3), %vm223_vm0, %v1028_v2 }
   0x9   : > { %228 = vst.msk [vmem:[#allocation2 + $0x20] sm:$0xff] (!%p156_p3), %vm223_vm0, %v1028_v2  ;;  %229 = vst.msk [vmem:[#allocation2 + $0x28] sm:$0xff] (!%p156_p3), %vm223_vm0, %v1028_v2  ;;  %923 = vmatprep.subr.bf16.mxu0 (!%p156_p3), %v987_v1  ;;  %958 = vmatprep.subr.bf16.mxu1 (!%p156_p3), %v987_v1 }
   0xa   : > { %230 = vst.msk [vmem:[#allocation2 + $0x30] sm:$0xff] (!%p156_p3), %vm223_vm0, %v1028_v2  ;;  %231 = vst.msk [vmem:[#allocation2 + $0x38] sm:$0xff] (!%p156_p3), %vm223_vm0, %v1028_v2 }
   0xb   : > { %232 = vst.msk [vmem:[#allocation2 + $0x40] sm:$0xff] (!%p156_p3), %vm223_vm0, %v1028_v2  ;;  %233 = vst.msk [vmem:[#allocation2 + $0x48] sm:$0xff] (!%p156_p3), %vm223_vm0, %v1028_v2 }
   0xc   : > { %234 = vst.msk [vmem:[#allocation2 + $0x50] sm:$0xff] (!%p156_p3), %vm223_vm0, %v1028_v2  ;;  %235 = vst.msk [vmem:[#allocation2 + $0x58] sm:$0xff] (!%p156_p3), %vm223_vm0, %v1028_v2  ;;  %924 = vmatpush3.bf16.msra.mxu0 (!%p156_p3), %v987_v1  ;;  %960 = vmatpush3.bf16.msra.mxu1 (!%p156_p3), %v987_v1 }
   0xd   : > { %236 = vst.msk [vmem:[#allocation2 + $0x60] sm:$0xff] (!%p156_p3), %vm223_vm0, %v1028_v2  ;;  %237 = vst.msk [vmem:[#allocation2 + $0x68] sm:$0xff] (!%p156_p3), %vm223_vm0, %v1028_v2 }
   0xe   : > { %s1259_s15 = smov (!%p192_p4, %s863_s15), 63  ;;  %238 = vst.msk [vmem:[#allocation2 + $0x70] sm:$0xff] %vm223_vm0, %v1028_v2  ;;  %239 = vst.msk [vmem:[#allocation2 + $0x78] sm:$0xff] %vm223_vm0, %v1028_v2  ;;  %v258_v19 = vld [vmem:[#allocation2 + $0x10] sm:$0xff]  ;;  %v256_v21 = vld [vmem:[#allocation2] sm:$0xff] }
   0xf   : > { %240 = vst.msk [vmem:[#allocation2 + $0x80] sm:$0xff] %vm223_vm0, %v1028_v2  ;;  %241 = vst.msk [vmem:[#allocation2 + $0x88] sm:$0xff] %vm223_vm0, %v1028_v2  ;;  %s864_s18 = sshll.u32 %s1259_s15, 2  ;;  %v259_v24 = vld [vmem:[#allocation2 + $0x18] sm:$0xff]  ;;  %v257_v29 = vld [vmem:[#allocation2 + $0x8] sm:$0xff]  ;;  %s866_s22 = sshll.u32 %s1259_s15, 3 }
  0x10   : > { %242 = vst.msk [vmem:[#allocation2 + $0x90] sm:$0xff] %vm223_vm0, %v1028_v2  ;;  %243 = vst.msk [vmem:[#allocation2 + $0x98] sm:$0xff] %vm223_vm0, %v1028_v2  ;;  %s1106_s21 = scalar_lea.vmem %s1251_s0, %s864_s18  ;;  %v260_v45 = vld [vmem:[#allocation2 + $0x20] sm:$0xff]  ;;  %s1152_s25 = scalar_lea.vmem %s1253_s2, %s866_s22  ;;  %v261_v53 = vld [vmem:[#allocation2 + $0x28] sm:$0xff] }
  0x11   : > { %244 = vst.msk [vmem:[#allocation2 + $0xa0] sm:$0xff] %vm223_vm0, %v1028_v2  ;;  %245 = vst.msk [vmem:[#allocation2 + $0xa8] sm:$0xff] %vm223_vm0, %v1028_v2  ;;  %v988_v3 = vld [vmem:[%s1106_s21] sm:$0xff]   ;;  %v990_v5 = vld [vmem:[%s1106_s21 + $0x8] sm:$0xff]  }
  0x12   : > { %246 = vst.msk [vmem:[#allocation2 + $0xb0] sm:$0xff] %vm223_vm0, %v1028_v2  ;;  %247 = vst.msk [vmem:[#allocation2 + $0xb8] sm:$0xff] %vm223_vm0, %v1028_v2  ;;  %v989_v4 = vld [vmem:[%s1106_s21 + $0x40] sm:$0xff]   ;;  %925 = vmatprep.mubr.msk.bf16.mxu0 %vm416_vm1, %v988_v3  ;;  %v991_v6 = vld [vmem:[%s1106_s21 + $0x48] sm:$0xff]  }
  0x13   : > { %248 = vst.msk [vmem:[#allocation2 + $0xc0] sm:$0xff] %vm223_vm0, %v1028_v2  ;;  %249 = vst.msk [vmem:[#allocation2 + $0xc8] sm:$0xff] %vm223_vm0, %v1028_v2  ;;  %941 = vmatprep.mubr.msk.bf16.mxu1 %vm416_vm1, %v989_v4  ;;  %926 = vmatmul.mubr.msk.bf16.vlgmr.msra.gmra.mrb[0].mxu0 %vm416_vm1, %v990_v5  ;;  %v992_v7 = vld [vmem:[%s1106_s21 + $0x10] sm:$0xff]   ;;  %v994_v9 = vld [vmem:[%s1106_s21 + $0x18] sm:$0xff]  }
  0x14   : > { %250 = vst.msk [vmem:[#allocation2 + $0xd0] sm:$0xff] %vm223_vm0, %v1028_v2  ;;  %251 = vst.msk [vmem:[#allocation2 + $0xd8] sm:$0xff] %vm223_vm0, %v1028_v2  ;;  %942 = vmatmul.mubr.msk.bf16.vlgmr.msra.gmra.mrb[0].mxu1 %vm416_vm1, %v991_v6  ;;  %v993_v8 = vld [vmem:[%s1106_s21 + $0x50] sm:$0xff]   ;;  %929 = vmatprep.mubr.msk.bf16.mxu0 %vm416_vm1, %v992_v7  ;;  %v995_v10 = vld [vmem:[%s1106_s21 + $0x58] sm:$0xff]  }
  0x15   : > { %252 = vst.msk [vmem:[#allocation2 + $0xe0] sm:$0xff] %vm223_vm0, %v1028_v2  ;;  %253 = vst.msk [vmem:[#allocation2 + $0xe8] sm:$0xff] %vm223_vm0, %v1028_v2  ;;  %945 = vmatprep.mubr.msk.bf16.mxu1 %vm416_vm1, %v993_v8  ;;  %v996_v11 = vld [vmem:[%s1106_s21 + $0x20] sm:$0xff]   ;;  %v998_v13 = vld [vmem:[%s1106_s21 + $0x28] sm:$0xff]  }
  0x16   : > { %254 = vst.msk [vmem:[#allocation2 + $0xf0] sm:$0xff] %vm223_vm0, %v1028_v2  ;;  %255 = vst.msk [vmem:[#allocation2 + $0xf8] sm:$0xff] %vm223_vm0, %v1028_v2  ;;  %v997_v12 = vld [vmem:[%s1106_s21 + $0x60] sm:$0xff]   ;;  %v999_v14 = vld [vmem:[%s1106_s21 + $0x68] sm:$0xff]  }
  0x17   : > { %v1000_v15 = vld [vmem:[%s1106_s21 + $0x30] sm:$0xff]   ;;  %v1002_v17 = vld [vmem:[%s1106_s21 + $0x38] sm:$0xff]   ;;  %v272_v23 = vld [vmem:[#allocation2 + $0x80] sm:$0xff] }
  0x18   : > { %v1001_v16 = vld [vmem:[%s1106_s21 + $0x70] sm:$0xff]   ;;  %v1003_v18 = vld [vmem:[%s1106_s21 + $0x78] sm:$0xff]   ;;  %v273_v34 = vld [vmem:[#allocation2 + $0x88] sm:$0xff] }
  0x19   : > { %v274_v20 = vld [vmem:[#allocation2 + $0x90] sm:$0xff]  ;;  %v275_v28 = vld [vmem:[#allocation2 + $0x98] sm:$0xff]  ;;  %v276_v47 = vld [vmem:[#allocation2 + $0xa0] sm:$0xff] }
  0x1a   : > { %v262_v43 = vld [vmem:[#allocation2 + $0x30] sm:$0xff]  ;;  %v263_v48 = vld [vmem:[#allocation2 + $0x38] sm:$0xff]  ;;  %v277_v59 = vld [vmem:[#allocation2 + $0xa8] sm:$0xff] }
  0x1b   : > { %930 = vmatmul.mubr.msk.bf16.gmra.mrb[4].mxu0 %vm416_vm1, %v994_v9  ;;  %v278_v44 = vld [vmem:[#allocation2 + $0xb0] sm:$0xff]  ;;  %v279_v52 = vld [vmem:[#allocation2 + $0xb8] sm:$0xff] }
  0x1c   : > { %946 = vmatmul.mubr.msk.bf16.gmra.mrb[4].mxu1 %vm416_vm1, %v995_v10  ;;  %933 = vmatprep.mubr.msk.bf16.mxu0 %vm416_vm1, %v996_v11  ;;  %v266_v11 = vld [vmem:[#allocation2 + $0x50] sm:$0xff] }
  0x1d   : > { %949 = vmatprep.mubr.msk.bf16.mxu1 %vm416_vm1, %v997_v12  ;;  %v282_v12 = vld [vmem:[#allocation2 + $0xd0] sm:$0xff] }
  0x23   : > { %934 = vmatmul.mubr.msk.bf16.gmra.mrb[8].mxu0 %vm416_vm1, %v998_v13  ;;  %v264_v13 = vld [vmem:[#allocation2 + $0x40] sm:$0xff] }
  0x24   : > { %950 = vmatmul.mubr.msk.bf16.gmra.mrb[8].mxu1 %vm416_vm1, %v999_v14  ;;  %937 = vmatprep.mubr.msk.bf16.mxu0 %vm416_vm1, %v1000_v15  ;;  %v280_v15 = vld [vmem:[#allocation2 + $0xc0] sm:$0xff] }
  0x25   : > { %953 = vmatprep.mubr.msk.bf16.mxu1 %vm416_vm1, %v1001_v16  ;;  %v267_v16 = vld [vmem:[#allocation2 + $0x58] sm:$0xff] }
  0x2b   : > { %938 = vmatmul.mubr.msk.bf16.gmra.mrb[12].mxu0 %vm416_vm1, %v1002_v17 }
  0x2c   : > { %954 = vmatmul.mubr.msk.bf16.gmra.mrb[12].mxu1 %vm416_vm1, %v1003_v18 }
  0xe6   : > { %v927_v22 = vpop.f32.mrb[0].mxu0 }
  0xe7   : > { %v628_v25 = vadd.f32 %v927_v22, %v258_v19  ;;  %v943_v26 = vpop.f32.mrb[0].mxu1  ;;  %v499_v27 = vpop.f32.mrb[1].mxu0 }
  0xe8   : > { %v644_v30 = vadd.f32 %v943_v26, %v274_v20  ;;  %v626_v31 = vadd.f32 %v499_v27, %v256_v21  ;;  %v563_v32 = vpop.f32.mrb[1].mxu1  ;;  %v928_v33 = vpop.f32.mrb[2].mxu0  ;;  %v283_v20 = vld [vmem:[#allocation2 + $0xd8] sm:$0xff]  ;;  %v265_v21 = vld [vmem:[#allocation2 + $0x48] sm:$0xff] }
  0xe9   : > { %661 = vst.msk [vmem:[#allocation2 + $0x10] sm:$0xff] %vm223_vm0, %v628_v25  ;;  %v642_v35 = vadd.f32 %v563_v32, %v272_v23  ;;  %v629_v36 = vadd.f32 %v928_v33, %v259_v24  ;;  %v944_v37 = vpop.f32.mrb[2].mxu1  ;;  %v502_v38 = vpop.f32.mrb[3].mxu0  ;;  %v281_v27 = vld [vmem:[#allocation2 + $0xc8] sm:$0xff] }
  0xea   : > { %677 = vst.msk [vmem:[#allocation2 + $0x90] sm:$0xff] %vm223_vm0, %v644_v30  ;;  %659 = vst.msk [vmem:[#allocation2] sm:$0xff] %vm223_vm0, %v626_v31  ;;  %v645_v39 = vadd.f32 %v944_v37, %v275_v28  ;;  %v627_v40 = vadd.f32 %v502_v38, %v257_v29  ;;  %v566_v41 = vpop.f32.mrb[3].mxu1 }
  0xeb   : > { %675 = vst.msk [vmem:[#allocation2 + $0x80] sm:$0xff] %vm223_vm0, %v642_v35  ;;  %662 = vst.msk [vmem:[#allocation2 + $0x18] sm:$0xff] %vm223_vm0, %v629_v36  ;;  %v643_v42 = vadd.f32 %v566_v41, %v273_v34 }
  0xec   : > { %678 = vst.msk [vmem:[#allocation2 + $0x98] sm:$0xff] %vm223_vm0, %v645_v39  ;;  %660 = vst.msk [vmem:[#allocation2 + $0x8] sm:$0xff] %vm223_vm0, %v627_v40 }
  0xed   : > { %676 = vst.msk [vmem:[#allocation2 + $0x88] sm:$0xff] %vm223_vm0, %v643_v42 }
  0xee   : > { %v931_v46 = vpop.f32.mrb[4].mxu0 }
  0xef   : > { %v632_v49 = vadd.f32 %v931_v46, %v262_v43  ;;  %v947_v50 = vpop.f32.mrb[4].mxu1  ;;  %v515_v51 = vpop.f32.mrb[5].mxu0  ;;  %v270_v43 = vld [vmem:[#allocation2 + $0x70] sm:$0xff] }
  0xf0   : > { %v696_v54 = vld [vmem:[#allocation2 + $0x10] sm:$0xff]  ;;  %v648_v55 = vadd.f32 %v947_v50, %v278_v44  ;;  %v630_v56 = vadd.f32 %v515_v51, %v260_v45  ;;  %v579_v57 = vpop.f32.mrb[5].mxu1  ;;  %v932_v58 = vpop.f32.mrb[6].mxu0  ;;  %v268_v45 = vld [vmem:[#allocation2 + $0x60] sm:$0xff] }
  0xf1   : > { %728 = vst.msk [vmem:[%s1152_s25 + $0x10] sm:$0xff] %vm223_vm0, %v696_v54  ;;  %v712_v60 = vld [vmem:[#allocation2 + $0x90] sm:$0xff]  ;;  %v694_v61 = vld [vmem:[#allocation2] sm:$0xff]  ;;  %665 = vst.msk [vmem:[#allocation2 + $0x30] sm:$0xff] %vm223_vm0, %v632_v49  ;;  %v646_v62 = vadd.f32 %v579_v57, %v276_v47  ;;  %v633_v63 = vadd.f32 %v932_v58, %v263_v48  ;;  %v948_v0 = vpop.f32.mrb[6].mxu1  ;;  %v518_v1 = vpop.f32.mrb[7].mxu0 }
  0xf2   : > { %744 = vst.msk [vmem:[%s1152_s25 + $0x90] sm:$0xff] %vm223_vm0, %v712_v60  ;;  %726 = vst.msk [vmem:[%s1152_s25] sm:$0xff] %vm223_vm0, %v694_v61  ;;  %v710_v2 = vld [vmem:[#allocation2 + $0x80] sm:$0xff]  ;;  %v697_v3 = vld [vmem:[#allocation2 + $0x18] sm:$0xff]  ;;  %v649_v4 = vadd.f32 %v948_v0, %v279_v52  ;;  %v631_v5 = vadd.f32 %v518_v1, %v261_v53  ;;  %v582_v6 = vpop.f32.mrb[7].mxu1 }
  0xf3   : > { %681 = vst.msk [vmem:[#allocation2 + $0xb0] sm:$0xff] %vm223_vm0, %v648_v55  ;;  %663 = vst.msk [vmem:[#allocation2 + $0x20] sm:$0xff] %vm223_vm0, %v630_v56  ;;  %v713_v7 = vld [vmem:[#allocation2 + $0x98] sm:$0xff]  ;;  %v695_v8 = vld [vmem:[#allocation2 + $0x8] sm:$0xff]  ;;  %v647_v9 = vadd.f32 %v582_v6, %v277_v59 }
  0xf4   : > { %742 = vst.msk [vmem:[%s1152_s25 + $0x80] sm:$0xff] %vm223_vm0, %v710_v2  ;;  %729 = vst.msk [vmem:[%s1152_s25 + $0x18] sm:$0xff] %vm223_vm0, %v697_v3  ;;  %v711_v10 = vld [vmem:[#allocation2 + $0x88] sm:$0xff]  ;;  %v286_v44 = vld [vmem:[#allocation2 + $0xf0] sm:$0xff] }
  0xf5   : > { %679 = vst.msk [vmem:[#allocation2 + $0xa0] sm:$0xff] %vm223_vm0, %v646_v62  ;;  %666 = vst.msk [vmem:[#allocation2 + $0x38] sm:$0xff] %vm223_vm0, %v633_v63  ;;  %v284_v47 = vld [vmem:[#allocation2 + $0xe0] sm:$0xff]  ;;  %v271_v48 = vld [vmem:[#allocation2 + $0x78] sm:$0xff] }
  0xf6   : > { %745 = vst.msk [vmem:[%s1152_s25 + $0x98] sm:$0xff] %vm223_vm0, %v713_v7  ;;  %727 = vst.msk [vmem:[%s1152_s25 + $0x8] sm:$0xff] %vm223_vm0, %v695_v8  ;;  %v935_v14 = vpop.f32.mrb[8].mxu0  ;;  %v287_v52 = vld [vmem:[#allocation2 + $0xf8] sm:$0xff]  ;;  %v269_v53 = vld [vmem:[#allocation2 + $0x68] sm:$0xff] }
  0xf7   : > { %682 = vst.msk [vmem:[#allocation2 + $0xb8] sm:$0xff] %vm223_vm0, %v649_v4  ;;  %664 = vst.msk [vmem:[#allocation2 + $0x28] sm:$0xff] %vm223_vm0, %v631_v5  ;;  %v636_v17 = vadd.f32 %v935_v14, %v266_v11  ;;  %v951_v18 = vpop.f32.mrb[8].mxu1  ;;  %v531_v19 = vpop.f32.mrb[9].mxu0  ;;  %v285_v59 = vld [vmem:[#allocation2 + $0xe8] sm:$0xff] }
  0xf8   : > { %743 = vst.msk [vmem:[%s1152_s25 + $0x88] sm:$0xff] %vm223_vm0, %v711_v10  ;;  %680 = vst.msk [vmem:[#allocation2 + $0xa8] sm:$0xff] %vm223_vm0, %v647_v9  ;;  %v700_v22 = vld [vmem:[#allocation2 + $0x30] sm:$0xff]  ;;  %v652_v23 = vadd.f32 %v951_v18, %v282_v12  ;;  %v634_v24 = vadd.f32 %v531_v19, %v264_v13  ;;  %v595_v25 = vpop.f32.mrb[9].mxu1  ;;  %v936_v26 = vpop.f32.mrb[10].mxu0 }
  0xf9   : > { %732 = vst.msk [vmem:[%s1152_s25 + $0x30] sm:$0xff] %vm223_vm0, %v700_v22  ;;  %669 = vst.msk [vmem:[#allocation2 + $0x50] sm:$0xff] %vm223_vm0, %v636_v17  ;;  %v650_v30 = vadd.f32 %v595_v25, %v280_v15  ;;  %v637_v31 = vadd.f32 %v936_v26, %v267_v16  ;;  %v952_v32 = vpop.f32.mrb[10].mxu1  ;;  %v534_v33 = vpop.f32.mrb[11].mxu0 }
  0xfa   : > { %v716_v28 = vld [vmem:[#allocation2 + $0xb0] sm:$0xff]  ;;  %v698_v29 = vld [vmem:[#allocation2 + $0x20] sm:$0xff]  ;;  %685 = vst.msk [vmem:[#allocation2 + $0xd0] sm:$0xff] %vm223_vm0, %v652_v23  ;;  %667 = vst.msk [vmem:[#allocation2 + $0x40] sm:$0xff] %vm223_vm0, %v634_v24  ;;  %v653_v36 = vadd.f32 %v952_v32, %v283_v20  ;;  %v635_v37 = vadd.f32 %v534_v33, %v265_v21  ;;  %v598_v38 = vpop.f32.mrb[11].mxu1 }
  0xfb   : > { %748 = vst.msk [vmem:[%s1152_s25 + $0xb0] sm:$0xff] %vm223_vm0, %v716_v28  ;;  %730 = vst.msk [vmem:[%s1152_s25 + $0x20] sm:$0xff] %vm223_vm0, %v698_v29  ;;  %v651_v41 = vadd.f32 %v598_v38, %v281_v27 }
  0xfc   : > { %v714_v34 = vld [vmem:[#allocation2 + $0xa0] sm:$0xff]  ;;  %v701_v35 = vld [vmem:[#allocation2 + $0x38] sm:$0xff]  ;;  %683 = vst.msk [vmem:[#allocation2 + $0xc0] sm:$0xff] %vm223_vm0, %v650_v30  ;;  %670 = vst.msk [vmem:[#allocation2 + $0x58] sm:$0xff] %vm223_vm0, %v637_v31 }
  0xfd   : > { %746 = vst.msk [vmem:[%s1152_s25 + $0xa0] sm:$0xff] %vm223_vm0, %v714_v34  ;;  %733 = vst.msk [vmem:[%s1152_s25 + $0x38] sm:$0xff] %vm223_vm0, %v701_v35 }
  0xfe   : > { %v717_v39 = vld [vmem:[#allocation2 + $0xb8] sm:$0xff]  ;;  %v699_v40 = vld [vmem:[#allocation2 + $0x28] sm:$0xff]  ;;  %686 = vst.msk [vmem:[#allocation2 + $0xd8] sm:$0xff] %vm223_vm0, %v653_v36  ;;  %668 = vst.msk [vmem:[#allocation2 + $0x48] sm:$0xff] %vm223_vm0, %v635_v37  ;;  %v939_v46 = vpop.f32.mrb[12].mxu0 }
  0xff   : > { %749 = vst.msk [vmem:[%s1152_s25 + $0xb8] sm:$0xff] %vm223_vm0, %v717_v39  ;;  %731 = vst.msk [vmem:[%s1152_s25 + $0x28] sm:$0xff] %vm223_vm0, %v699_v40  ;;  %v715_v42 = vld [vmem:[#allocation2 + $0xa8] sm:$0xff]  ;;  %v640_v49 = vadd.f32 %v939_v46, %v270_v43  ;;  %v955_v50 = vpop.f32.mrb[12].mxu1  ;;  %v547_v51 = vpop.f32.mrb[13].mxu0 }
 0x100   : > { %747 = vst.msk [vmem:[%s1152_s25 + $0xa8] sm:$0xff] %vm223_vm0, %v715_v42  ;;  %684 = vst.msk [vmem:[#allocation2 + $0xc8] sm:$0xff] %vm223_vm0, %v651_v41  ;;  %v704_v54 = vld [vmem:[#allocation2 + $0x50] sm:$0xff]  ;;  %v656_v55 = vadd.f32 %v955_v50, %v286_v44  ;;  %v638_v56 = vadd.f32 %v547_v51, %v268_v45  ;;  %v611_v57 = vpop.f32.mrb[13].mxu1  ;;  %v940_v58 = vpop.f32.mrb[14].mxu0 }
 0x101   : > { %736 = vst.msk [vmem:[%s1152_s25 + $0x50] sm:$0xff] %vm223_vm0, %v704_v54  ;;  %v720_v60 = vld [vmem:[#allocation2 + $0xd0] sm:$0xff]  ;;  %v702_v61 = vld [vmem:[#allocation2 + $0x40] sm:$0xff]  ;;  %673 = vst.msk [vmem:[#allocation2 + $0x70] sm:$0xff] %vm223_vm0, %v640_v49  ;;  %v654_v62 = vadd.f32 %v611_v57, %v284_v47  ;;  %v641_v63 = vadd.f32 %v940_v58, %v271_v48  ;;  %v956_v0 = vpop.f32.mrb[14].mxu1  ;;  %v550_v1 = vpop.f32.mrb[15].mxu0 }
 0x102   : > { %752 = vst.msk [vmem:[%s1152_s25 + $0xd0] sm:$0xff] %vm223_vm0, %v720_v60  ;;  %734 = vst.msk [vmem:[%s1152_s25 + $0x40] sm:$0xff] %vm223_vm0, %v702_v61  ;;  %v657_v4 = vadd.f32 %v956_v0, %v287_v52  ;;  %v639_v5 = vadd.f32 %v550_v1, %v269_v53  ;;  %v614_v6 = vpop.f32.mrb[15].mxu1 }
 0x103   : > { %v718_v2 = vld [vmem:[#allocation2 + $0xc0] sm:$0xff]  ;;  %v705_v3 = vld [vmem:[#allocation2 + $0x58] sm:$0xff]  ;;  %689 = vst.msk [vmem:[#allocation2 + $0xf0] sm:$0xff] %vm223_vm0, %v656_v55  ;;  %671 = vst.msk [vmem:[#allocation2 + $0x60] sm:$0xff] %vm223_vm0, %v638_v56  ;;  %v655_v9 = vadd.f32 %v614_v6, %v285_v59 }
 0x104   : > { %750 = vst.msk [vmem:[%s1152_s25 + $0xc0] sm:$0xff] %vm223_vm0, %v718_v2  ;;  %737 = vst.msk [vmem:[%s1152_s25 + $0x58] sm:$0xff] %vm223_vm0, %v705_v3 }
 0x105   : > { %v721_v7 = vld [vmem:[#allocation2 + $0xd8] sm:$0xff]  ;;  %v703_v8 = vld [vmem:[#allocation2 + $0x48] sm:$0xff]  ;;  %687 = vst.msk [vmem:[#allocation2 + $0xe0] sm:$0xff] %vm223_vm0, %v654_v62  ;;  %674 = vst.msk [vmem:[#allocation2 + $0x78] sm:$0xff] %vm223_vm0, %v641_v63 }
 0x106   : > { %753 = vst.msk [vmem:[%s1152_s25 + $0xd8] sm:$0xff] %vm223_vm0, %v721_v7  ;;  %735 = vst.msk [vmem:[%s1152_s25 + $0x48] sm:$0xff] %vm223_vm0, %v703_v8 }
 0x107   : > { %v719_v10 = vld [vmem:[#allocation2 + $0xc8] sm:$0xff]  ;;  %690 = vst.msk [vmem:[#allocation2 + $0xf8] sm:$0xff] %vm223_vm0, %v657_v4  ;;  %672 = vst.msk [vmem:[#allocation2 + $0x68] sm:$0xff] %vm223_vm0, %v639_v5 }
 0x108   : > { %751 = vst.msk [vmem:[%s1152_s25 + $0xc8] sm:$0xff] %vm223_vm0, %v719_v10  ;;  %688 = vst.msk [vmem:[#allocation2 + $0xe8] sm:$0xff] %vm223_vm0, %v655_v9  ;;  %v708_v11 = vld [vmem:[#allocation2 + $0x70] sm:$0xff] }
 0x109   : > { %740 = vst.msk [vmem:[%s1152_s25 + $0x70] sm:$0xff] %vm223_vm0, %v708_v11 }
 0x10a   : > { %v724_v12 = vld [vmem:[#allocation2 + $0xf0] sm:$0xff]  ;;  %v706_v13 = vld [vmem:[#allocation2 + $0x60] sm:$0xff] }
 0x10b   : > { %756 = vst.msk [vmem:[%s1152_s25 + $0xf0] sm:$0xff] %vm223_vm0, %v724_v12  ;;  %738 = vst.msk [vmem:[%s1152_s25 + $0x60] sm:$0xff] %vm223_vm0, %v706_v13 }
 0x10c   : > { %v722_v14 = vld [vmem:[#allocation2 + $0xe0] sm:$0xff]  ;;  %v709_v15 = vld [vmem:[#allocation2 + $0x78] sm:$0xff] }
 0x10d   : > { %754 = vst.msk [vmem:[%s1152_s25 + $0xe0] sm:$0xff] %vm223_vm0, %v722_v14  ;;  %741 = vst.msk [vmem:[%s1152_s25 + $0x78] sm:$0xff] %vm223_vm0, %v709_v15 }
 0x10e   : > { %v725_v16 = vld [vmem:[#allocation2 + $0xf8] sm:$0xff]  ;;  %v707_v17 = vld [vmem:[#allocation2 + $0x68] sm:$0xff] }
 0x10f   : > { %757 = vst.msk [vmem:[%s1152_s25 + $0xf8] sm:$0xff] %vm223_vm0, %v725_v16  ;;  %739 = vst.msk [vmem:[%s1152_s25 + $0x68] sm:$0xff] %vm223_vm0, %v707_v17  ;;  %v723_v18 = vld [vmem:[#allocation2 + $0xe8] sm:$0xff] }
 0x110   : > { %755 = vst.msk [vmem:[%s1152_s25 + $0xe8] sm:$0xff] %vm223_vm0, %v723_v18 }
 0x111 PF: > { %s12_s11 = sadd.s32 1, %s1026_s11   ;;  %s1254_s9 = smov %s1022_s10 }
 0x112   : > { %p9_p5 = scmp.ge.s32.totalorder %s12_s11, 4   ;;  %s1255_s10 = smov %s1257_s12 }
 0x114   :  { %11 = sbr.rel (!%p9_p5) target bundleno = 2 (0x2), region = 69 }

// kernel: dccgan_generator_forward.27
= control target key start
LH: loop header
LB: loop body
LE: loop exit
PB: predicated region body
PF: predicated region fallthrough
CT: control target
= control target key end

     0   :  { %s65_s0 = inlined_call_operand.vmem [shape: f32[16,128], index: 0, kind: input, shape index: {}]   ;;  %s66_s1 = inlined_call_operand.vmem [shape: f32[1,128], index: 1, kind: input, shape index: {}]   ;;  %s67_s2 = inlined_call_operand.vmem [shape: f32[16,128], index: 2, kind: output, shape index: {}]  }
   0x1   :  { %v11_v0 = vld [vmem:[%s65_s0] sm:$0xff]  ;;  %v12_v2 = vld [vmem:[%s65_s0 + $0x8] sm:$0xff] }
   0x2   :  { %v30_v1 = vld [vmem:[%s66_s1] ss:$0 sm:$0xff] }
   0x3   :  { %v20_v3 = vadd.f32 %v30_v1, %v11_v0  ;;  %v21_v4 = vadd.f32 %v30_v1, %v12_v2 }
   0x5   :  { %31 = vtanh.f32 %v20_v3 }
   0x6   :  { %33 = vtanh.f32 %v21_v4 }
   0xf   :  { %v32_v5 = vpop.eup %31 }
  0x10   :  { %v34_v6 = vpop.eup %33  ;;  %24 = vst [vmem:[%s67_s2] sm:$0xff] %v32_v5 }
  0x11   :  { %25 = vst [vmem:[%s67_s2 + $0x8] sm:$0xff] %v34_v6 }

</bundles_post_ra>
